<compile_context>
chip_gen: v7x
topology: tpu7x:2x2x1
jax: 0.10.0
libtpu: 0.0.40
codegen_flags: <defaults>
</compile_context>

<pallas_src>
import functools

import numpy as np
import jax
import jax.numpy as jnp
from jax.experimental import pallas as pl
from jax.experimental.pallas import tpu as pltpu


def _pad_amounts(k):
    # PyTorch pad_layer: (k//2, k//2) for odd k, (k//2, k//2 - 1) for even k.
    return (k // 2, k // 2 - 1) if (k % 2 == 0) else (k // 2, k // 2)


def _round_up(v, m):
    return ((v + m - 1) // m) * m


# ------------------------------ fused Pallas kernel ------------------------------
def _fused_kernel(x_ref, w_bank_ref, b_bank_ref, w_in_ref, b_in_ref,
                  w_cb_ref, b_cb_ref, w_db_ref, b_db_ref, w_out_ref, b_out_ref,
                  o_ref, ws_ref, *, cfg, d_l, d_r, b_blk):
    """Entire SpeakerEncoder forward for b_blk batch elements (one grid step).

    x_ref  : (b_blk, L, c_in) input block.
    w_*_ref: consolidated weights/biases (bank fused, conv/dense blocks stacked).
    o_ref  : (b_blk, 1, c_out) output block.
    ws_ref : small VMEM scratch, used ONLY for stride-s gathers (strided im2col of the
             subsampled conv and the ceil-mode avg-pool residual).
    """
    ks = cfg["kernel_size"]
    c_h = cfg["c_h"]
    n_cb, n_db = cfg["n_conv_blocks"], cfg["n_dense_blocks"]
    subsample = cfg["subsample"]

    def reflect_pad(v, p_l, p_r):
        """PyTorch reflect padding on the time axis, built in registers."""
        lv = v.shape[0]
        assert lv > p_l and lv > p_r, "sequence too short for reflect padding"
        parts = [v[i:i + 1, :] for i in range(p_l, 0, -1)]            # x[p_l], ..., x[1]
        parts.append(v)
        parts += [v[lv - 2 - i:lv - 1 - i, :] for i in range(p_r)]    # x[L-2], x[L-3], ...
        return jnp.concatenate(parts, axis=0) if len(parts) > 1 else v

    def im2col(vp, k, lo):
        """Stride-1 im2col slab from a padded register value (lane concat of k taps)."""
        if k == 1:
            return vp[0:lo, :]
        return jnp.concatenate([vp[j:j + lo, :] for j in range(k)], axis=1)

    def im2col_strided(vp, k, s, lo):
        """Stride-s im2col: one contiguous scratch store + k pl.ds strided reads.

        TODO(synk): keep this in registers too once strided slicing of values lowers.
        """
        lp, c = vp.shape
        ws_ref[0:lp, 0:c] = vp
        cols = [ws_ref[pl.ds(j, lo, s), 0:c] for j in range(k)]
        return jnp.concatenate(cols, axis=1)

    def avg_pool_ceil(v, s):
        """F.avg_pool1d(v, s, ceil_mode=True); divisor = #valid elements per window."""
        lv, c = v.shape
        lo = -(-lv // s)
        ws_ref[0:lv, 0:c] = v
        tail = lo * s - lv
        if tail:                                # zero-fill so partial-window reads are defined
            ws_ref[lv:lv + tail, 0:c] = jnp.zeros((tail, c), jnp.float32)
        acc = ws_ref[pl.ds(0, lo, s), 0:c]
        for j in range(1, s):
            acc = acc + ws_ref[pl.ds(j, lo, s), 0:c]
        if lv % s == 0:
            return acc * (1.0 / s)
        idx = jax.lax.broadcasted_iota(jnp.int32, (lo, 1), 0)
        counts = jnp.minimum(lv - idx * s, s).astype(jnp.float32)
        return acc / counts

    def matmul_bias(slabs, w, b, relu):
        """Stack the per-element slabs into one matmul (batch-blocked M), split back."""
        lens = [sl.shape[0] for sl in slabs]
        big = jnp.concatenate(slabs, axis=0) if len(slabs) > 1 else slabs[0]
        y = jnp.dot(big, w, preferred_element_type=jnp.float32) + b
        if relu:
            y = jnp.maximum(y, 0.0)
        outs, off = [], 0
        for lv in lens:
            outs.append(y[off:off + lv, :])
            off += lv
        return outs

    xs = [x_ref[e].astype(jnp.float32) for e in range(b_blk)]          # (L, c_in) each
    L = xs[0].shape[0]

    # ---- conv bank: ONE fused matmul over all bank kernel sizes (+ReLU), concat x ----
    t_bank = d_l + 1 + d_r
    slabs = [im2col(reflect_pad(v, d_l, d_r), t_bank, L) for v in xs]
    bank = matmul_bias(slabs, w_bank_ref[...], b_bank_ref[...], relu=True)
    outs = [jnp.concatenate([bo, v], axis=1) for bo, v in zip(bank, xs)]   # (L, in_ch)

    # ---- 1x1 in_conv + ReLU ----
    outs = matmul_bias(outs, w_in_ref[...], b_in_ref[...], relu=True)      # (L, c_h)

    # ---- conv blocks (dropout_rate = 0 -> identity) ----
    p_l, p_r = _pad_amounts(ks)
    for l in range(n_cb):
        s = subsample[l]
        w1 = w_cb_ref[2 * l]
        b1 = b_cb_ref[2 * l:2 * l + 1, :]
        w2 = w_cb_ref[2 * l + 1]
        b2 = b_cb_ref[2 * l + 1:2 * l + 2, :]
        lv = outs[0].shape[0]
        # first conv, stride 1
        slabs = [im2col(reflect_pad(v, p_l, p_r), ks, lv) for v in outs]
        ys = matmul_bias(slabs, w1, b1, relu=True)
        # second conv, stride folded into the slab; ceil-mode avg-pool residual
        if s > 1:
            lo = (lv - 1) // s + 1
            slabs = [im2col_strided(reflect_pad(v, p_l, p_r), ks, s, lo) for v in ys]
            res = [avg_pool_ceil(v, s) for v in outs]
        else:
            slabs = [im2col(reflect_pad(v, p_l, p_r), ks, lv) for v in ys]
            res = outs
        ys = matmul_bias(slabs, w2, b2, relu=True)
        outs = [y + r for y, r in zip(ys, res)]

    # ---- dense blocks ----
    pd_l, pd_r = _pad_amounts(3)
    for l in range(n_db):
        w = w_db_ref[l]
        b = b_db_ref[l:l + 1, :]
        lv = outs[0].shape[0]
        slabs = [im2col(reflect_pad(v, pd_l, pd_r), 3, lv) for v in outs]
        ys = matmul_bias(slabs, w, b, relu=True)
        outs = [y + v for y, v in zip(ys, outs)]

    # ---- output conv + AdaptiveAvgPool1d(1) + transpose(1,2) ----
    lv = outs[0].shape[0]
    slabs = [im2col(reflect_pad(v, pd_l, pd_r), 3, lv) for v in outs]
    ys = matmul_bias(slabs, w_out_ref[...], b_out_ref[...], relu=False)     # (lv, c_out)
    for e in range(b_blk):
        o_ref[e] = jnp.mean(ys[e], axis=0, keepdims=True).astype(o_ref.dtype)


# ------------------------------------ wrapper -------------------------------------
def speaker_encoder_forward(x_ncl, params, cfg, b_blk=2):
    x = jnp.transpose(x_ncl, (0, 2, 1)).astype(jnp.float32)        # (B, L, c_in)
    B, L, c_in = x.shape
    c_h, c_out, c_bank = cfg["c_h"], cfg["c_out"], cfg["c_bank"]
    ks = cfg["kernel_size"]
    n_cb, n_db = cfg["n_conv_blocks"], cfg["n_dense_blocks"]
    assert B % b_blk == 0, "batch must be divisible by the batch block"

    # ---- fused conv-bank weight: union of tap offsets, zero-padded per bank kernel ----
    bank_ks = [w.shape[0] for (w, _) in params["bank"]]
    d_l = max(_pad_amounts(k)[0] for k in bank_ks)
    d_r = max(_pad_amounts(k)[1] for k in bank_ks)
    t_bank = d_l + 1 + d_r
    cols, bbs = [], []
    for (w, b) in params["bank"]:
        k = w.shape[0]
        p_l, _ = _pad_amounts(k)
        top = d_l - p_l
        wpad = jnp.pad(w.astype(jnp.float32), ((top, t_bank - top - k), (0, 0), (0, 0)))
        cols.append(wpad.reshape(t_bank * c_in, -1))
        bbs.append(b.reshape(1, -1).astype(jnp.float32))
    w_bank = jnp.concatenate(cols, axis=1)                         # (T*c_in, n_bank*c_bank)
    b_bank = jnp.concatenate(bbs, axis=1)                          # (1, n_bank*c_bank)

    w_in = params["in_conv"][0].reshape(-1, c_h).astype(jnp.float32)
    b_in = params["in_conv"][1].reshape(1, c_h).astype(jnp.float32)

    cb_w, cb_b = [], []
    for l in range(n_cb):
        for (w, b) in (params["first"][l], params["second"][l]):
            cb_w.append(w.reshape(-1, c_h).astype(jnp.float32))
            cb_b.append(b.reshape(1, c_h).astype(jnp.float32))
    w_cb = jnp.stack(cb_w)                                         # (2*n_cb, ks*c_h, c_h)
    b_cb = jnp.concatenate(cb_b, axis=0)                           # (2*n_cb, c_h)

    w_db = jnp.stack([w.reshape(-1, c_h).astype(jnp.float32) for (w, _) in params["dense"]])
    b_db = jnp.concatenate([b.reshape(1, c_h).astype(jnp.float32) for (_, b) in params["dense"]])

    w_out = params["out"][0].reshape(-1, c_out).astype(jnp.float32)
    b_out = params["out"][1].reshape(1, c_out).astype(jnp.float32)

    weights = [w_bank, b_bank, w_in, b_in, w_cb, b_cb, w_db, b_db, w_out, b_out]

    # Scratch (stride-s gathers only): rows cover the largest reflect-padded activation and
    # the zero tail of the ceil-mode pool; lanes cover c_h.
    max_s = max(cfg["subsample"]) if cfg["subsample"] else 1
    l_ws = _round_up(max(L + ks - 1, L + max_s - 1, 8), 8)
    c_ws = _round_up(max(c_h, 1), 128)

    kernel = functools.partial(_fused_kernel, cfg=cfg, d_l=d_l, d_r=d_r, b_blk=b_blk)

    in_specs = [pl.BlockSpec((b_blk, L, c_in), lambda i: (i, 0, 0))]
    for arr in weights:                          # weights are grid-invariant (fetched once)
        in_specs.append(pl.BlockSpec(arr.shape, lambda i, n=arr.ndim: (0,) * n))

    return pl.pallas_call(
        kernel,
        grid=(B // b_blk,),
        in_specs=in_specs,
        out_specs=pl.BlockSpec((b_blk, 1, c_out), lambda i: (i, 0, 0)),
        out_shape=jax.ShapeDtypeStruct((B, 1, c_out), jnp.float32),
        scratch_shapes=[pltpu.VMEM((l_ws, c_ws), jnp.float32)],
        compiler_params=pltpu.CompilerParams(
            dimension_semantics=("parallel",),
            vmem_limit_bytes=32 * 1024 * 1024),
    )(x, *weights)


# --------------------------- parameters (synthetic) --------------------------------
def init_params(key, cfg):
    keys = iter(jax.random.split(key, 128))

    def conv_p(cin, cout, k):   # weight_norm is a reparam; identity for the forward pass
        w = 0.1 * jax.random.normal(next(keys), (k, cin, cout), jnp.float32)
        b = 0.1 * jax.random.normal(next(keys), (cout,), jnp.float32)
        return (w, b)

    bank = [conv_p(cfg["c_in"], cfg["c_bank"], k)
            for k in range(cfg["bank_scale"], cfg["bank_size"] + 1, cfg["bank_scale"])]
    in_ch = cfg["c_bank"] * (cfg["bank_size"] // cfg["bank_scale"]) + cfg["c_in"]
    return dict(
        bank=bank,
        in_conv=conv_p(in_ch, cfg["c_h"], 1),
        first=[conv_p(cfg["c_h"], cfg["c_h"], cfg["kernel_size"])
               for _ in range(cfg["n_conv_blocks"])],
        second=[conv_p(cfg["c_h"], cfg["c_h"], cfg["kernel_size"])
                for _ in range(cfg["n_conv_blocks"])],
        dense=[conv_p(cfg["c_h"], cfg["c_h"], 3) for _ in range(cfg["n_dense_blocks"])],
        out=conv_p(cfg["c_h"], cfg["c_out"], 3),
    )


# ------------------------- pure-JAX reference (correctness) ------------------------
def reflect_pad_time(x, k):
    pad = (k // 2, k // 2 - 1) if (k % 2 == 0) else (k // 2, k // 2)
    if pad == (0, 0):
        return x
    return jnp.pad(x, ((0, 0), pad, (0, 0)), mode="reflect")


def avg_pool1d_ceil(x, k):
    B, L, C = x.shape
    Lo = -(-L // k)
    pad = Lo * k - L
    xp = jnp.pad(x, ((0, 0), (0, pad), (0, 0)))
    s = xp.reshape(B, Lo, k, C).sum(axis=2)
    counts = (jnp.minimum(jnp.arange(Lo) * k + k, L) - jnp.arange(Lo) * k).astype(x.dtype)
    return s / counts[None, :, None]


def _ref_conv(x, w, b, stride=1):
    y = jax.lax.conv_general_dilated(x, w, (stride,), "VALID",
                                     dimension_numbers=("NWC", "WIO", "NWC"))
    return y + b[None, None, :]


def reference_forward(x_ncl, params, cfg):
    relu = lambda v: jnp.maximum(v, 0.0)
    x = jnp.transpose(x_ncl, (0, 2, 1)).astype(jnp.float32)
    outs = [relu(_ref_conv(reflect_pad_time(x, w.shape[0]), w, b))
            for (w, b) in params["bank"]]
    out = jnp.concatenate(outs + [x], axis=-1)
    w, b = params["in_conv"]
    out = relu(_ref_conv(out, w, b))
    ks = cfg["kernel_size"]
    for l in range(cfg["n_conv_blocks"]):
        w1, b1 = params["first"][l]
        w2, b2 = params["second"][l]
        sub = cfg["subsample"][l]
        y = relu(_ref_conv(reflect_pad_time(out, ks), w1, b1))
        res = avg_pool1d_ceil(out, sub) if sub > 1 else out
        out = relu(_ref_conv(reflect_pad_time(y, ks), w2, b2, stride=sub)) + res
    for l in range(cfg["n_dense_blocks"]):
        w, b = params["dense"][l]
        out = relu(_ref_conv(reflect_pad_time(out, 3), w, b)) + out
    w, b = params["out"]
    out = _ref_conv(reflect_pad_time(out, 3), w, b)
    return jnp.mean(out, axis=1, keepdims=True)


# ----------------------------------------- main ------------------------------------
if __name__ == "__main__":
    # Small config consistent with the module's constructor signature.
    cfg = dict(c_in=16, c_h=16, c_out=64, kernel_size=5, bank_size=4, bank_scale=1,
               c_bank=16, n_conv_blocks=4, n_dense_blocks=3, subsample=[1, 2, 2, 2])
    B, L = 8, 32           # even batch, >= 4 grid steps with b_blk=2 (v7x 2-TC friendly)

    key = jax.random.PRNGKey(0)
    kp, kx = jax.random.split(key)
    params = init_params(kp, cfg)
    x = jax.random.normal(kx, (B, cfg["c_in"], L), jnp.float32)   # NCL, like PyTorch input

    out = speaker_encoder_forward(x, params, cfg, b_blk=2)
    out = jax.block_until_ready(out)

    assert out.shape == (B, 1, cfg["c_out"])
    ref = reference_forward(x, params, cfg)
    np.testing.assert_allclose(np.asarray(out), np.asarray(ref), rtol=2e-3, atol=1e-3)
    print("KERNEL_OK")
</pallas_src>

<mosaic_0001>
module attributes {stable_mosaic.version = 11 : i64} {
  func.func @_fused_kernel(%arg0: i32, %arg1: memref<2x32x16xf32, #tpu.memory_space<vmem>>, %arg2: memref<64x64xf32, #tpu.memory_space<vmem>>, %arg3: memref<1x64xf32, #tpu.memory_space<vmem>>, %arg4: memref<80x16xf32, #tpu.memory_space<vmem>>, %arg5: memref<1x16xf32, #tpu.memory_space<vmem>>, %arg6: memref<8x80x16xf32, #tpu.memory_space<vmem>>, %arg7: memref<8x16xf32, #tpu.memory_space<vmem>>, %arg8: memref<3x48x16xf32, #tpu.memory_space<vmem>>, %arg9: memref<3x16xf32, #tpu.memory_space<vmem>>, %arg10: memref<48x64xf32, #tpu.memory_space<vmem>>, %arg11: memref<1x64xf32, #tpu.memory_space<vmem>>, %arg12: memref<2x1x64xf32, #tpu.memory_space<vmem>>, %arg13: memref<40x128xf32, #tpu.memory_space<vmem>>) attributes {dimension_semantics = [#tpu.dimension_semantics<parallel>], iteration_bounds = array<i64: 4>, scalar_prefetch = 0 : i64, scratch_operands = 1 : i64, tpu.core_type = #tpu.core_type<tc>, window_params = [{transform_indices = @transform_0, window_bounds = array<i64: 2, 32, 16>}, {pipeline_mode = #tpu.pipeline_mode<synchronous>, transform_indices = @transform_1, window_bounds = array<i64: 64, 64>}, {pipeline_mode = #tpu.pipeline_mode<synchronous>, transform_indices = @transform_2, window_bounds = array<i64: 1, 64>}, {pipeline_mode = #tpu.pipeline_mode<synchronous>, transform_indices = @transform_3, window_bounds = array<i64: 80, 16>}, {pipeline_mode = #tpu.pipeline_mode<synchronous>, transform_indices = @transform_4, window_bounds = array<i64: 1, 16>}, {pipeline_mode = #tpu.pipeline_mode<synchronous>, transform_indices = @transform_5, window_bounds = array<i64: 8, 80, 16>}, {pipeline_mode = #tpu.pipeline_mode<synchronous>, transform_indices = @transform_6, window_bounds = array<i64: 8, 16>}, {pipeline_mode = #tpu.pipeline_mode<synchronous>, transform_indices = @transform_7, window_bounds = array<i64: 3, 48, 16>}, {pipeline_mode = #tpu.pipeline_mode<synchronous>, transform_indices = @transform_8, window_bounds = array<i64: 3, 16>}, {pipeline_mode = #tpu.pipeline_mode<synchronous>, transform_indices = @transform_9, window_bounds = array<i64: 48, 64>}, {pipeline_mode = #tpu.pipeline_mode<synchronous>, transform_indices = @transform_10, window_bounds = array<i64: 1, 64>}, {transform_indices = @transform_11, window_bounds = array<i64: 2, 1, 64>}]} {
    %c0 = arith.constant 0 : index
    %c0_0 = arith.constant 0 : index
    %c0_1 = arith.constant 0 : index
    %0 = vector.load %arg1[%c0, %c0_0, %c0_1] : memref<2x32x16xf32, #tpu.memory_space<vmem>>, vector<1x32x16xf32>
    %1 = vector.shape_cast %0 : vector<1x32x16xf32> to vector<32x16xf32>
    %c1 = arith.constant 1 : index
    %c0_2 = arith.constant 0 : index
    %c0_3 = arith.constant 0 : index
    %2 = vector.load %arg1[%c1, %c0_2, %c0_3] : memref<2x32x16xf32, #tpu.memory_space<vmem>>, vector<1x32x16xf32>
    %3 = vector.shape_cast %2 : vector<1x32x16xf32> to vector<32x16xf32>
    %4 = vector.extract_strided_slice %1 {offsets = [2, 0], sizes = [1, 16], strides = [1, 1]} : vector<32x16xf32> to vector<1x16xf32>
    %5 = vector.extract_strided_slice %1 {offsets = [1, 0], sizes = [1, 16], strides = [1, 1]} : vector<32x16xf32> to vector<1x16xf32>
    %6 = vector.extract_strided_slice %1 {offsets = [30, 0], sizes = [1, 16], strides = [1, 1]} : vector<32x16xf32> to vector<1x16xf32>
    %7 = tpu.concatenate %4, %5, %1, %6 in 0 : vector<1x16xf32>, vector<1x16xf32>, vector<32x16xf32>, vector<1x16xf32> -> vector<35x16xf32>
    %8 = vector.extract_strided_slice %7 {offsets = [0, 0], sizes = [32, 16], strides = [1, 1]} : vector<35x16xf32> to vector<32x16xf32>
    %9 = vector.extract_strided_slice %7 {offsets = [1, 0], sizes = [32, 16], strides = [1, 1]} : vector<35x16xf32> to vector<32x16xf32>
    %10 = vector.extract_strided_slice %7 {offsets = [2, 0], sizes = [32, 16], strides = [1, 1]} : vector<35x16xf32> to vector<32x16xf32>
    %11 = vector.extract_strided_slice %7 {offsets = [3, 0], sizes = [32, 16], strides = [1, 1]} : vector<35x16xf32> to vector<32x16xf32>
    %12 = tpu.concatenate %8, %9, %10, %11 in 1 : vector<32x16xf32>, vector<32x16xf32>, vector<32x16xf32>, vector<32x16xf32> -> vector<32x64xf32>
    %13 = vector.extract_strided_slice %3 {offsets = [2, 0], sizes = [1, 16], strides = [1, 1]} : vector<32x16xf32> to vector<1x16xf32>
    %14 = vector.extract_strided_slice %3 {offsets = [1, 0], sizes = [1, 16], strides = [1, 1]} : vector<32x16xf32> to vector<1x16xf32>
    %15 = vector.extract_strided_slice %3 {offsets = [30, 0], sizes = [1, 16], strides = [1, 1]} : vector<32x16xf32> to vector<1x16xf32>
    %16 = tpu.concatenate %13, %14, %3, %15 in 0 : vector<1x16xf32>, vector<1x16xf32>, vector<32x16xf32>, vector<1x16xf32> -> vector<35x16xf32>
    %17 = vector.extract_strided_slice %16 {offsets = [0, 0], sizes = [32, 16], strides = [1, 1]} : vector<35x16xf32> to vector<32x16xf32>
    %18 = vector.extract_strided_slice %16 {offsets = [1, 0], sizes = [32, 16], strides = [1, 1]} : vector<35x16xf32> to vector<32x16xf32>
    %19 = vector.extract_strided_slice %16 {offsets = [2, 0], sizes = [32, 16], strides = [1, 1]} : vector<35x16xf32> to vector<32x16xf32>
    %20 = vector.extract_strided_slice %16 {offsets = [3, 0], sizes = [32, 16], strides = [1, 1]} : vector<35x16xf32> to vector<32x16xf32>
    %21 = tpu.concatenate %17, %18, %19, %20 in 1 : vector<32x16xf32>, vector<32x16xf32>, vector<32x16xf32>, vector<32x16xf32> -> vector<32x64xf32>
    %c0_4 = arith.constant 0 : index
    %c0_5 = arith.constant 0 : index
    %22 = vector.load %arg2[%c0_4, %c0_5] : memref<64x64xf32, #tpu.memory_space<vmem>>, vector<64x64xf32>
    %c0_6 = arith.constant 0 : index
    %c0_7 = arith.constant 0 : index
    %23 = vector.load %arg3[%c0_6, %c0_7] : memref<1x64xf32, #tpu.memory_space<vmem>>, vector<1x64xf32>
    %24 = tpu.concatenate %12, %21 in 0 : vector<32x64xf32>, vector<32x64xf32> -> vector<64x64xf32>
    %cst = arith.constant dense<0.000000e+00> : vector<64x64xf32>
    %25 = tpu.matmul %24, %22, %cst {dimension_numbers = #tpu.dot_dimension_numbers<[1], [0], [0], [1], [0, 0, 1, 1], [], []>} : vector<64x64xf32>, vector<64x64xf32>, vector<64x64xf32> -> vector<64x64xf32>
    %26 = vector.broadcast %23 : vector<1x64xf32> to vector<64x64xf32>
    %27 = arith.addf %25, %26 : vector<64x64xf32>
    %cst_8 = arith.constant 0.000000e+00 : f32
    %28 = vector.broadcast %cst_8 : f32 to vector<64x64xf32>
    %29 = arith.maximumf %27, %28 : vector<64x64xf32>
    %30 = vector.extract_strided_slice %29 {offsets = [0, 0], sizes = [32, 64], strides = [1, 1]} : vector<64x64xf32> to vector<32x64xf32>
    %31 = vector.extract_strided_slice %29 {offsets = [32, 0], sizes = [32, 64], strides = [1, 1]} : vector<64x64xf32> to vector<32x64xf32>
    %32 = tpu.concatenate %30, %1 in 1 : vector<32x64xf32>, vector<32x16xf32> -> vector<32x80xf32>
    %33 = tpu.concatenate %31, %3 in 1 : vector<32x64xf32>, vector<32x16xf32> -> vector<32x80xf32>
    %c0_9 = arith.constant 0 : index
    %c0_10 = arith.constant 0 : index
    %34 = vector.load %arg4[%c0_9, %c0_10] : memref<80x16xf32, #tpu.memory_space<vmem>>, vector<80x16xf32>
    %c0_11 = arith.constant 0 : index
    %c0_12 = arith.constant 0 : index
    %35 = vector.load %arg5[%c0_11, %c0_12] : memref<1x16xf32, #tpu.memory_space<vmem>>, vector<1x16xf32>
    %36 = tpu.concatenate %32, %33 in 0 : vector<32x80xf32>, vector<32x80xf32> -> vector<64x80xf32>
    %cst_13 = arith.constant dense<0.000000e+00> : vector<64x16xf32>
    %37 = tpu.matmul %36, %34, %cst_13 {dimension_numbers = #tpu.dot_dimension_numbers<[1], [0], [0], [1], [0, 0, 1, 1], [], []>} : vector<64x80xf32>, vector<80x16xf32>, vector<64x16xf32> -> vector<64x16xf32>
    %38 = vector.broadcast %35 : vector<1x16xf32> to vector<64x16xf32>
    %39 = arith.addf %37, %38 : vector<64x16xf32>
    %cst_14 = arith.constant 0.000000e+00 : f32
    %40 = vector.broadcast %cst_14 : f32 to vector<64x16xf32>
    %41 = arith.maximumf %39, %40 : vector<64x16xf32>
    %42 = vector.extract_strided_slice %41 {offsets = [0, 0], sizes = [32, 16], strides = [1, 1]} : vector<64x16xf32> to vector<32x16xf32>
    %43 = vector.extract_strided_slice %41 {offsets = [32, 0], sizes = [32, 16], strides = [1, 1]} : vector<64x16xf32> to vector<32x16xf32>
    %c0_15 = arith.constant 0 : index
    %c0_16 = arith.constant 0 : index
    %c0_17 = arith.constant 0 : index
    %44 = vector.load %arg6[%c0_15, %c0_16, %c0_17] : memref<8x80x16xf32, #tpu.memory_space<vmem>>, vector<1x80x16xf32>
    %45 = vector.shape_cast %44 : vector<1x80x16xf32> to vector<80x16xf32>
    %c0_18 = arith.constant 0 : index
    %c0_19 = arith.constant 0 : index
    %46 = vector.load %arg7[%c0_18, %c0_19] : memref<8x16xf32, #tpu.memory_space<vmem>>, vector<1x16xf32>
    %c1_20 = arith.constant 1 : index
    %c0_21 = arith.constant 0 : index
    %c0_22 = arith.constant 0 : index
    %47 = vector.load %arg6[%c1_20, %c0_21, %c0_22] : memref<8x80x16xf32, #tpu.memory_space<vmem>>, vector<1x80x16xf32>
    %48 = vector.shape_cast %47 : vector<1x80x16xf32> to vector<80x16xf32>
    %c1_23 = arith.constant 1 : index
    %c0_24 = arith.constant 0 : index
    %49 = vector.load %arg7[%c1_23, %c0_24] : memref<8x16xf32, #tpu.memory_space<vmem>>, vector<1x16xf32>
    %50 = vector.extract_strided_slice %42 {offsets = [2, 0], sizes = [1, 16], strides = [1, 1]} : vector<32x16xf32> to vector<1x16xf32>
    %51 = vector.extract_strided_slice %42 {offsets = [1, 0], sizes = [1, 16], strides = [1, 1]} : vector<32x16xf32> to vector<1x16xf32>
    %52 = vector.extract_strided_slice %42 {offsets = [30, 0], sizes = [1, 16], strides = [1, 1]} : vector<32x16xf32> to vector<1x16xf32>
    %53 = vector.extract_strided_slice %42 {offsets = [29, 0], sizes = [1, 16], strides = [1, 1]} : vector<32x16xf32> to vector<1x16xf32>
    %54 = tpu.concatenate %50, %51, %42, %52, %53 in 0 : vector<1x16xf32>, vector<1x16xf32>, vector<32x16xf32>, vector<1x16xf32>, vector<1x16xf32> -> vector<36x16xf32>
    %55 = vector.extract_strided_slice %54 {offsets = [0, 0], sizes = [32, 16], strides = [1, 1]} : vector<36x16xf32> to vector<32x16xf32>
    %56 = vector.extract_strided_slice %54 {offsets = [1, 0], sizes = [32, 16], strides = [1, 1]} : vector<36x16xf32> to vector<32x16xf32>
    %57 = vector.extract_strided_slice %54 {offsets = [2, 0], sizes = [32, 16], strides = [1, 1]} : vector<36x16xf32> to vector<32x16xf32>
    %58 = vector.extract_strided_slice %54 {offsets = [3, 0], sizes = [32, 16], strides = [1, 1]} : vector<36x16xf32> to vector<32x16xf32>
    %59 = vector.extract_strided_slice %54 {offsets = [4, 0], sizes = [32, 16], strides = [1, 1]} : vector<36x16xf32> to vector<32x16xf32>
    %60 = tpu.concatenate %55, %56, %57, %58, %59 in 1 : vector<32x16xf32>, vector<32x16xf32>, vector<32x16xf32>, vector<32x16xf32>, vector<32x16xf32> -> vector<32x80xf32>
    %61 = vector.extract_strided_slice %43 {offsets = [2, 0], sizes = [1, 16], strides = [1, 1]} : vector<32x16xf32> to vector<1x16xf32>
    %62 = vector.extract_strided_slice %43 {offsets = [1, 0], sizes = [1, 16], strides = [1, 1]} : vector<32x16xf32> to vector<1x16xf32>
    %63 = vector.extract_strided_slice %43 {offsets = [30, 0], sizes = [1, 16], strides = [1, 1]} : vector<32x16xf32> to vector<1x16xf32>
    %64 = vector.extract_strided_slice %43 {offsets = [29, 0], sizes = [1, 16], strides = [1, 1]} : vector<32x16xf32> to vector<1x16xf32>
    %65 = tpu.concatenate %61, %62, %43, %63, %64 in 0 : vector<1x16xf32>, vector<1x16xf32>, vector<32x16xf32>, vector<1x16xf32>, vector<1x16xf32> -> vector<36x16xf32>
    %66 = vector.extract_strided_slice %65 {offsets = [0, 0], sizes = [32, 16], strides = [1, 1]} : vector<36x16xf32> to vector<32x16xf32>
    %67 = vector.extract_strided_slice %65 {offsets = [1, 0], sizes = [32, 16], strides = [1, 1]} : vector<36x16xf32> to vector<32x16xf32>
    %68 = vector.extract_strided_slice %65 {offsets = [2, 0], sizes = [32, 16], strides = [1, 1]} : vector<36x16xf32> to vector<32x16xf32>
    %69 = vector.extract_strided_slice %65 {offsets = [3, 0], sizes = [32, 16], strides = [1, 1]} : vector<36x16xf32> to vector<32x16xf32>
    %70 = vector.extract_strided_slice %65 {offsets = [4, 0], sizes = [32, 16], strides = [1, 1]} : vector<36x16xf32> to vector<32x16xf32>
    %71 = tpu.concatenate %66, %67, %68, %69, %70 in 1 : vector<32x16xf32>, vector<32x16xf32>, vector<32x16xf32>, vector<32x16xf32>, vector<32x16xf32> -> vector<32x80xf32>
    %72 = tpu.concatenate %60, %71 in 0 : vector<32x80xf32>, vector<32x80xf32> -> vector<64x80xf32>
    %cst_25 = arith.constant dense<0.000000e+00> : vector<64x16xf32>
    %73 = tpu.matmul %72, %45, %cst_25 {dimension_numbers = #tpu.dot_dimension_numbers<[1], [0], [0], [1], [0, 0, 1, 1], [], []>} : vector<64x80xf32>, vector<80x16xf32>, vector<64x16xf32> -> vector<64x16xf32>
    %74 = vector.broadcast %46 : vector<1x16xf32> to vector<64x16xf32>
    %75 = arith.addf %73, %74 : vector<64x16xf32>
    %cst_26 = arith.constant 0.000000e+00 : f32
    %76 = vector.broadcast %cst_26 : f32 to vector<64x16xf32>
    %77 = arith.maximumf %75, %76 : vector<64x16xf32>
    %78 = vector.extract_strided_slice %77 {offsets = [0, 0], sizes = [32, 16], strides = [1, 1]} : vector<64x16xf32> to vector<32x16xf32>
    %79 = vector.extract_strided_slice %77 {offsets = [32, 0], sizes = [32, 16], strides = [1, 1]} : vector<64x16xf32> to vector<32x16xf32>
    %80 = vector.extract_strided_slice %78 {offsets = [2, 0], sizes = [1, 16], strides = [1, 1]} : vector<32x16xf32> to vector<1x16xf32>
    %81 = vector.extract_strided_slice %78 {offsets = [1, 0], sizes = [1, 16], strides = [1, 1]} : vector<32x16xf32> to vector<1x16xf32>
    %82 = vector.extract_strided_slice %78 {offsets = [30, 0], sizes = [1, 16], strides = [1, 1]} : vector<32x16xf32> to vector<1x16xf32>
    %83 = vector.extract_strided_slice %78 {offsets = [29, 0], sizes = [1, 16], strides = [1, 1]} : vector<32x16xf32> to vector<1x16xf32>
    %84 = tpu.concatenate %80, %81, %78, %82, %83 in 0 : vector<1x16xf32>, vector<1x16xf32>, vector<32x16xf32>, vector<1x16xf32>, vector<1x16xf32> -> vector<36x16xf32>
    %85 = vector.extract_strided_slice %84 {offsets = [0, 0], sizes = [32, 16], strides = [1, 1]} : vector<36x16xf32> to vector<32x16xf32>
    %86 = vector.extract_strided_slice %84 {offsets = [1, 0], sizes = [32, 16], strides = [1, 1]} : vector<36x16xf32> to vector<32x16xf32>
    %87 = vector.extract_strided_slice %84 {offsets = [2, 0], sizes = [32, 16], strides = [1, 1]} : vector<36x16xf32> to vector<32x16xf32>
    %88 = vector.extract_strided_slice %84 {offsets = [3, 0], sizes = [32, 16], strides = [1, 1]} : vector<36x16xf32> to vector<32x16xf32>
    %89 = vector.extract_strided_slice %84 {offsets = [4, 0], sizes = [32, 16], strides = [1, 1]} : vector<36x16xf32> to vector<32x16xf32>
    %90 = tpu.concatenate %85, %86, %87, %88, %89 in 1 : vector<32x16xf32>, vector<32x16xf32>, vector<32x16xf32>, vector<32x16xf32>, vector<32x16xf32> -> vector<32x80xf32>
    %91 = vector.extract_strided_slice %79 {offsets = [2, 0], sizes = [1, 16], strides = [1, 1]} : vector<32x16xf32> to vector<1x16xf32>
    %92 = vector.extract_strided_slice %79 {offsets = [1, 0], sizes = [1, 16], strides = [1, 1]} : vector<32x16xf32> to vector<1x16xf32>
    %93 = vector.extract_strided_slice %79 {offsets = [30, 0], sizes = [1, 16], strides = [1, 1]} : vector<32x16xf32> to vector<1x16xf32>
    %94 = vector.extract_strided_slice %79 {offsets = [29, 0], sizes = [1, 16], strides = [1, 1]} : vector<32x16xf32> to vector<1x16xf32>
    %95 = tpu.concatenate %91, %92, %79, %93, %94 in 0 : vector<1x16xf32>, vector<1x16xf32>, vector<32x16xf32>, vector<1x16xf32>, vector<1x16xf32> -> vector<36x16xf32>
    %96 = vector.extract_strided_slice %95 {offsets = [0, 0], sizes = [32, 16], strides = [1, 1]} : vector<36x16xf32> to vector<32x16xf32>
    %97 = vector.extract_strided_slice %95 {offsets = [1, 0], sizes = [32, 16], strides = [1, 1]} : vector<36x16xf32> to vector<32x16xf32>
    %98 = vector.extract_strided_slice %95 {offsets = [2, 0], sizes = [32, 16], strides = [1, 1]} : vector<36x16xf32> to vector<32x16xf32>
    %99 = vector.extract_strided_slice %95 {offsets = [3, 0], sizes = [32, 16], strides = [1, 1]} : vector<36x16xf32> to vector<32x16xf32>
    %100 = vector.extract_strided_slice %95 {offsets = [4, 0], sizes = [32, 16], strides = [1, 1]} : vector<36x16xf32> to vector<32x16xf32>
    %101 = tpu.concatenate %96, %97, %98, %99, %100 in 1 : vector<32x16xf32>, vector<32x16xf32>, vector<32x16xf32>, vector<32x16xf32>, vector<32x16xf32> -> vector<32x80xf32>
    %102 = tpu.concatenate %90, %101 in 0 : vector<32x80xf32>, vector<32x80xf32> -> vector<64x80xf32>
    %cst_27 = arith.constant dense<0.000000e+00> : vector<64x16xf32>
    %103 = tpu.matmul %102, %48, %cst_27 {dimension_numbers = #tpu.dot_dimension_numbers<[1], [0], [0], [1], [0, 0, 1, 1], [], []>} : vector<64x80xf32>, vector<80x16xf32>, vector<64x16xf32> -> vector<64x16xf32>
    %104 = vector.broadcast %49 : vector<1x16xf32> to vector<64x16xf32>
    %105 = arith.addf %103, %104 : vector<64x16xf32>
    %cst_28 = arith.constant 0.000000e+00 : f32
    %106 = vector.broadcast %cst_28 : f32 to vector<64x16xf32>
    %107 = arith.maximumf %105, %106 : vector<64x16xf32>
    %108 = vector.extract_strided_slice %107 {offsets = [0, 0], sizes = [32, 16], strides = [1, 1]} : vector<64x16xf32> to vector<32x16xf32>
    %109 = vector.extract_strided_slice %107 {offsets = [32, 0], sizes = [32, 16], strides = [1, 1]} : vector<64x16xf32> to vector<32x16xf32>
    %110 = arith.addf %108, %42 : vector<32x16xf32>
    %111 = arith.addf %109, %43 : vector<32x16xf32>
    %c2 = arith.constant 2 : index
    %c0_29 = arith.constant 0 : index
    %c0_30 = arith.constant 0 : index
    %112 = vector.load %arg6[%c2, %c0_29, %c0_30] : memref<8x80x16xf32, #tpu.memory_space<vmem>>, vector<1x80x16xf32>
    %113 = vector.shape_cast %112 : vector<1x80x16xf32> to vector<80x16xf32>
    %c2_31 = arith.constant 2 : index
    %c0_32 = arith.constant 0 : index
    %114 = vector.load %arg7[%c2_31, %c0_32] : memref<8x16xf32, #tpu.memory_space<vmem>>, vector<1x16xf32>
    %c3 = arith.constant 3 : index
    %c0_33 = arith.constant 0 : index
    %c0_34 = arith.constant 0 : index
    %115 = vector.load %arg6[%c3, %c0_33, %c0_34] : memref<8x80x16xf32, #tpu.memory_space<vmem>>, vector<1x80x16xf32>
    %116 = vector.shape_cast %115 : vector<1x80x16xf32> to vector<80x16xf32>
    %c3_35 = arith.constant 3 : index
    %c0_36 = arith.constant 0 : index
    %117 = vector.load %arg7[%c3_35, %c0_36] : memref<8x16xf32, #tpu.memory_space<vmem>>, vector<1x16xf32>
    %118 = vector.extract_strided_slice %110 {offsets = [2, 0], sizes = [1, 16], strides = [1, 1]} : vector<32x16xf32> to vector<1x16xf32>
    %119 = vector.extract_strided_slice %110 {offsets = [1, 0], sizes = [1, 16], strides = [1, 1]} : vector<32x16xf32> to vector<1x16xf32>
    %120 = vector.extract_strided_slice %110 {offsets = [30, 0], sizes = [1, 16], strides = [1, 1]} : vector<32x16xf32> to vector<1x16xf32>
    %121 = vector.extract_strided_slice %110 {offsets = [29, 0], sizes = [1, 16], strides = [1, 1]} : vector<32x16xf32> to vector<1x16xf32>
    %122 = tpu.concatenate %118, %119, %110, %120, %121 in 0 : vector<1x16xf32>, vector<1x16xf32>, vector<32x16xf32>, vector<1x16xf32>, vector<1x16xf32> -> vector<36x16xf32>
    %123 = vector.extract_strided_slice %122 {offsets = [0, 0], sizes = [32, 16], strides = [1, 1]} : vector<36x16xf32> to vector<32x16xf32>
    %124 = vector.extract_strided_slice %122 {offsets = [1, 0], sizes = [32, 16], strides = [1, 1]} : vector<36x16xf32> to vector<32x16xf32>
    %125 = vector.extract_strided_slice %122 {offsets = [2, 0], sizes = [32, 16], strides = [1, 1]} : vector<36x16xf32> to vector<32x16xf32>
    %126 = vector.extract_strided_slice %122 {offsets = [3, 0], sizes = [32, 16], strides = [1, 1]} : vector<36x16xf32> to vector<32x16xf32>
    %127 = vector.extract_strided_slice %122 {offsets = [4, 0], sizes = [32, 16], strides = [1, 1]} : vector<36x16xf32> to vector<32x16xf32>
    %128 = tpu.concatenate %123, %124, %125, %126, %127 in 1 : vector<32x16xf32>, vector<32x16xf32>, vector<32x16xf32>, vector<32x16xf32>, vector<32x16xf32> -> vector<32x80xf32>
    %129 = vector.extract_strided_slice %111 {offsets = [2, 0], sizes = [1, 16], strides = [1, 1]} : vector<32x16xf32> to vector<1x16xf32>
    %130 = vector.extract_strided_slice %111 {offsets = [1, 0], sizes = [1, 16], strides = [1, 1]} : vector<32x16xf32> to vector<1x16xf32>
    %131 = vector.extract_strided_slice %111 {offsets = [30, 0], sizes = [1, 16], strides = [1, 1]} : vector<32x16xf32> to vector<1x16xf32>
    %132 = vector.extract_strided_slice %111 {offsets = [29, 0], sizes = [1, 16], strides = [1, 1]} : vector<32x16xf32> to vector<1x16xf32>
    %133 = tpu.concatenate %129, %130, %111, %131, %132 in 0 : vector<1x16xf32>, vector<1x16xf32>, vector<32x16xf32>, vector<1x16xf32>, vector<1x16xf32> -> vector<36x16xf32>
    %134 = vector.extract_strided_slice %133 {offsets = [0, 0], sizes = [32, 16], strides = [1, 1]} : vector<36x16xf32> to vector<32x16xf32>
    %135 = vector.extract_strided_slice %133 {offsets = [1, 0], sizes = [32, 16], strides = [1, 1]} : vector<36x16xf32> to vector<32x16xf32>
    %136 = vector.extract_strided_slice %133 {offsets = [2, 0], sizes = [32, 16], strides = [1, 1]} : vector<36x16xf32> to vector<32x16xf32>
    %137 = vector.extract_strided_slice %133 {offsets = [3, 0], sizes = [32, 16], strides = [1, 1]} : vector<36x16xf32> to vector<32x16xf32>
    %138 = vector.extract_strided_slice %133 {offsets = [4, 0], sizes = [32, 16], strides = [1, 1]} : vector<36x16xf32> to vector<32x16xf32>
    %139 = tpu.concatenate %134, %135, %136, %137, %138 in 1 : vector<32x16xf32>, vector<32x16xf32>, vector<32x16xf32>, vector<32x16xf32>, vector<32x16xf32> -> vector<32x80xf32>
    %140 = tpu.concatenate %128, %139 in 0 : vector<32x80xf32>, vector<32x80xf32> -> vector<64x80xf32>
    %cst_37 = arith.constant dense<0.000000e+00> : vector<64x16xf32>
    %141 = tpu.matmul %140, %113, %cst_37 {dimension_numbers = #tpu.dot_dimension_numbers<[1], [0], [0], [1], [0, 0, 1, 1], [], []>} : vector<64x80xf32>, vector<80x16xf32>, vector<64x16xf32> -> vector<64x16xf32>
    %142 = vector.broadcast %114 : vector<1x16xf32> to vector<64x16xf32>
    %143 = arith.addf %141, %142 : vector<64x16xf32>
    %cst_38 = arith.constant 0.000000e+00 : f32
    %144 = vector.broadcast %cst_38 : f32 to vector<64x16xf32>
    %145 = arith.maximumf %143, %144 : vector<64x16xf32>
    %146 = vector.extract_strided_slice %145 {offsets = [0, 0], sizes = [32, 16], strides = [1, 1]} : vector<64x16xf32> to vector<32x16xf32>
    %147 = vector.extract_strided_slice %145 {offsets = [32, 0], sizes = [32, 16], strides = [1, 1]} : vector<64x16xf32> to vector<32x16xf32>
    %148 = vector.extract_strided_slice %146 {offsets = [2, 0], sizes = [1, 16], strides = [1, 1]} : vector<32x16xf32> to vector<1x16xf32>
    %149 = vector.extract_strided_slice %146 {offsets = [1, 0], sizes = [1, 16], strides = [1, 1]} : vector<32x16xf32> to vector<1x16xf32>
    %150 = vector.extract_strided_slice %146 {offsets = [30, 0], sizes = [1, 16], strides = [1, 1]} : vector<32x16xf32> to vector<1x16xf32>
    %151 = vector.extract_strided_slice %146 {offsets = [29, 0], sizes = [1, 16], strides = [1, 1]} : vector<32x16xf32> to vector<1x16xf32>
    %152 = tpu.concatenate %148, %149, %146, %150, %151 in 0 : vector<1x16xf32>, vector<1x16xf32>, vector<32x16xf32>, vector<1x16xf32>, vector<1x16xf32> -> vector<36x16xf32>
    %c0_39 = arith.constant 0 : index
    %c0_40 = arith.constant 0 : index
    %153 = vector.load %arg13[%c0_39, %c0_40] : memref<40x128xf32, #tpu.memory_space<vmem>>, vector<36x16xf32>
    tpu.vector_store %arg13[%c0_39, %c0_40], %152 {strides = array<i32>} : memref<40x128xf32, #tpu.memory_space<vmem>>, vector<36x16xf32>,
    %c0_41 = arith.constant 0 : index
    %c0_42 = arith.constant 0 : index
    %154 = tpu.strided_load %arg13[%c0_41, %c0_42] {strides = array<i32: 2, 1>} : memref<40x128xf32, #tpu.memory_space<vmem>>, vector<16x16xf32>
    %c1_43 = arith.constant 1 : index
    %c0_44 = arith.constant 0 : index
    %155 = tpu.strided_load %arg13[%c1_43, %c0_44] {strides = array<i32: 2, 1>} : memref<40x128xf32, #tpu.memory_space<vmem>>, vector<16x16xf32>
    %c2_45 = arith.constant 2 : index
    %c0_46 = arith.constant 0 : index
    %156 = tpu.strided_load %arg13[%c2_45, %c0_46] {strides = array<i32: 2, 1>} : memref<40x128xf32, #tpu.memory_space<vmem>>, vector<16x16xf32>
    %c3_47 = arith.constant 3 : index
    %c0_48 = arith.constant 0 : index
    %157 = tpu.strided_load %arg13[%c3_47, %c0_48] {strides = array<i32: 2, 1>} : memref<40x128xf32, #tpu.memory_space<vmem>>, vector<16x16xf32>
    %c4 = arith.constant 4 : index
    %c0_49 = arith.constant 0 : index
    %158 = tpu.strided_load %arg13[%c4, %c0_49] {strides = array<i32: 2, 1>} : memref<40x128xf32, #tpu.memory_space<vmem>>, vector<16x16xf32>
    %159 = tpu.concatenate %154, %155, %156, %157, %158 in 1 : vector<16x16xf32>, vector<16x16xf32>, vector<16x16xf32>, vector<16x16xf32>, vector<16x16xf32> -> vector<16x80xf32>
    %160 = vector.extract_strided_slice %147 {offsets = [2, 0], sizes = [1, 16], strides = [1, 1]} : vector<32x16xf32> to vector<1x16xf32>
    %161 = vector.extract_strided_slice %147 {offsets = [1, 0], sizes = [1, 16], strides = [1, 1]} : vector<32x16xf32> to vector<1x16xf32>
    %162 = vector.extract_strided_slice %147 {offsets = [30, 0], sizes = [1, 16], strides = [1, 1]} : vector<32x16xf32> to vector<1x16xf32>
    %163 = vector.extract_strided_slice %147 {offsets = [29, 0], sizes = [1, 16], strides = [1, 1]} : vector<32x16xf32> to vector<1x16xf32>
    %164 = tpu.concatenate %160, %161, %147, %162, %163 in 0 : vector<1x16xf32>, vector<1x16xf32>, vector<32x16xf32>, vector<1x16xf32>, vector<1x16xf32> -> vector<36x16xf32>
    %c0_50 = arith.constant 0 : index
    %c0_51 = arith.constant 0 : index
    %165 = vector.load %arg13[%c0_50, %c0_51] : memref<40x128xf32, #tpu.memory_space<vmem>>, vector<36x16xf32>
    tpu.vector_store %arg13[%c0_50, %c0_51], %164 {strides = array<i32>} : memref<40x128xf32, #tpu.memory_space<vmem>>, vector<36x16xf32>,
    %c0_52 = arith.constant 0 : index
    %c0_53 = arith.constant 0 : index
    %166 = tpu.strided_load %arg13[%c0_52, %c0_53] {strides = array<i32: 2, 1>} : memref<40x128xf32, #tpu.memory_space<vmem>>, vector<16x16xf32>
    %c1_54 = arith.constant 1 : index
    %c0_55 = arith.constant 0 : index
    %167 = tpu.strided_load %arg13[%c1_54, %c0_55] {strides = array<i32: 2, 1>} : memref<40x128xf32, #tpu.memory_space<vmem>>, vector<16x16xf32>
    %c2_56 = arith.constant 2 : index
    %c0_57 = arith.constant 0 : index
    %168 = tpu.strided_load %arg13[%c2_56, %c0_57] {strides = array<i32: 2, 1>} : memref<40x128xf32, #tpu.memory_space<vmem>>, vector<16x16xf32>
    %c3_58 = arith.constant 3 : index
    %c0_59 = arith.constant 0 : index
    %169 = tpu.strided_load %arg13[%c3_58, %c0_59] {strides = array<i32: 2, 1>} : memref<40x128xf32, #tpu.memory_space<vmem>>, vector<16x16xf32>
    %c4_60 = arith.constant 4 : index
    %c0_61 = arith.constant 0 : index
    %170 = tpu.strided_load %arg13[%c4_60, %c0_61] {strides = array<i32: 2, 1>} : memref<40x128xf32, #tpu.memory_space<vmem>>, vector<16x16xf32>
    %171 = tpu.concatenate %166, %167, %168, %169, %170 in 1 : vector<16x16xf32>, vector<16x16xf32>, vector<16x16xf32>, vector<16x16xf32>, vector<16x16xf32> -> vector<16x80xf32>
    %c0_62 = arith.constant 0 : index
    %c0_63 = arith.constant 0 : index
    %172 = vector.load %arg13[%c0_62, %c0_63] : memref<40x128xf32, #tpu.memory_space<vmem>>, vector<32x16xf32>
    tpu.vector_store %arg13[%c0_62, %c0_63], %110 {strides = array<i32>} : memref<40x128xf32, #tpu.memory_space<vmem>>, vector<32x16xf32>,
    %c0_64 = arith.constant 0 : index
    %c0_65 = arith.constant 0 : index
    %173 = tpu.strided_load %arg13[%c0_64, %c0_65] {strides = array<i32: 2, 1>} : memref<40x128xf32, #tpu.memory_space<vmem>>, vector<16x16xf32>
    %c1_66 = arith.constant 1 : index
    %c0_67 = arith.constant 0 : index
    %174 = tpu.strided_load %arg13[%c1_66, %c0_67] {strides = array<i32: 2, 1>} : memref<40x128xf32, #tpu.memory_space<vmem>>, vector<16x16xf32>
    %175 = arith.addf %173, %174 : vector<16x16xf32>
    %cst_68 = arith.constant 5.000000e-01 : f32
    %176 = vector.broadcast %cst_68 : f32 to vector<16x16xf32>
    %177 = arith.mulf %175, %176 : vector<16x16xf32>
    %c0_69 = arith.constant 0 : index
    %c0_70 = arith.constant 0 : index
    %178 = vector.load %arg13[%c0_69, %c0_70] : memref<40x128xf32, #tpu.memory_space<vmem>>, vector<32x16xf32>
    tpu.vector_store %arg13[%c0_69, %c0_70], %111 {strides = array<i32>} : memref<40x128xf32, #tpu.memory_space<vmem>>, vector<32x16xf32>,
    %c0_71 = arith.constant 0 : index
    %c0_72 = arith.constant 0 : index
    %179 = tpu.strided_load %arg13[%c0_71, %c0_72] {strides = array<i32: 2, 1>} : memref<40x128xf32, #tpu.memory_space<vmem>>, vector<16x16xf32>
    %c1_73 = arith.constant 1 : index
    %c0_74 = arith.constant 0 : index
    %180 = tpu.strided_load %arg13[%c1_73, %c0_74] {strides = array<i32: 2, 1>} : memref<40x128xf32, #tpu.memory_space<vmem>>, vector<16x16xf32>
    %181 = arith.addf %179, %180 : vector<16x16xf32>
    %cst_75 = arith.constant 5.000000e-01 : f32
    %182 = vector.broadcast %cst_75 : f32 to vector<16x16xf32>
    %183 = arith.mulf %181, %182 : vector<16x16xf32>
    %184 = tpu.concatenate %159, %171 in 0 : vector<16x80xf32>, vector<16x80xf32> -> vector<32x80xf32>
    %cst_76 = arith.constant dense<0.000000e+00> : vector<32x16xf32>
    %185 = tpu.matmul %184, %116, %cst_76 {dimension_numbers = #tpu.dot_dimension_numbers<[1], [0], [0], [1], [0, 0, 1, 1], [], []>} : vector<32x80xf32>, vector<80x16xf32>, vector<32x16xf32> -> vector<32x16xf32>
    %186 = vector.broadcast %117 : vector<1x16xf32> to vector<32x16xf32>
    %187 = arith.addf %185, %186 : vector<32x16xf32>
    %cst_77 = arith.constant 0.000000e+00 : f32
    %188 = vector.broadcast %cst_77 : f32 to vector<32x16xf32>
    %189 = arith.maximumf %187, %188 : vector<32x16xf32>
    %190 = vector.extract_strided_slice %189 {offsets = [0, 0], sizes = [16, 16], strides = [1, 1]} : vector<32x16xf32> to vector<16x16xf32>
    %191 = vector.extract_strided_slice %189 {offsets = [16, 0], sizes = [16, 16], strides = [1, 1]} : vector<32x16xf32> to vector<16x16xf32>
    %192 = arith.addf %190, %177 : vector<16x16xf32>
    %193 = arith.addf %191, %183 : vector<16x16xf32>
    %c4_78 = arith.constant 4 : index
    %c0_79 = arith.constant 0 : index
    %c0_80 = arith.constant 0 : index
    %194 = vector.load %arg6[%c4_78, %c0_79, %c0_80] : memref<8x80x16xf32, #tpu.memory_space<vmem>>, vector<1x80x16xf32>
    %195 = vector.shape_cast %194 : vector<1x80x16xf32> to vector<80x16xf32>
    %c4_81 = arith.constant 4 : index
    %c0_82 = arith.constant 0 : index
    %196 = vector.load %arg7[%c4_81, %c0_82] : memref<8x16xf32, #tpu.memory_space<vmem>>, vector<1x16xf32>
    %c5 = arith.constant 5 : index
    %c0_83 = arith.constant 0 : index
    %c0_84 = arith.constant 0 : index
    %197 = vector.load %arg6[%c5, %c0_83, %c0_84] : memref<8x80x16xf32, #tpu.memory_space<vmem>>, vector<1x80x16xf32>
    %198 = vector.shape_cast %197 : vector<1x80x16xf32> to vector<80x16xf32>
    %c5_85 = arith.constant 5 : index
    %c0_86 = arith.constant 0 : index
    %199 = vector.load %arg7[%c5_85, %c0_86] : memref<8x16xf32, #tpu.memory_space<vmem>>, vector<1x16xf32>
    %200 = vector.extract_strided_slice %192 {offsets = [2, 0], sizes = [1, 16], strides = [1, 1]} : vector<16x16xf32> to vector<1x16xf32>
    %201 = vector.extract_strided_slice %192 {offsets = [1, 0], sizes = [1, 16], strides = [1, 1]} : vector<16x16xf32> to vector<1x16xf32>
    %202 = vector.extract_strided_slice %192 {offsets = [14, 0], sizes = [1, 16], strides = [1, 1]} : vector<16x16xf32> to vector<1x16xf32>
    %203 = vector.extract_strided_slice %192 {offsets = [13, 0], sizes = [1, 16], strides = [1, 1]} : vector<16x16xf32> to vector<1x16xf32>
    %204 = tpu.concatenate %200, %201, %192, %202, %203 in 0 : vector<1x16xf32>, vector<1x16xf32>, vector<16x16xf32>, vector<1x16xf32>, vector<1x16xf32> -> vector<20x16xf32>
    %205 = vector.extract_strided_slice %204 {offsets = [0, 0], sizes = [16, 16], strides = [1, 1]} : vector<20x16xf32> to vector<16x16xf32>
    %206 = vector.extract_strided_slice %204 {offsets = [1, 0], sizes = [16, 16], strides = [1, 1]} : vector<20x16xf32> to vector<16x16xf32>
    %207 = vector.extract_strided_slice %204 {offsets = [2, 0], sizes = [16, 16], strides = [1, 1]} : vector<20x16xf32> to vector<16x16xf32>
    %208 = vector.extract_strided_slice %204 {offsets = [3, 0], sizes = [16, 16], strides = [1, 1]} : vector<20x16xf32> to vector<16x16xf32>
    %209 = vector.extract_strided_slice %204 {offsets = [4, 0], sizes = [16, 16], strides = [1, 1]} : vector<20x16xf32> to vector<16x16xf32>
    %210 = tpu.concatenate %205, %206, %207, %208, %209 in 1 : vector<16x16xf32>, vector<16x16xf32>, vector<16x16xf32>, vector<16x16xf32>, vector<16x16xf32> -> vector<16x80xf32>
    %211 = vector.extract_strided_slice %193 {offsets = [2, 0], sizes = [1, 16], strides = [1, 1]} : vector<16x16xf32> to vector<1x16xf32>
    %212 = vector.extract_strided_slice %193 {offsets = [1, 0], sizes = [1, 16], strides = [1, 1]} : vector<16x16xf32> to vector<1x16xf32>
    %213 = vector.extract_strided_slice %193 {offsets = [14, 0], sizes = [1, 16], strides = [1, 1]} : vector<16x16xf32> to vector<1x16xf32>
    %214 = vector.extract_strided_slice %193 {offsets = [13, 0], sizes = [1, 16], strides = [1, 1]} : vector<16x16xf32> to vector<1x16xf32>
    %215 = tpu.concatenate %211, %212, %193, %213, %214 in 0 : vector<1x16xf32>, vector<1x16xf32>, vector<16x16xf32>, vector<1x16xf32>, vector<1x16xf32> -> vector<20x16xf32>
    %216 = vector.extract_strided_slice %215 {offsets = [0, 0], sizes = [16, 16], strides = [1, 1]} : vector<20x16xf32> to vector<16x16xf32>
    %217 = vector.extract_strided_slice %215 {offsets = [1, 0], sizes = [16, 16], strides = [1, 1]} : vector<20x16xf32> to vector<16x16xf32>
    %218 = vector.extract_strided_slice %215 {offsets = [2, 0], sizes = [16, 16], strides = [1, 1]} : vector<20x16xf32> to vector<16x16xf32>
    %219 = vector.extract_strided_slice %215 {offsets = [3, 0], sizes = [16, 16], strides = [1, 1]} : vector<20x16xf32> to vector<16x16xf32>
    %220 = vector.extract_strided_slice %215 {offsets = [4, 0], sizes = [16, 16], strides = [1, 1]} : vector<20x16xf32> to vector<16x16xf32>
    %221 = tpu.concatenate %216, %217, %218, %219, %220 in 1 : vector<16x16xf32>, vector<16x16xf32>, vector<16x16xf32>, vector<16x16xf32>, vector<16x16xf32> -> vector<16x80xf32>
    %222 = tpu.concatenate %210, %221 in 0 : vector<16x80xf32>, vector<16x80xf32> -> vector<32x80xf32>
    %cst_87 = arith.constant dense<0.000000e+00> : vector<32x16xf32>
    %223 = tpu.matmul %222, %195, %cst_87 {dimension_numbers = #tpu.dot_dimension_numbers<[1], [0], [0], [1], [0, 0, 1, 1], [], []>} : vector<32x80xf32>, vector<80x16xf32>, vector<32x16xf32> -> vector<32x16xf32>
    %224 = vector.broadcast %196 : vector<1x16xf32> to vector<32x16xf32>
    %225 = arith.addf %223, %224 : vector<32x16xf32>
    %cst_88 = arith.constant 0.000000e+00 : f32
    %226 = vector.broadcast %cst_88 : f32 to vector<32x16xf32>
    %227 = arith.maximumf %225, %226 : vector<32x16xf32>
    %228 = vector.extract_strided_slice %227 {offsets = [0, 0], sizes = [16, 16], strides = [1, 1]} : vector<32x16xf32> to vector<16x16xf32>
    %229 = vector.extract_strided_slice %227 {offsets = [16, 0], sizes = [16, 16], strides = [1, 1]} : vector<32x16xf32> to vector<16x16xf32>
    %230 = vector.extract_strided_slice %228 {offsets = [2, 0], sizes = [1, 16], strides = [1, 1]} : vector<16x16xf32> to vector<1x16xf32>
    %231 = vector.extract_strided_slice %228 {offsets = [1, 0], sizes = [1, 16], strides = [1, 1]} : vector<16x16xf32> to vector<1x16xf32>
    %232 = vector.extract_strided_slice %228 {offsets = [14, 0], sizes = [1, 16], strides = [1, 1]} : vector<16x16xf32> to vector<1x16xf32>
    %233 = vector.extract_strided_slice %228 {offsets = [13, 0], sizes = [1, 16], strides = [1, 1]} : vector<16x16xf32> to vector<1x16xf32>
    %234 = tpu.concatenate %230, %231, %228, %232, %233 in 0 : vector<1x16xf32>, vector<1x16xf32>, vector<16x16xf32>, vector<1x16xf32>, vector<1x16xf32> -> vector<20x16xf32>
    %c0_89 = arith.constant 0 : index
    %c0_90 = arith.constant 0 : index
    %235 = vector.load %arg13[%c0_89, %c0_90] : memref<40x128xf32, #tpu.memory_space<vmem>>, vector<20x16xf32>
    tpu.vector_store %arg13[%c0_89, %c0_90], %234 {strides = array<i32>} : memref<40x128xf32, #tpu.memory_space<vmem>>, vector<20x16xf32>,
    %c0_91 = arith.constant 0 : index
    %c0_92 = arith.constant 0 : index
    %236 = tpu.strided_load %arg13[%c0_91, %c0_92] {strides = array<i32: 2, 1>} : memref<40x128xf32, #tpu.memory_space<vmem>>, vector<8x16xf32>
    %c1_93 = arith.constant 1 : index
    %c0_94 = arith.constant 0 : index
    %237 = tpu.strided_load %arg13[%c1_93, %c0_94] {strides = array<i32: 2, 1>} : memref<40x128xf32, #tpu.memory_space<vmem>>, vector<8x16xf32>
    %c2_95 = arith.constant 2 : index
    %c0_96 = arith.constant 0 : index
    %238 = tpu.strided_load %arg13[%c2_95, %c0_96] {strides = array<i32: 2, 1>} : memref<40x128xf32, #tpu.memory_space<vmem>>, vector<8x16xf32>
    %c3_97 = arith.constant 3 : index
    %c0_98 = arith.constant 0 : index
    %239 = tpu.strided_load %arg13[%c3_97, %c0_98] {strides = array<i32: 2, 1>} : memref<40x128xf32, #tpu.memory_space<vmem>>, vector<8x16xf32>
    %c4_99 = arith.constant 4 : index
    %c0_100 = arith.constant 0 : index
    %240 = tpu.strided_load %arg13[%c4_99, %c0_100] {strides = array<i32: 2, 1>} : memref<40x128xf32, #tpu.memory_space<vmem>>, vector<8x16xf32>
    %241 = tpu.concatenate %236, %237, %238, %239, %240 in 1 : vector<8x16xf32>, vector<8x16xf32>, vector<8x16xf32>, vector<8x16xf32>, vector<8x16xf32> -> vector<8x80xf32>
    %242 = vector.extract_strided_slice %229 {offsets = [2, 0], sizes = [1, 16], strides = [1, 1]} : vector<16x16xf32> to vector<1x16xf32>
    %243 = vector.extract_strided_slice %229 {offsets = [1, 0], sizes = [1, 16], strides = [1, 1]} : vector<16x16xf32> to vector<1x16xf32>
    %244 = vector.extract_strided_slice %229 {offsets = [14, 0], sizes = [1, 16], strides = [1, 1]} : vector<16x16xf32> to vector<1x16xf32>
    %245 = vector.extract_strided_slice %229 {offsets = [13, 0], sizes = [1, 16], strides = [1, 1]} : vector<16x16xf32> to vector<1x16xf32>
    %246 = tpu.concatenate %242, %243, %229, %244, %245 in 0 : vector<1x16xf32>, vector<1x16xf32>, vector<16x16xf32>, vector<1x16xf32>, vector<1x16xf32> -> vector<20x16xf32>
    %c0_101 = arith.constant 0 : index
    %c0_102 = arith.constant 0 : index
    %247 = vector.load %arg13[%c0_101, %c0_102] : memref<40x128xf32, #tpu.memory_space<vmem>>, vector<20x16xf32>
    tpu.vector_store %arg13[%c0_101, %c0_102], %246 {strides = array<i32>} : memref<40x128xf32, #tpu.memory_space<vmem>>, vector<20x16xf32>,
    %c0_103 = arith.constant 0 : index
    %c0_104 = arith.constant 0 : index
    %248 = tpu.strided_load %arg13[%c0_103, %c0_104] {strides = array<i32: 2, 1>} : memref<40x128xf32, #tpu.memory_space<vmem>>, vector<8x16xf32>
    %c1_105 = arith.constant 1 : index
    %c0_106 = arith.constant 0 : index
    %249 = tpu.strided_load %arg13[%c1_105, %c0_106] {strides = array<i32: 2, 1>} : memref<40x128xf32, #tpu.memory_space<vmem>>, vector<8x16xf32>
    %c2_107 = arith.constant 2 : index
    %c0_108 = arith.constant 0 : index
    %250 = tpu.strided_load %arg13[%c2_107, %c0_108] {strides = array<i32: 2, 1>} : memref<40x128xf32, #tpu.memory_space<vmem>>, vector<8x16xf32>
    %c3_109 = arith.constant 3 : index
    %c0_110 = arith.constant 0 : index
    %251 = tpu.strided_load %arg13[%c3_109, %c0_110] {strides = array<i32: 2, 1>} : memref<40x128xf32, #tpu.memory_space<vmem>>, vector<8x16xf32>
    %c4_111 = arith.constant 4 : index
    %c0_112 = arith.constant 0 : index
    %252 = tpu.strided_load %arg13[%c4_111, %c0_112] {strides = array<i32: 2, 1>} : memref<40x128xf32, #tpu.memory_space<vmem>>, vector<8x16xf32>
    %253 = tpu.concatenate %248, %249, %250, %251, %252 in 1 : vector<8x16xf32>, vector<8x16xf32>, vector<8x16xf32>, vector<8x16xf32>, vector<8x16xf32> -> vector<8x80xf32>
    %c0_113 = arith.constant 0 : index
    %c0_114 = arith.constant 0 : index
    %254 = vector.load %arg13[%c0_113, %c0_114] : memref<40x128xf32, #tpu.memory_space<vmem>>, vector<16x16xf32>
    tpu.vector_store %arg13[%c0_113, %c0_114], %192 {strides = array<i32>} : memref<40x128xf32, #tpu.memory_space<vmem>>, vector<16x16xf32>,
    %c0_115 = arith.constant 0 : index
    %c0_116 = arith.constant 0 : index
    %255 = tpu.strided_load %arg13[%c0_115, %c0_116] {strides = array<i32: 2, 1>} : memref<40x128xf32, #tpu.memory_space<vmem>>, vector<8x16xf32>
    %c1_117 = arith.constant 1 : index
    %c0_118 = arith.constant 0 : index
    %256 = tpu.strided_load %arg13[%c1_117, %c0_118] {strides = array<i32: 2, 1>} : memref<40x128xf32, #tpu.memory_space<vmem>>, vector<8x16xf32>
    %257 = arith.addf %255, %256 : vector<8x16xf32>
    %cst_119 = arith.constant 5.000000e-01 : f32
    %258 = vector.broadcast %cst_119 : f32 to vector<8x16xf32>
    %259 = arith.mulf %257, %258 : vector<8x16xf32>
    %c0_120 = arith.constant 0 : index
    %c0_121 = arith.constant 0 : index
    %260 = vector.load %arg13[%c0_120, %c0_121] : memref<40x128xf32, #tpu.memory_space<vmem>>, vector<16x16xf32>
    tpu.vector_store %arg13[%c0_120, %c0_121], %193 {strides = array<i32>} : memref<40x128xf32, #tpu.memory_space<vmem>>, vector<16x16xf32>,
    %c0_122 = arith.constant 0 : index
    %c0_123 = arith.constant 0 : index
    %261 = tpu.strided_load %arg13[%c0_122, %c0_123] {strides = array<i32: 2, 1>} : memref<40x128xf32, #tpu.memory_space<vmem>>, vector<8x16xf32>
    %c1_124 = arith.constant 1 : index
    %c0_125 = arith.constant 0 : index
    %262 = tpu.strided_load %arg13[%c1_124, %c0_125] {strides = array<i32: 2, 1>} : memref<40x128xf32, #tpu.memory_space<vmem>>, vector<8x16xf32>
    %263 = arith.addf %261, %262 : vector<8x16xf32>
    %cst_126 = arith.constant 5.000000e-01 : f32
    %264 = vector.broadcast %cst_126 : f32 to vector<8x16xf32>
    %265 = arith.mulf %263, %264 : vector<8x16xf32>
    %266 = tpu.concatenate %241, %253 in 0 : vector<8x80xf32>, vector<8x80xf32> -> vector<16x80xf32>
    %cst_127 = arith.constant dense<0.000000e+00> : vector<16x16xf32>
    %267 = tpu.matmul %266, %198, %cst_127 {dimension_numbers = #tpu.dot_dimension_numbers<[1], [0], [0], [1], [0, 0, 1, 1], [], []>} : vector<16x80xf32>, vector<80x16xf32>, vector<16x16xf32> -> vector<16x16xf32>
    %268 = vector.broadcast %199 : vector<1x16xf32> to vector<16x16xf32>
    %269 = arith.addf %267, %268 : vector<16x16xf32>
    %cst_128 = arith.constant 0.000000e+00 : f32
    %270 = vector.broadcast %cst_128 : f32 to vector<16x16xf32>
    %271 = arith.maximumf %269, %270 : vector<16x16xf32>
    %272 = vector.extract_strided_slice %271 {offsets = [0, 0], sizes = [8, 16], strides = [1, 1]} : vector<16x16xf32> to vector<8x16xf32>
    %273 = vector.extract_strided_slice %271 {offsets = [8, 0], sizes = [8, 16], strides = [1, 1]} : vector<16x16xf32> to vector<8x16xf32>
    %274 = arith.addf %272, %259 : vector<8x16xf32>
    %275 = arith.addf %273, %265 : vector<8x16xf32>
    %c6 = arith.constant 6 : index
    %c0_129 = arith.constant 0 : index
    %c0_130 = arith.constant 0 : index
    %276 = vector.load %arg6[%c6, %c0_129, %c0_130] : memref<8x80x16xf32, #tpu.memory_space<vmem>>, vector<1x80x16xf32>
    %277 = vector.shape_cast %276 : vector<1x80x16xf32> to vector<80x16xf32>
    %c6_131 = arith.constant 6 : index
    %c0_132 = arith.constant 0 : index
    %278 = vector.load %arg7[%c6_131, %c0_132] : memref<8x16xf32, #tpu.memory_space<vmem>>, vector<1x16xf32>
    %c7 = arith.constant 7 : index
    %c0_133 = arith.constant 0 : index
    %c0_134 = arith.constant 0 : index
    %279 = vector.load %arg6[%c7, %c0_133, %c0_134] : memref<8x80x16xf32, #tpu.memory_space<vmem>>, vector<1x80x16xf32>
    %280 = vector.shape_cast %279 : vector<1x80x16xf32> to vector<80x16xf32>
    %c7_135 = arith.constant 7 : index
    %c0_136 = arith.constant 0 : index
    %281 = vector.load %arg7[%c7_135, %c0_136] : memref<8x16xf32, #tpu.memory_space<vmem>>, vector<1x16xf32>
    %282 = vector.extract_strided_slice %274 {offsets = [2, 0], sizes = [1, 16], strides = [1, 1]} : vector<8x16xf32> to vector<1x16xf32>
    %283 = vector.extract_strided_slice %274 {offsets = [1, 0], sizes = [1, 16], strides = [1, 1]} : vector<8x16xf32> to vector<1x16xf32>
    %284 = vector.extract_strided_slice %274 {offsets = [6, 0], sizes = [1, 16], strides = [1, 1]} : vector<8x16xf32> to vector<1x16xf32>
    %285 = vector.extract_strided_slice %274 {offsets = [5, 0], sizes = [1, 16], strides = [1, 1]} : vector<8x16xf32> to vector<1x16xf32>
    %286 = tpu.concatenate %282, %283, %274, %284, %285 in 0 : vector<1x16xf32>, vector<1x16xf32>, vector<8x16xf32>, vector<1x16xf32>, vector<1x16xf32> -> vector<12x16xf32>
    %287 = vector.extract_strided_slice %286 {offsets = [0, 0], sizes = [8, 16], strides = [1, 1]} : vector<12x16xf32> to vector<8x16xf32>
    %288 = vector.extract_strided_slice %286 {offsets = [1, 0], sizes = [8, 16], strides = [1, 1]} : vector<12x16xf32> to vector<8x16xf32>
    %289 = vector.extract_strided_slice %286 {offsets = [2, 0], sizes = [8, 16], strides = [1, 1]} : vector<12x16xf32> to vector<8x16xf32>
    %290 = vector.extract_strided_slice %286 {offsets = [3, 0], sizes = [8, 16], strides = [1, 1]} : vector<12x16xf32> to vector<8x16xf32>
    %291 = vector.extract_strided_slice %286 {offsets = [4, 0], sizes = [8, 16], strides = [1, 1]} : vector<12x16xf32> to vector<8x16xf32>
    %292 = tpu.concatenate %287, %288, %289, %290, %291 in 1 : vector<8x16xf32>, vector<8x16xf32>, vector<8x16xf32>, vector<8x16xf32>, vector<8x16xf32> -> vector<8x80xf32>
    %293 = vector.extract_strided_slice %275 {offsets = [2, 0], sizes = [1, 16], strides = [1, 1]} : vector<8x16xf32> to vector<1x16xf32>
    %294 = vector.extract_strided_slice %275 {offsets = [1, 0], sizes = [1, 16], strides = [1, 1]} : vector<8x16xf32> to vector<1x16xf32>
    %295 = vector.extract_strided_slice %275 {offsets = [6, 0], sizes = [1, 16], strides = [1, 1]} : vector<8x16xf32> to vector<1x16xf32>
    %296 = vector.extract_strided_slice %275 {offsets = [5, 0], sizes = [1, 16], strides = [1, 1]} : vector<8x16xf32> to vector<1x16xf32>
    %297 = tpu.concatenate %293, %294, %275, %295, %296 in 0 : vector<1x16xf32>, vector<1x16xf32>, vector<8x16xf32>, vector<1x16xf32>, vector<1x16xf32> -> vector<12x16xf32>
    %298 = vector.extract_strided_slice %297 {offsets = [0, 0], sizes = [8, 16], strides = [1, 1]} : vector<12x16xf32> to vector<8x16xf32>
    %299 = vector.extract_strided_slice %297 {offsets = [1, 0], sizes = [8, 16], strides = [1, 1]} : vector<12x16xf32> to vector<8x16xf32>
    %300 = vector.extract_strided_slice %297 {offsets = [2, 0], sizes = [8, 16], strides = [1, 1]} : vector<12x16xf32> to vector<8x16xf32>
    %301 = vector.extract_strided_slice %297 {offsets = [3, 0], sizes = [8, 16], strides = [1, 1]} : vector<12x16xf32> to vector<8x16xf32>
    %302 = vector.extract_strided_slice %297 {offsets = [4, 0], sizes = [8, 16], strides = [1, 1]} : vector<12x16xf32> to vector<8x16xf32>
    %303 = tpu.concatenate %298, %299, %300, %301, %302 in 1 : vector<8x16xf32>, vector<8x16xf32>, vector<8x16xf32>, vector<8x16xf32>, vector<8x16xf32> -> vector<8x80xf32>
    %304 = tpu.concatenate %292, %303 in 0 : vector<8x80xf32>, vector<8x80xf32> -> vector<16x80xf32>
    %cst_137 = arith.constant dense<0.000000e+00> : vector<16x16xf32>
    %305 = tpu.matmul %304, %277, %cst_137 {dimension_numbers = #tpu.dot_dimension_numbers<[1], [0], [0], [1], [0, 0, 1, 1], [], []>} : vector<16x80xf32>, vector<80x16xf32>, vector<16x16xf32> -> vector<16x16xf32>
    %306 = vector.broadcast %278 : vector<1x16xf32> to vector<16x16xf32>
    %307 = arith.addf %305, %306 : vector<16x16xf32>
    %cst_138 = arith.constant 0.000000e+00 : f32
    %308 = vector.broadcast %cst_138 : f32 to vector<16x16xf32>
    %309 = arith.maximumf %307, %308 : vector<16x16xf32>
    %310 = vector.extract_strided_slice %309 {offsets = [0, 0], sizes = [8, 16], strides = [1, 1]} : vector<16x16xf32> to vector<8x16xf32>
    %311 = vector.extract_strided_slice %309 {offsets = [8, 0], sizes = [8, 16], strides = [1, 1]} : vector<16x16xf32> to vector<8x16xf32>
    %312 = vector.extract_strided_slice %310 {offsets = [2, 0], sizes = [1, 16], strides = [1, 1]} : vector<8x16xf32> to vector<1x16xf32>
    %313 = vector.extract_strided_slice %310 {offsets = [1, 0], sizes = [1, 16], strides = [1, 1]} : vector<8x16xf32> to vector<1x16xf32>
    %314 = vector.extract_strided_slice %310 {offsets = [6, 0], sizes = [1, 16], strides = [1, 1]} : vector<8x16xf32> to vector<1x16xf32>
    %315 = vector.extract_strided_slice %310 {offsets = [5, 0], sizes = [1, 16], strides = [1, 1]} : vector<8x16xf32> to vector<1x16xf32>
    %316 = tpu.concatenate %312, %313, %310, %314, %315 in 0 : vector<1x16xf32>, vector<1x16xf32>, vector<8x16xf32>, vector<1x16xf32>, vector<1x16xf32> -> vector<12x16xf32>
    %c0_139 = arith.constant 0 : index
    %c0_140 = arith.constant 0 : index
    %317 = vector.load %arg13[%c0_139, %c0_140] : memref<40x128xf32, #tpu.memory_space<vmem>>, vector<12x16xf32>
    tpu.vector_store %arg13[%c0_139, %c0_140], %316 {strides = array<i32>} : memref<40x128xf32, #tpu.memory_space<vmem>>, vector<12x16xf32>,
    %c0_141 = arith.constant 0 : index
    %c0_142 = arith.constant 0 : index
    %318 = tpu.strided_load %arg13[%c0_141, %c0_142] {strides = array<i32: 2, 1>} : memref<40x128xf32, #tpu.memory_space<vmem>>, vector<4x16xf32>
    %c1_143 = arith.constant 1 : index
    %c0_144 = arith.constant 0 : index
    %319 = tpu.strided_load %arg13[%c1_143, %c0_144] {strides = array<i32: 2, 1>} : memref<40x128xf32, #tpu.memory_space<vmem>>, vector<4x16xf32>
    %c2_145 = arith.constant 2 : index
    %c0_146 = arith.constant 0 : index
    %320 = tpu.strided_load %arg13[%c2_145, %c0_146] {strides = array<i32: 2, 1>} : memref<40x128xf32, #tpu.memory_space<vmem>>, vector<4x16xf32>
    %c3_147 = arith.constant 3 : index
    %c0_148 = arith.constant 0 : index
    %321 = tpu.strided_load %arg13[%c3_147, %c0_148] {strides = array<i32: 2, 1>} : memref<40x128xf32, #tpu.memory_space<vmem>>, vector<4x16xf32>
    %c4_149 = arith.constant 4 : index
    %c0_150 = arith.constant 0 : index
    %322 = tpu.strided_load %arg13[%c4_149, %c0_150] {strides = array<i32: 2, 1>} : memref<40x128xf32, #tpu.memory_space<vmem>>, vector<4x16xf32>
    %323 = tpu.concatenate %318, %319, %320, %321, %322 in 1 : vector<4x16xf32>, vector<4x16xf32>, vector<4x16xf32>, vector<4x16xf32>, vector<4x16xf32> -> vector<4x80xf32>
    %324 = vector.extract_strided_slice %311 {offsets = [2, 0], sizes = [1, 16], strides = [1, 1]} : vector<8x16xf32> to vector<1x16xf32>
    %325 = vector.extract_strided_slice %311 {offsets = [1, 0], sizes = [1, 16], strides = [1, 1]} : vector<8x16xf32> to vector<1x16xf32>
    %326 = vector.extract_strided_slice %311 {offsets = [6, 0], sizes = [1, 16], strides = [1, 1]} : vector<8x16xf32> to vector<1x16xf32>
    %327 = vector.extract_strided_slice %311 {offsets = [5, 0], sizes = [1, 16], strides = [1, 1]} : vector<8x16xf32> to vector<1x16xf32>
    %328 = tpu.concatenate %324, %325, %311, %326, %327 in 0 : vector<1x16xf32>, vector<1x16xf32>, vector<8x16xf32>, vector<1x16xf32>, vector<1x16xf32> -> vector<12x16xf32>
    %c0_151 = arith.constant 0 : index
    %c0_152 = arith.constant 0 : index
    %329 = vector.load %arg13[%c0_151, %c0_152] : memref<40x128xf32, #tpu.memory_space<vmem>>, vector<12x16xf32>
    tpu.vector_store %arg13[%c0_151, %c0_152], %328 {strides = array<i32>} : memref<40x128xf32, #tpu.memory_space<vmem>>, vector<12x16xf32>,
    %c0_153 = arith.constant 0 : index
    %c0_154 = arith.constant 0 : index
    %330 = tpu.strided_load %arg13[%c0_153, %c0_154] {strides = array<i32: 2, 1>} : memref<40x128xf32, #tpu.memory_space<vmem>>, vector<4x16xf32>
    %c1_155 = arith.constant 1 : index
    %c0_156 = arith.constant 0 : index
    %331 = tpu.strided_load %arg13[%c1_155, %c0_156] {strides = array<i32: 2, 1>} : memref<40x128xf32, #tpu.memory_space<vmem>>, vector<4x16xf32>
    %c2_157 = arith.constant 2 : index
    %c0_158 = arith.constant 0 : index
    %332 = tpu.strided_load %arg13[%c2_157, %c0_158] {strides = array<i32: 2, 1>} : memref<40x128xf32, #tpu.memory_space<vmem>>, vector<4x16xf32>
    %c3_159 = arith.constant 3 : index
    %c0_160 = arith.constant 0 : index
    %333 = tpu.strided_load %arg13[%c3_159, %c0_160] {strides = array<i32: 2, 1>} : memref<40x128xf32, #tpu.memory_space<vmem>>, vector<4x16xf32>
    %c4_161 = arith.constant 4 : index
    %c0_162 = arith.constant 0 : index
    %334 = tpu.strided_load %arg13[%c4_161, %c0_162] {strides = array<i32: 2, 1>} : memref<40x128xf32, #tpu.memory_space<vmem>>, vector<4x16xf32>
    %335 = tpu.concatenate %330, %331, %332, %333, %334 in 1 : vector<4x16xf32>, vector<4x16xf32>, vector<4x16xf32>, vector<4x16xf32>, vector<4x16xf32> -> vector<4x80xf32>
    %c0_163 = arith.constant 0 : index
    %c0_164 = arith.constant 0 : index
    %336 = vector.load %arg13[%c0_163, %c0_164] : memref<40x128xf32, #tpu.memory_space<vmem>>, vector<8x16xf32>
    tpu.vector_store %arg13[%c0_163, %c0_164], %274 {strides = array<i32>} : memref<40x128xf32, #tpu.memory_space<vmem>>, vector<8x16xf32>,
    %c0_165 = arith.constant 0 : index
    %c0_166 = arith.constant 0 : index
    %337 = tpu.strided_load %arg13[%c0_165, %c0_166] {strides = array<i32: 2, 1>} : memref<40x128xf32, #tpu.memory_space<vmem>>, vector<4x16xf32>
    %c1_167 = arith.constant 1 : index
    %c0_168 = arith.constant 0 : index
    %338 = tpu.strided_load %arg13[%c1_167, %c0_168] {strides = array<i32: 2, 1>} : memref<40x128xf32, #tpu.memory_space<vmem>>, vector<4x16xf32>
    %339 = arith.addf %337, %338 : vector<4x16xf32>
    %cst_169 = arith.constant 5.000000e-01 : f32
    %340 = vector.broadcast %cst_169 : f32 to vector<4x16xf32>
    %341 = arith.mulf %339, %340 : vector<4x16xf32>
    %c0_170 = arith.constant 0 : index
    %c0_171 = arith.constant 0 : index
    %342 = vector.load %arg13[%c0_170, %c0_171] : memref<40x128xf32, #tpu.memory_space<vmem>>, vector<8x16xf32>
    tpu.vector_store %arg13[%c0_170, %c0_171], %275 {strides = array<i32>} : memref<40x128xf32, #tpu.memory_space<vmem>>, vector<8x16xf32>,
    %c0_172 = arith.constant 0 : index
    %c0_173 = arith.constant 0 : index
    %343 = tpu.strided_load %arg13[%c0_172, %c0_173] {strides = array<i32: 2, 1>} : memref<40x128xf32, #tpu.memory_space<vmem>>, vector<4x16xf32>
    %c1_174 = arith.constant 1 : index
    %c0_175 = arith.constant 0 : index
    %344 = tpu.strided_load %arg13[%c1_174, %c0_175] {strides = array<i32: 2, 1>} : memref<40x128xf32, #tpu.memory_space<vmem>>, vector<4x16xf32>
    %345 = arith.addf %343, %344 : vector<4x16xf32>
    %cst_176 = arith.constant 5.000000e-01 : f32
    %346 = vector.broadcast %cst_176 : f32 to vector<4x16xf32>
    %347 = arith.mulf %345, %346 : vector<4x16xf32>
    %348 = tpu.concatenate %323, %335 in 0 : vector<4x80xf32>, vector<4x80xf32> -> vector<8x80xf32>
    %cst_177 = arith.constant dense<0.000000e+00> : vector<8x16xf32>
    %349 = tpu.matmul %348, %280, %cst_177 {dimension_numbers = #tpu.dot_dimension_numbers<[1], [0], [0], [1], [0, 0, 1, 1], [], []>} : vector<8x80xf32>, vector<80x16xf32>, vector<8x16xf32> -> vector<8x16xf32>
    %350 = vector.broadcast %281 : vector<1x16xf32> to vector<8x16xf32>
    %351 = arith.addf %349, %350 : vector<8x16xf32>
    %cst_178 = arith.constant 0.000000e+00 : f32
    %352 = vector.broadcast %cst_178 : f32 to vector<8x16xf32>
    %353 = arith.maximumf %351, %352 : vector<8x16xf32>
    %354 = vector.extract_strided_slice %353 {offsets = [0, 0], sizes = [4, 16], strides = [1, 1]} : vector<8x16xf32> to vector<4x16xf32>
    %355 = vector.extract_strided_slice %353 {offsets = [4, 0], sizes = [4, 16], strides = [1, 1]} : vector<8x16xf32> to vector<4x16xf32>
    %356 = arith.addf %354, %341 : vector<4x16xf32>
    %357 = arith.addf %355, %347 : vector<4x16xf32>
    %c0_179 = arith.constant 0 : index
    %c0_180 = arith.constant 0 : index
    %c0_181 = arith.constant 0 : index
    %358 = vector.load %arg8[%c0_179, %c0_180, %c0_181] : memref<3x48x16xf32, #tpu.memory_space<vmem>>, vector<1x48x16xf32>
    %359 = vector.shape_cast %358 : vector<1x48x16xf32> to vector<48x16xf32>
    %c0_182 = arith.constant 0 : index
    %c0_183 = arith.constant 0 : index
    %360 = vector.load %arg9[%c0_182, %c0_183] : memref<3x16xf32, #tpu.memory_space<vmem>>, vector<1x16xf32>
    %361 = vector.extract_strided_slice %356 {offsets = [1, 0], sizes = [1, 16], strides = [1, 1]} : vector<4x16xf32> to vector<1x16xf32>
    %362 = vector.extract_strided_slice %356 {offsets = [2, 0], sizes = [1, 16], strides = [1, 1]} : vector<4x16xf32> to vector<1x16xf32>
    %363 = tpu.concatenate %361, %356, %362 in 0 : vector<1x16xf32>, vector<4x16xf32>, vector<1x16xf32> -> vector<6x16xf32>
    %364 = vector.extract_strided_slice %363 {offsets = [0, 0], sizes = [4, 16], strides = [1, 1]} : vector<6x16xf32> to vector<4x16xf32>
    %365 = vector.extract_strided_slice %363 {offsets = [1, 0], sizes = [4, 16], strides = [1, 1]} : vector<6x16xf32> to vector<4x16xf32>
    %366 = vector.extract_strided_slice %363 {offsets = [2, 0], sizes = [4, 16], strides = [1, 1]} : vector<6x16xf32> to vector<4x16xf32>
    %367 = tpu.concatenate %364, %365, %366 in 1 : vector<4x16xf32>, vector<4x16xf32>, vector<4x16xf32> -> vector<4x48xf32>
    %368 = vector.extract_strided_slice %357 {offsets = [1, 0], sizes = [1, 16], strides = [1, 1]} : vector<4x16xf32> to vector<1x16xf32>
    %369 = vector.extract_strided_slice %357 {offsets = [2, 0], sizes = [1, 16], strides = [1, 1]} : vector<4x16xf32> to vector<1x16xf32>
    %370 = tpu.concatenate %368, %357, %369 in 0 : vector<1x16xf32>, vector<4x16xf32>, vector<1x16xf32> -> vector<6x16xf32>
    %371 = vector.extract_strided_slice %370 {offsets = [0, 0], sizes = [4, 16], strides = [1, 1]} : vector<6x16xf32> to vector<4x16xf32>
    %372 = vector.extract_strided_slice %370 {offsets = [1, 0], sizes = [4, 16], strides = [1, 1]} : vector<6x16xf32> to vector<4x16xf32>
    %373 = vector.extract_strided_slice %370 {offsets = [2, 0], sizes = [4, 16], strides = [1, 1]} : vector<6x16xf32> to vector<4x16xf32>
    %374 = tpu.concatenate %371, %372, %373 in 1 : vector<4x16xf32>, vector<4x16xf32>, vector<4x16xf32> -> vector<4x48xf32>
    %375 = tpu.concatenate %367, %374 in 0 : vector<4x48xf32>, vector<4x48xf32> -> vector<8x48xf32>
    %cst_184 = arith.constant dense<0.000000e+00> : vector<8x16xf32>
    %376 = tpu.matmul %375, %359, %cst_184 {dimension_numbers = #tpu.dot_dimension_numbers<[1], [0], [0], [1], [0, 0, 1, 1], [], []>} : vector<8x48xf32>, vector<48x16xf32>, vector<8x16xf32> -> vector<8x16xf32>
    %377 = vector.broadcast %360 : vector<1x16xf32> to vector<8x16xf32>
    %378 = arith.addf %376, %377 : vector<8x16xf32>
    %cst_185 = arith.constant 0.000000e+00 : f32
    %379 = vector.broadcast %cst_185 : f32 to vector<8x16xf32>
    %380 = arith.maximumf %378, %379 : vector<8x16xf32>
    %381 = vector.extract_strided_slice %380 {offsets = [0, 0], sizes = [4, 16], strides = [1, 1]} : vector<8x16xf32> to vector<4x16xf32>
    %382 = vector.extract_strided_slice %380 {offsets = [4, 0], sizes = [4, 16], strides = [1, 1]} : vector<8x16xf32> to vector<4x16xf32>
    %383 = arith.addf %381, %356 : vector<4x16xf32>
    %384 = arith.addf %382, %357 : vector<4x16xf32>
    %c1_186 = arith.constant 1 : index
    %c0_187 = arith.constant 0 : index
    %c0_188 = arith.constant 0 : index
    %385 = vector.load %arg8[%c1_186, %c0_187, %c0_188] : memref<3x48x16xf32, #tpu.memory_space<vmem>>, vector<1x48x16xf32>
    %386 = vector.shape_cast %385 : vector<1x48x16xf32> to vector<48x16xf32>
    %c1_189 = arith.constant 1 : index
    %c0_190 = arith.constant 0 : index
    %387 = vector.load %arg9[%c1_189, %c0_190] : memref<3x16xf32, #tpu.memory_space<vmem>>, vector<1x16xf32>
    %388 = vector.extract_strided_slice %383 {offsets = [1, 0], sizes = [1, 16], strides = [1, 1]} : vector<4x16xf32> to vector<1x16xf32>
    %389 = vector.extract_strided_slice %383 {offsets = [2, 0], sizes = [1, 16], strides = [1, 1]} : vector<4x16xf32> to vector<1x16xf32>
    %390 = tpu.concatenate %388, %383, %389 in 0 : vector<1x16xf32>, vector<4x16xf32>, vector<1x16xf32> -> vector<6x16xf32>
    %391 = vector.extract_strided_slice %390 {offsets = [0, 0], sizes = [4, 16], strides = [1, 1]} : vector<6x16xf32> to vector<4x16xf32>
    %392 = vector.extract_strided_slice %390 {offsets = [1, 0], sizes = [4, 16], strides = [1, 1]} : vector<6x16xf32> to vector<4x16xf32>
    %393 = vector.extract_strided_slice %390 {offsets = [2, 0], sizes = [4, 16], strides = [1, 1]} : vector<6x16xf32> to vector<4x16xf32>
    %394 = tpu.concatenate %391, %392, %393 in 1 : vector<4x16xf32>, vector<4x16xf32>, vector<4x16xf32> -> vector<4x48xf32>
    %395 = vector.extract_strided_slice %384 {offsets = [1, 0], sizes = [1, 16], strides = [1, 1]} : vector<4x16xf32> to vector<1x16xf32>
    %396 = vector.extract_strided_slice %384 {offsets = [2, 0], sizes = [1, 16], strides = [1, 1]} : vector<4x16xf32> to vector<1x16xf32>
    %397 = tpu.concatenate %395, %384, %396 in 0 : vector<1x16xf32>, vector<4x16xf32>, vector<1x16xf32> -> vector<6x16xf32>
    %398 = vector.extract_strided_slice %397 {offsets = [0, 0], sizes = [4, 16], strides = [1, 1]} : vector<6x16xf32> to vector<4x16xf32>
    %399 = vector.extract_strided_slice %397 {offsets = [1, 0], sizes = [4, 16], strides = [1, 1]} : vector<6x16xf32> to vector<4x16xf32>
    %400 = vector.extract_strided_slice %397 {offsets = [2, 0], sizes = [4, 16], strides = [1, 1]} : vector<6x16xf32> to vector<4x16xf32>
    %401 = tpu.concatenate %398, %399, %400 in 1 : vector<4x16xf32>, vector<4x16xf32>, vector<4x16xf32> -> vector<4x48xf32>
    %402 = tpu.concatenate %394, %401 in 0 : vector<4x48xf32>, vector<4x48xf32> -> vector<8x48xf32>
    %cst_191 = arith.constant dense<0.000000e+00> : vector<8x16xf32>
    %403 = tpu.matmul %402, %386, %cst_191 {dimension_numbers = #tpu.dot_dimension_numbers<[1], [0], [0], [1], [0, 0, 1, 1], [], []>} : vector<8x48xf32>, vector<48x16xf32>, vector<8x16xf32> -> vector<8x16xf32>
    %404 = vector.broadcast %387 : vector<1x16xf32> to vector<8x16xf32>
    %405 = arith.addf %403, %404 : vector<8x16xf32>
    %cst_192 = arith.constant 0.000000e+00 : f32
    %406 = vector.broadcast %cst_192 : f32 to vector<8x16xf32>
    %407 = arith.maximumf %405, %406 : vector<8x16xf32>
    %408 = vector.extract_strided_slice %407 {offsets = [0, 0], sizes = [4, 16], strides = [1, 1]} : vector<8x16xf32> to vector<4x16xf32>
    %409 = vector.extract_strided_slice %407 {offsets = [4, 0], sizes = [4, 16], strides = [1, 1]} : vector<8x16xf32> to vector<4x16xf32>
    %410 = arith.addf %408, %383 : vector<4x16xf32>
    %411 = arith.addf %409, %384 : vector<4x16xf32>
    %c2_193 = arith.constant 2 : index
    %c0_194 = arith.constant 0 : index
    %c0_195 = arith.constant 0 : index
    %412 = vector.load %arg8[%c2_193, %c0_194, %c0_195] : memref<3x48x16xf32, #tpu.memory_space<vmem>>, vector<1x48x16xf32>
    %413 = vector.shape_cast %412 : vector<1x48x16xf32> to vector<48x16xf32>
    %c2_196 = arith.constant 2 : index
    %c0_197 = arith.constant 0 : index
    %414 = vector.load %arg9[%c2_196, %c0_197] : memref<3x16xf32, #tpu.memory_space<vmem>>, vector<1x16xf32>
    %415 = vector.extract_strided_slice %410 {offsets = [1, 0], sizes = [1, 16], strides = [1, 1]} : vector<4x16xf32> to vector<1x16xf32>
    %416 = vector.extract_strided_slice %410 {offsets = [2, 0], sizes = [1, 16], strides = [1, 1]} : vector<4x16xf32> to vector<1x16xf32>
    %417 = tpu.concatenate %415, %410, %416 in 0 : vector<1x16xf32>, vector<4x16xf32>, vector<1x16xf32> -> vector<6x16xf32>
    %418 = vector.extract_strided_slice %417 {offsets = [0, 0], sizes = [4, 16], strides = [1, 1]} : vector<6x16xf32> to vector<4x16xf32>
    %419 = vector.extract_strided_slice %417 {offsets = [1, 0], sizes = [4, 16], strides = [1, 1]} : vector<6x16xf32> to vector<4x16xf32>
    %420 = vector.extract_strided_slice %417 {offsets = [2, 0], sizes = [4, 16], strides = [1, 1]} : vector<6x16xf32> to vector<4x16xf32>
    %421 = tpu.concatenate %418, %419, %420 in 1 : vector<4x16xf32>, vector<4x16xf32>, vector<4x16xf32> -> vector<4x48xf32>
    %422 = vector.extract_strided_slice %411 {offsets = [1, 0], sizes = [1, 16], strides = [1, 1]} : vector<4x16xf32> to vector<1x16xf32>
    %423 = vector.extract_strided_slice %411 {offsets = [2, 0], sizes = [1, 16], strides = [1, 1]} : vector<4x16xf32> to vector<1x16xf32>
    %424 = tpu.concatenate %422, %411, %423 in 0 : vector<1x16xf32>, vector<4x16xf32>, vector<1x16xf32> -> vector<6x16xf32>
    %425 = vector.extract_strided_slice %424 {offsets = [0, 0], sizes = [4, 16], strides = [1, 1]} : vector<6x16xf32> to vector<4x16xf32>
    %426 = vector.extract_strided_slice %424 {offsets = [1, 0], sizes = [4, 16], strides = [1, 1]} : vector<6x16xf32> to vector<4x16xf32>
    %427 = vector.extract_strided_slice %424 {offsets = [2, 0], sizes = [4, 16], strides = [1, 1]} : vector<6x16xf32> to vector<4x16xf32>
    %428 = tpu.concatenate %425, %426, %427 in 1 : vector<4x16xf32>, vector<4x16xf32>, vector<4x16xf32> -> vector<4x48xf32>
    %429 = tpu.concatenate %421, %428 in 0 : vector<4x48xf32>, vector<4x48xf32> -> vector<8x48xf32>
    %cst_198 = arith.constant dense<0.000000e+00> : vector<8x16xf32>
    %430 = tpu.matmul %429, %413, %cst_198 {dimension_numbers = #tpu.dot_dimension_numbers<[1], [0], [0], [1], [0, 0, 1, 1], [], []>} : vector<8x48xf32>, vector<48x16xf32>, vector<8x16xf32> -> vector<8x16xf32>
    %431 = vector.broadcast %414 : vector<1x16xf32> to vector<8x16xf32>
    %432 = arith.addf %430, %431 : vector<8x16xf32>
    %cst_199 = arith.constant 0.000000e+00 : f32
    %433 = vector.broadcast %cst_199 : f32 to vector<8x16xf32>
    %434 = arith.maximumf %432, %433 : vector<8x16xf32>
    %435 = vector.extract_strided_slice %434 {offsets = [0, 0], sizes = [4, 16], strides = [1, 1]} : vector<8x16xf32> to vector<4x16xf32>
    %436 = vector.extract_strided_slice %434 {offsets = [4, 0], sizes = [4, 16], strides = [1, 1]} : vector<8x16xf32> to vector<4x16xf32>
    %437 = arith.addf %435, %410 : vector<4x16xf32>
    %438 = arith.addf %436, %411 : vector<4x16xf32>
    %439 = vector.extract_strided_slice %437 {offsets = [1, 0], sizes = [1, 16], strides = [1, 1]} : vector<4x16xf32> to vector<1x16xf32>
    %440 = vector.extract_strided_slice %437 {offsets = [2, 0], sizes = [1, 16], strides = [1, 1]} : vector<4x16xf32> to vector<1x16xf32>
    %441 = tpu.concatenate %439, %437, %440 in 0 : vector<1x16xf32>, vector<4x16xf32>, vector<1x16xf32> -> vector<6x16xf32>
    %442 = vector.extract_strided_slice %441 {offsets = [0, 0], sizes = [4, 16], strides = [1, 1]} : vector<6x16xf32> to vector<4x16xf32>
    %443 = vector.extract_strided_slice %441 {offsets = [1, 0], sizes = [4, 16], strides = [1, 1]} : vector<6x16xf32> to vector<4x16xf32>
    %444 = vector.extract_strided_slice %441 {offsets = [2, 0], sizes = [4, 16], strides = [1, 1]} : vector<6x16xf32> to vector<4x16xf32>
    %445 = tpu.concatenate %442, %443, %444 in 1 : vector<4x16xf32>, vector<4x16xf32>, vector<4x16xf32> -> vector<4x48xf32>
    %446 = vector.extract_strided_slice %438 {offsets = [1, 0], sizes = [1, 16], strides = [1, 1]} : vector<4x16xf32> to vector<1x16xf32>
    %447 = vector.extract_strided_slice %438 {offsets = [2, 0], sizes = [1, 16], strides = [1, 1]} : vector<4x16xf32> to vector<1x16xf32>
    %448 = tpu.concatenate %446, %438, %447 in 0 : vector<1x16xf32>, vector<4x16xf32>, vector<1x16xf32> -> vector<6x16xf32>
    %449 = vector.extract_strided_slice %448 {offsets = [0, 0], sizes = [4, 16], strides = [1, 1]} : vector<6x16xf32> to vector<4x16xf32>
    %450 = vector.extract_strided_slice %448 {offsets = [1, 0], sizes = [4, 16], strides = [1, 1]} : vector<6x16xf32> to vector<4x16xf32>
    %451 = vector.extract_strided_slice %448 {offsets = [2, 0], sizes = [4, 16], strides = [1, 1]} : vector<6x16xf32> to vector<4x16xf32>
    %452 = tpu.concatenate %449, %450, %451 in 1 : vector<4x16xf32>, vector<4x16xf32>, vector<4x16xf32> -> vector<4x48xf32>
    %c0_200 = arith.constant 0 : index
    %c0_201 = arith.constant 0 : index
    %453 = vector.load %arg10[%c0_200, %c0_201] : memref<48x64xf32, #tpu.memory_space<vmem>>, vector<48x64xf32>
    %c0_202 = arith.constant 0 : index
    %c0_203 = arith.constant 0 : index
    %454 = vector.load %arg11[%c0_202, %c0_203] : memref<1x64xf32, #tpu.memory_space<vmem>>, vector<1x64xf32>
    %455 = tpu.concatenate %445, %452 in 0 : vector<4x48xf32>, vector<4x48xf32> -> vector<8x48xf32>
    %cst_204 = arith.constant dense<0.000000e+00> : vector<8x64xf32>
    %456 = tpu.matmul %455, %453, %cst_204 {dimension_numbers = #tpu.dot_dimension_numbers<[1], [0], [0], [1], [0, 0, 1, 1], [], []>} : vector<8x48xf32>, vector<48x64xf32>, vector<8x64xf32> -> vector<8x64xf32>
    %457 = vector.broadcast %454 : vector<1x64xf32> to vector<8x64xf32>
    %458 = arith.addf %456, %457 : vector<8x64xf32>
    %459 = vector.extract_strided_slice %458 {offsets = [0, 0], sizes = [4, 64], strides = [1, 1]} : vector<8x64xf32> to vector<4x64xf32>
    %460 = vector.extract_strided_slice %458 {offsets = [4, 0], sizes = [4, 64], strides = [1, 1]} : vector<8x64xf32> to vector<4x64xf32>
    %cst_205 = arith.constant dense<0.000000e+00> : vector<64xf32>
    %461 = vector.multi_reduction <add>, %459, %cst_205 [0] : vector<4x64xf32> to vector<64xf32>
    %462 = vector.shape_cast %461 : vector<64xf32> to vector<1x64xf32>
    %cst_206 = arith.constant 4.000000e+00 : f32
    %463 = vector.broadcast %cst_206 : f32 to vector<1x64xf32>
    %464 = arith.divf %462, %463 : vector<1x64xf32>
    %c0_207 = arith.constant 0 : index
    %c0_208 = arith.constant 0 : index
    %c0_209 = arith.constant 0 : index
    %465 = vector.load %arg12[%c0_207, %c0_208, %c0_209] : memref<2x1x64xf32, #tpu.memory_space<vmem>>, vector<1x1x64xf32>
    %466 = vector.shape_cast %465 : vector<1x1x64xf32> to vector<1x64xf32>
    %467 = vector.shape_cast %464 : vector<1x64xf32> to vector<1x1x64xf32>
    tpu.vector_store %arg12[%c0_207, %c0_208, %c0_209], %467 {strides = array<i32>} : memref<2x1x64xf32, #tpu.memory_space<vmem>>, vector<1x1x64xf32>,
    %cst_210 = arith.constant dense<0.000000e+00> : vector<64xf32>
    %468 = vector.multi_reduction <add>, %460, %cst_210 [0] : vector<4x64xf32> to vector<64xf32>
    %469 = vector.shape_cast %468 : vector<64xf32> to vector<1x64xf32>
    %cst_211 = arith.constant 4.000000e+00 : f32
    %470 = vector.broadcast %cst_211 : f32 to vector<1x64xf32>
    %471 = arith.divf %469, %470 : vector<1x64xf32>
    %c1_212 = arith.constant 1 : index
    %c0_213 = arith.constant 0 : index
    %c0_214 = arith.constant 0 : index
    %472 = vector.load %arg12[%c1_212, %c0_213, %c0_214] : memref<2x1x64xf32, #tpu.memory_space<vmem>>, vector<1x1x64xf32>
    %473 = vector.shape_cast %472 : vector<1x1x64xf32> to vector<1x64xf32>
    %474 = vector.shape_cast %471 : vector<1x64xf32> to vector<1x1x64xf32>
    tpu.vector_store %arg12[%c1_212, %c0_213, %c0_214], %474 {strides = array<i32>} : memref<2x1x64xf32, #tpu.memory_space<vmem>>, vector<1x1x64xf32>,
    return
  }
  func.func @transform_0(%arg0: i32) -> (i32, i32, i32) {
    %c0_i32 = arith.constant 0 : i32
    %c0_i32_0 = arith.constant 0 : i32
    %c0_i32_1 = arith.constant 0 : i32
    return %arg0, %c0_i32, %c0_i32_0 : i32, i32, i32
  }
  func.func @transform_1(%arg0: i32) -> (i32, i32) {
    %c0_i32 = arith.constant 0 : i32
    %c0_i32_0 = arith.constant 0 : i32
    %c0_i32_1 = arith.constant 0 : i32
    return %c0_i32, %c0_i32_0 : i32, i32
  }
  func.func @transform_2(%arg0: i32) -> (i32, i32) {
    %c0_i32 = arith.constant 0 : i32
    %c0_i32_0 = arith.constant 0 : i32
    %c0_i32_1 = arith.constant 0 : i32
    return %c0_i32, %c0_i32_0 : i32, i32
  }
  func.func @transform_3(%arg0: i32) -> (i32, i32) {
    %c0_i32 = arith.constant 0 : i32
    %c0_i32_0 = arith.constant 0 : i32
    %c0_i32_1 = arith.constant 0 : i32
    return %c0_i32, %c0_i32_0 : i32, i32
  }
  func.func @transform_4(%arg0: i32) -> (i32, i32) {
    %c0_i32 = arith.constant 0 : i32
    %c0_i32_0 = arith.constant 0 : i32
    %c0_i32_1 = arith.constant 0 : i32
    return %c0_i32, %c0_i32_0 : i32, i32
  }
  func.func @transform_5(%arg0: i32) -> (i32, i32, i32) {
    %c0_i32 = arith.constant 0 : i32
    %c0_i32_0 = arith.constant 0 : i32
    %c0_i32_1 = arith.constant 0 : i32
    %c0_i32_2 = arith.constant 0 : i32
    return %c0_i32, %c0_i32_0, %c0_i32_1 : i32, i32, i32
  }
  func.func @transform_6(%arg0: i32) -> (i32, i32) {
    %c0_i32 = arith.constant 0 : i32
    %c0_i32_0 = arith.constant 0 : i32
    %c0_i32_1 = arith.constant 0 : i32
    return %c0_i32, %c0_i32_0 : i32, i32
  }
  func.func @transform_7(%arg0: i32) -> (i32, i32, i32) {
    %c0_i32 = arith.constant 0 : i32
    %c0_i32_0 = arith.constant 0 : i32
    %c0_i32_1 = arith.constant 0 : i32
    %c0_i32_2 = arith.constant 0 : i32
    return %c0_i32, %c0_i32_0, %c0_i32_1 : i32, i32, i32
  }
  func.func @transform_8(%arg0: i32) -> (i32, i32) {
    %c0_i32 = arith.constant 0 : i32
    %c0_i32_0 = arith.constant 0 : i32
    %c0_i32_1 = arith.constant 0 : i32
    return %c0_i32, %c0_i32_0 : i32, i32
  }
  func.func @transform_9(%arg0: i32) -> (i32, i32) {
    %c0_i32 = arith.constant 0 : i32
    %c0_i32_0 = arith.constant 0 : i32
    %c0_i32_1 = arith.constant 0 : i32
    return %c0_i32, %c0_i32_0 : i32, i32
  }
  func.func @transform_10(%arg0: i32) -> (i32, i32) {
    %c0_i32 = arith.constant 0 : i32
    %c0_i32_0 = arith.constant 0 : i32
    %c0_i32_1 = arith.constant 0 : i32
    return %c0_i32, %c0_i32_0 : i32, i32
  }
  func.func @transform_11(%arg0: i32) -> (i32, i32, i32) {
    %c0_i32 = arith.constant 0 : i32
    %c0_i32_0 = arith.constant 0 : i32
    %c0_i32_1 = arith.constant 0 : i32
    return %arg0, %c0_i32, %c0_i32_0 : i32, i32, i32
  }
}

</mosaic_0001>

<bundles_post_ra>
// kernel: tpu_custom_call.1
= control target key start
LH: loop header
LB: loop body
LE: loop exit
PB: predicated region body
PF: predicated region fallthrough
CT: control target
= control target key end

     0   :  { %s6819_s0 = inlined_call_operand.vmem [shape: f32[8,32,16], index: 0, kind: input, shape index: {}]   ;;  %s6820_s1 = inlined_call_operand.vmem [shape: f32[64,64], index: 1, kind: input, shape index: {}]   ;;  %s6821_s2 = inlined_call_operand.vmem [shape: f32[1,64], index: 2, kind: input, shape index: {}]   ;;  %s6822_s3 = inlined_call_operand.vmem [shape: f32[80,16], index: 3, kind: input, shape index: {}]   ;;  %s6823_s4 = inlined_call_operand.vmem [shape: f32[1,16], index: 4, kind: input, shape index: {}]   ;;  %s6824_s5 = inlined_call_operand.vmem [shape: f32[8,80,16], index: 5, kind: input, shape index: {}]   ;;  %s6825_s6 = inlined_call_operand.vmem [shape: f32[8,16], index: 6, kind: input, shape index: {}]   ;;  %s6826_s7 = inlined_call_operand.vmem [shape: f32[3,48,16], index: 7, kind: input, shape index: {}]   ;;  %s6827_s8 = inlined_call_operand.vmem [shape: f32[3,16], index: 8, kind: input, shape index: {}]   ;;  %s6828_s9 = inlined_call_operand.vmem [shape: f32[48,64], index: 9, kind: input, shape index: {}]   ;;  %s6829_s10 = inlined_call_operand.vmem [shape: f32[1,64], index: 10, kind: input, shape index: {}]   ;;  %s6830_s11 = inlined_call_operand.hbm [shape: f32[8,1,64], index: 11, kind: output, shape index: {}]  }
   0x1   :  { %6839 = sst [smem:[#allocation7_spill]] %s6819_s0 }
   0x2   :  { %6840 = sst [smem:[#allocation8_spill]] %s6820_s1 }
   0x3   :  { %6841 = sst [smem:[#allocation9_spill]] %s6821_s2 }
   0x4   :  { %16 = vsyncpa [#allocation4], 0 }
   0x5   :  { %18 = vsyncpa [#allocation4 + $0x1], 0  ;;  %s5055_s17 = smov 0   ;;  %s5057_s18 = smov 0  }
   0x6   :  { %s5059_s19 = smov 0   ;;  %s5061_s20 = smov 0  }
   0x7 LB: > { %s5076_s21 = sadd.s32 4294967295, %s4984_s20   ;;  %s3959_s22 = sadd.s32 4294967294, %s4984_s20   ;;  %s4984_s20 = sphi %s5061_s20, %s6856_s20   ;;  %s4980_s19 = sphi %s5059_s19, %s6855_s19   ;;  %s4976_s18 = sphi %s5057_s18, %s6854_s18   ;;  %s4972_s17 = sphi %s5055_s17, %s6853_s17  }
   0x8   : > { %s5080_s23 = sadd.s32 1, %s4984_s20   ;;  %s267_s24 = sadd.s32 1, %s4980_s19 }
   0x9   : > { %s264_s25 = ssub.s32 %s4984_s20, %s5080_s23  ;;  %p277_p0 = scmp.ne.s32.totalorder %s4980_s19, %s4976_s18 }
   0xa   : > { %p265_p1 = scmp.eq.s32.totalorder %s264_s25, 0  ;;  %p278_p2 = scmp.eq.s32.totalorder %s5076_s21, 3 }
   0xb   : > { %p283_p3 = scmp.ne.s32.totalorder %s4976_s18, %s4972_s17  ;;  %p284_p4 = scmp.eq.s32.totalorder %s3959_s22, 3 }
   0xc   : > { %s5091_s26 = scalar_select %p265_p1, %s4980_s19, %s267_s24  }
   0xd   : > { %p5093_p5 = por %p278_p2, %p277_p0  ;;  %p5097_p6 = por %p284_p4, %p283_p3 }
   0xe   : > { %6842 = sst [smem:[#allocation6_spill]] %s5091_s26  ;;  %p3962_p7 = scmp.ge.s32.totalorder %s4984_s20, 1 }
   0xf   : > { %p342_p8 = scmp.lt.s32.totalorder %s4984_s20, 5 }
  0x11   : > { %p343_p9 = pnand %p3962_p7, %p342_p8 }
  0x12   : > { %s3964_s29 = sshll.u32 (!%p343_p9), %s5076_s21, 1  ;;  %s6845_s1 = sld [smem:[#allocation8_spill]] (!%p343_p9)  ;;  %vm406_vm0 = vcmask (!%p343_p9), 1041408   ;;  %vm421_vm1 = vcmask (!%p343_p9), 1040384   ;;  %vm449_vm2 = vcmask (!%p343_p9), 1045504   ;;  %vm427_vm3 = vcmask (!%p343_p9), 1046528  }
  0x13   : > { %346 = sbr.rel (%p343_p9) target bundleno = 4948 (0x1354), region = 64  ;;  %p384_p10 = scmp.lt.s32.totalorder (!%p343_p9), %s3964_s29, 7  ;;  %vm471_vm4 = vcmask (!%p343_p9), 1044480   ;;  %vm493_vm5 = vcmask (!%p343_p9), 130048   ;;  %vm498_vm6 = vcmask (!%p343_p9), 261120   ;;  %vm503_vm7 = vcmask (!%p343_p9), 392192  }
  0x14   : > { %s6846_s0 = sld [smem:[#allocation7_spill]] (!%p343_p9)  ;;  %s6835_s26 = smov (!%p343_p9), 32   ;;  %vm623_vm8 = vcmask (!%p343_p9), 523264   ;;  %vm810_vm9 = vcmask (!%p343_p9), 654336   ;;  %vm1063_vm10 = vcmask (!%p343_p9), 1043456   ;;  %vm996_vm11 = vcmask (!%p343_p9), 1042432  }
  0x15   : > { %s6833_s22 = smov (!%p343_p9), 48   ;;  %s6831_s24 = smov (!%p343_p9), 64   ;;  %vm2226_vm12 = vcmask (!%p343_p9), 125952   ;;  %vm4991_vm13 = vmmov (!%p343_p9), 0   ;;  %vm3858_vm14 = vcmask (!%p343_p9), 519168   ;;  %vm3868_vm15 = vcmask (!%p343_p9), 516096  }
  0x16   : > { %s6847_s2 = sld [smem:[#allocation9_spill]] (!%p343_p9)  ;;  %s6849_s15 = smov (!%p343_p9), 64  }
  0x17   : > { %s4993_s13 = smov (!%p343_p9), [#allocation3]  }
  0x18   : > { %v608_v0 = vld [vmem:[%s6845_s1] sm:$0xff] (!%p343_p9)  ;;  %v609_v1 = vld [vmem:[%s6845_s1 + $0x8] sm:$0xff] (!%p343_p9)  ;;  %v610_v3 = vld [vmem:[%s6845_s1 + $0x10] sm:$0xff] (!%p343_p9)  ;;  %s4926_s14 = sshll.u32 (!%p343_p9), %s4993_s13, 4  ;;  %s4927_s14 = int_to_ptr.vmem [resolvable:$false] %s4926_s14 }
  0x19   : > { %v4648_v2 = vpack.c.bf16 (!%p343_p9), %v609_v1, %v608_v0  ;;  %v611_v4 = vld [vmem:[%s6845_s1 + $0x18] sm:$0xff] (!%p343_p9)  ;;  %v612_v6 = vld [vmem:[%s6845_s1 + $0x20] sm:$0xff] (!%p343_p9)  ;;  %v613_v7 = vld [vmem:[%s6845_s1 + $0x28] sm:$0xff] (!%p343_p9) }
  0x1a   : > { %s6858_s29 = smov (!%p384_p10, %s3964_s29), 7  ;;  %v4652_v5 = vpack.c.bf16 %v611_v4, %v610_v3  ;;  %v4656_v8 = vpack.c.bf16 %v613_v7, %v612_v6  ;;  %v614_v39 = vld [vmem:[%s6845_s1 + $0x30] sm:$0xff]  ;;  %v615_v40 = vld [vmem:[%s6845_s1 + $0x38] sm:$0xff] }
  0x1b   : > { %4649 = vmatprep.subr.bf16.mxu0 %v4648_v2  ;;  %s4130_s25 = sshll.u32 %s6858_s29, 5  ;;  %s6837_s29 = smov 16   ;;  %v4660_v48 = vpack.c.bf16 %v615_v40, %v614_v39  ;;  %v795_v39 = vld [vmem:[%s6822_s3 + $0x10] sm:$0xff] }
  0x1c   : > { %4651 = vmatpush3.bf16.msra.mxu0 %v4648_v2  ;;  %s5125_s16 = scalar_lea.vmem %s6846_s0, %s4130_s25 }
  0x1d   : > { %4653 = vmatprep.subr.bf16.mxu0 %v4652_v5  ;;  %v5128_v9 = vld [vmem:[%s5125_s16] sm:$0xff]  ;;  %v5131_v10 = vld [vmem:[%s5125_s16 + $0x8] sm:$0xff]  ;;  %v5134_v11 = vld [vmem:[%s5125_s16 + $0x10] sm:$0xff] }
  0x1e   : > { %v407_v12 = vrot.slane %v5128_v9, 6  ;;  %v408_v13 = vrot.slane %v5131_v10, 6  ;;  %v410_v14 = vrot.slane %v5134_v11, 6  ;;  %v5140_v15 = vld [vmem:[%s5125_s16 + $0x18] sm:$0xff]  ;;  %v401_v16 = vrot.slane %v5128_v9, 2  ;;  %v5175_v38 = vld [vmem:[%s5125_s16 + $0x20] sm:$0xff] }
  0x1f   : > { %v412_v17 = vrot.slane %v5140_v15, 6  ;;  %v419_v18 = vrot.slane %v5140_v15, 4  ;;  %v5190_v45 = vld [vmem:[%s5125_s16 + $0x28] sm:$0xff]  ;;  %v509_v46 = vrot.slane %v5175_v38, 2  ;;  %v5194_v47 = vld [vmem:[%s5125_s16 + $0x30] sm:$0xff]  ;;  %v514_v53 = vrot.slane %v5175_v38, 6 }
  0x20   : > { %4655 = vmatpush3.bf16.msra.mxu0 %v4652_v5  ;;  %v5146_v19 = vsel %vm406_vm0, %v407_v12, %v408_v13  ;;  %v5149_v20 = vsel %vm406_vm0, %v408_v13, %v410_v14  ;;  %v422_v21 = vsel %vm421_vm1, %v401_v16, %v5128_v9  ;;  %v515_v54 = vrot.slane %v5190_v45, 6  ;;  %v5228_v5 = vld [vmem:[%s5125_s16 + $0x38] sm:$0xff]  ;;  %s6850_s16 = smov 32  }
  0x21   : > { %4657 = vmatprep.subr.bf16.mxu0 %v4656_v8  ;;  %v451_v22 = vrot.slane %v5146_v19, 2  ;;  %v453_v23 = vrot.slane %v5149_v20, 2  ;;  %v429_v24 = vrot.slane %v5146_v19, 1  ;;  %v431_v25 = vrot.slane %v5149_v20, 1 }
  0x22   : > { %v473_v26 = vrot.slane %v5146_v19, 3  ;;  %v475_v27 = vrot.slane %v5149_v20, 3  ;;  %v5160_v28 = vsel %vm406_vm0, %v410_v14, %v412_v17  ;;  %v424_v29 = vsel %vm406_vm0, %v412_v17, %v419_v18 }
  0x23   : > { %v454_v30 = vsel %vm449_vm2, %v451_v22, %v453_v23  ;;  %v432_v31 = vsel %vm427_vm3, %v429_v24, %v431_v25  ;;  %v433_v32 = vrot.slane %v5160_v28, 1  ;;  %v5169_v33 = vsel %vm406_vm0, %v422_v21, %v407_v12 }
  0x24   : > { %4659 = vmatpush3.bf16.msra.mxu0 %v4656_v8  ;;  %461 = vrot.lane.b32.xlu1 %v454_v30, %s6835_s26  ;;  %v476_v34 = vsel %vm471_vm4, %v473_v26, %v475_v27  ;;  %v435_v36 = vrot.slane %v424_v29, 1  ;;  %v428_v37 = vrot.slane %v5169_v33, 1  ;;  %v450_v43 = vrot.slane %v5169_v33, 2 }
  0x25   : > { %439 = vrot.lane.b32.xlu0 %v432_v31, %s6837_s29  ;;  %v434_v35 = vsel %vm427_vm3, %v431_v25, %v433_v32  ;;  %v472_v44 = vrot.slane %v5169_v33, 3  ;;  %v455_v51 = vrot.slane %v5160_v28, 2  ;;  %v457_v52 = vrot.slane %v424_v29, 2  ;;  %4661 = vmatprep.subr.bf16.mxu0 %v4660_v48 }
  0x26   : > { %v436_v41 = vsel %vm427_vm3, %v433_v32, %v435_v36  ;;  %v430_v42 = vsel %vm427_vm3, %v428_v37, %v429_v24  ;;  %v452_v49 = vsel %vm449_vm2, %v450_v43, %v451_v22  ;;  %v517_v55 = vrot.slane %v5194_v47, 6  ;;  %v793_v36 = vld [vmem:[%s6822_s3] sm:$0xff]  ;;  %v794_v37 = vld [vmem:[%s6822_s3 + $0x8] sm:$0xff] }
  0x27   : > { %v474_v50 = vsel %vm471_vm4, %v472_v44, %v473_v26  ;;  %v528_v56 = vsel %vm421_vm1, %v509_v46, %v5175_v38  ;;  %v477_v57 = vrot.slane %v5160_v28, 3  ;;  %v458_v58 = vsel %vm449_vm2, %v455_v51, %v457_v52  ;;  %v797_v43 = vld [vmem:[%s6822_s3 + $0x20] sm:$0xff]  ;;  %v798_v44 = vld [vmem:[%s6822_s3 + $0x28] sm:$0xff] }
  0x28   : > { %483 = vrot.lane.b32.xlu1 %v476_v34, %s6833_s22  ;;  %4663 = vmatpush3.bf16.msra.mxu0 %v4660_v48  ;;  %v456_v59 = vsel %vm449_vm2, %v453_v23, %v455_v51  ;;  %v479_v60 = vrot.slane %v424_v29, 3  ;;  %v5212_v61 = vsel %vm406_vm0, %v514_v53, %v515_v54  ;;  %v5215_v62 = vsel %vm406_vm0, %v528_v56, %v514_v53 }
  0x29   : > { %441 = vrot.lane.b32.xlu0 %v434_v35, %s6837_s29  ;;  %v5218_v63 = vsel %vm406_vm0, %v515_v54, %v517_v55  ;;  %v478_v0 = vsel %vm471_vm4, %v475_v27, %v477_v57  ;;  %v533_v2 = vrot.slane %v5215_v62, 1  ;;  %v534_v3 = vrot.slane %v5212_v61, 1 }
  0x2a   : > { %v480_v1 = vsel %vm471_vm4, %v477_v57, %v479_v60  ;;  %v536_v4 = vrot.slane %v5218_v63, 1  ;;  %v555_v6 = vrot.slane %v5212_v61, 2  ;;  %v554_v12 = vrot.slane %v5215_v62, 2 }
  0x2b   : > { %v535_v7 = vsel %vm427_vm3, %v533_v2, %v534_v3  ;;  %v557_v13 = vrot.slane %v5218_v63, 2  ;;  %v519_v14 = vrot.slane %v5228_v5, 6  ;;  %v526_v16 = vrot.slane %v5228_v5, 4 }
  0x2c   : > { %443 = vrot.lane.b32.xlu1 %v436_v41, %s6837_s29  ;;  %v537_v8 = vsel %vm427_vm3, %v534_v3, %v536_v4  ;;  %v575_v17 = vrot.slane %v5215_v62, 3  ;;  %v556_v18 = vsel %vm449_vm2, %v554_v12, %v555_v6  ;;  %v576_v22 = vrot.slane %v5212_v61, 3  ;;  %v796_v41 = vld [vmem:[%s6822_s3 + $0x18] sm:$0xff] }
  0x2d   : > { %437 = vrot.lane.b32.xlu0 %v430_v42, %s6837_s29  ;;  %v558_v21 = vsel %vm449_vm2, %v555_v6, %v557_v13  ;;  %v578_v23 = vrot.slane %v5218_v63, 3  ;;  %v5247_v24 = vsel %vm406_vm0, %v517_v55, %v519_v14  ;;  %v530_v25 = vsel %vm406_vm0, %v519_v14, %v526_v16 }
  0x2e   : > { %v577_v26 = vsel %vm471_vm4, %v575_v17, %v576_v22  ;;  %v538_v29 = vrot.slane %v5247_v24, 1  ;;  %v540_v30 = vrot.slane %v530_v25, 1  ;;  %v559_v34 = vrot.slane %v5247_v24, 2 }
  0x2f   : > { %v579_v27 = vsel %vm471_vm4, %v576_v22, %v578_v23  ;;  %v561_v35 = vrot.slane %v530_v25, 2  ;;  %v4664_v40 = vpack.c.bf16 %v794_v37, %v793_v36  ;;  %v4668_v42 = vpack.c.bf16 %v796_v41, %v795_v39  ;;  %v801_v39 = vld [vmem:[%s6822_s3 + $0x40] sm:$0xff] }
  0x30   : > { %459 = vrot.lane.b32.xlu1 %v452_v49, %s6835_s26  ;;  %v539_v31 = vsel %vm427_vm3, %v536_v4, %v538_v29  ;;  %v541_v32 = vsel %vm427_vm3, %v538_v29, %v540_v30  ;;  %v560_v46 = vsel %vm449_vm2, %v557_v13, %v559_v34  ;;  %v580_v49 = vrot.slane %v5247_v24, 3 }
  0x31   : > { %481 = vrot.lane.b32.xlu0 %v474_v50, %s6833_s22  ;;  %v562_v48 = vsel %vm449_vm2, %v559_v34, %v561_v35  ;;  %v582_v50 = vrot.slane %v530_v25, 3  ;;  %4665 = vmatprep.subr.bf16.mxu1 %v4664_v40  ;;  %v4672_v51 = vpack.c.bf16 %v798_v44, %v797_v43 }
  0x32   : > { %4667 = vmatpush3.bf16.msra.mxu1 %v4664_v40  ;;  %v581_v52 = vsel %vm471_vm4, %v578_v23, %v580_v49  ;;  %v802_v40 = vld [vmem:[%s6822_s3 + $0x48] sm:$0xff] }
  0x33   : > { %4669 = vmatprep.subr.bf16.mxu1 %v4668_v42  ;;  %v583_v53 = vsel %vm471_vm4, %v580_v49, %v582_v50  ;;  %v4680_v41 = vpack.c.bf16 %v802_v40, %v801_v39 }
  0x34   : > { %465 = vrot.lane.b32.xlu1 %v458_v58, %s6835_s26 }
  0x35   : > { %463 = vrot.lane.b32.xlu0 %v456_v59, %s6835_s26 }
  0x36   : > { %4671 = vmatpush3.bf16.msra.mxu1 %v4668_v42  ;;  %v3971_v42 = vld [vmem:[%s6847_s2] ss:$0 sm:$0xff]  ;;  %s4131_s2 = sshll.u32 %s5076_s21, 5 }
  0x37   : > { %4673 = vmatprep.subr.bf16.mxu1 %v4672_v51 }
  0x38   : > { %487 = vrot.lane.b32.xlu1 %v480_v1, %s6833_s22 }
  0x39   : > { %485 = vrot.lane.b32.xlu0 %v478_v0, %s6833_s22 }
  0x3a   : > { %4675 = vmatpush3.bf16.msra.mxu1 %v4672_v51 }
  0x3c   : > { %544 = vrot.lane.b32.xlu1 %v537_v8, %s6837_s29 }
  0x3d   : > { %542 = vrot.lane.b32.xlu0 %v535_v7, %s6837_s29 }
  0x40   : > { %565 = vrot.lane.b32.xlu1 %v558_v21, %s6835_s26 }
  0x41   : > { %563 = vrot.lane.b32.xlu0 %v556_v18, %s6835_s26 }
  0x44   : > { %586 = vrot.lane.b32.xlu1 %v579_v27, %s6833_s22 }
  0x45   : > { %584 = vrot.lane.b32.xlu0 %v577_v26, %s6833_s22 }
  0x48   : > { %548 = vrot.lane.b32.xlu1 %v541_v32, %s6837_s29 }
  0x49   : > { %546 = vrot.lane.b32.xlu0 %v539_v31, %s6837_s29 }
  0x4c   : > { %569 = vrot.lane.b32.xlu1 %v562_v48, %s6835_s26 }
  0x4d   : > { %567 = vrot.lane.b32.xlu0 %v560_v46, %s6835_s26 }
  0x50   : > { %590 = vrot.lane.b32.xlu1 %v583_v53, %s6833_s22 }
  0x51   : > { %588 = vrot.lane.b32.xlu0 %v581_v52, %s6833_s22  ;;  %s6848_s22 = smov 48  }
  0x54   : > { %763 = vrot.lane.b32.xlu1 %v5131_v10, %s6831_s24 }
  0x55   : > { %761 = vrot.lane.b32.xlu0 %v5128_v9, %s6831_s24 }
  0x58   : > { %767 = vrot.lane.b32.xlu1 %v5140_v15, %s6831_s24 }
  0x59   : > { %765 = vrot.lane.b32.xlu0 %v5134_v11, %s6831_s24 }
  0x5c   : > { %779 = vrot.lane.b32.xlu1 %v5190_v45, %s6831_s24 }
  0x5d   : > { %777 = vrot.lane.b32.xlu0 %v5175_v38, %s6831_s24 }
  0x60   : > { %783 = vrot.lane.b32.xlu1 %v5228_v5, %s6831_s24 }
  0x61   : > { %781 = vrot.lane.b32.xlu0 %v5194_v47, %s6831_s24  ;;  %s6851_s24 = smov 16  }
  0x96   : > { %v462_v10 = vpop.permute.xlu1 %461 }
  0x97   : > { %v440_v9 = vpop.permute.xlu0 %439 }
  0x98   : > { %v495_v11 = vsel %vm493_vm5, %v5146_v19, %v440_v9 }
  0x99   : > { %v500_v58 = vsel %vm498_vm6, %v495_v11, %v462_v10 }
  0x9a   : > { %v484_v54 = vpop.permute.xlu1 %483 }
  0x9b   : > { %v442_v55 = vpop.permute.xlu0 %441  ;;  %v505_v60 = vsel %vm503_vm7, %v500_v58, %v484_v54 }
  0x9e   : > { %v444_v15 = vpop.permute.xlu1 %443 }
  0x9f   : > { %v438_v56 = vpop.permute.xlu0 %437  ;;  %v497_v1 = vsel %vm493_vm5, %v5160_v28, %v444_v15 }
  0xa0   : > { %v494_v38 = vsel %vm493_vm5, %v5169_v33, %v438_v56  ;;  %v496_v33 = vsel %vm493_vm5, %v5149_v20, %v442_v55 }
  0xa2   : > { %v460_v45 = vpop.permute.xlu1 %459 }
  0xa3   : > { %v482_v47 = vpop.permute.xlu0 %481  ;;  %v499_v57 = vsel %vm498_vm6, %v494_v38, %v460_v45 }
  0xa4   : > { %v504_v59 = vsel %vm503_vm7, %v499_v57, %v482_v47 }
  0xa5   : > { %4327 = vmatprep.mubr.msk.f32.mxu0 %vm623_vm8, %v504_v59 }
  0xa6   : > { %v466_v0 = vpop.permute.xlu1 %465  ;;  %4328 = vmatmul.mubr.msk.f32.vlgmr.msra.gmra.mrb[0].mxu0 %vm623_vm8, %v505_v60 }
  0xa7   : > { %v464_v19 = vpop.permute.xlu0 %463  ;;  %v502_v2 = vsel %vm498_vm6, %v497_v1, %v466_v0 }
  0xa8   : > { %v501_v3 = vsel %vm498_vm6, %v496_v33, %v464_v19 }
  0xaa   : > { %v488_v4 = vpop.permute.xlu1 %487 }
  0xab   : > { %v486_v5 = vpop.permute.xlu0 %485  ;;  %v507_v6 = vsel %vm503_vm7, %v502_v2, %v488_v4 }
  0xac   : > { %v506_v7 = vsel %vm503_vm7, %v501_v3, %v486_v5 }
  0xad   : > { %4330 = vmatprep.mubr.msk.f32.mxu0 %vm623_vm8, %v506_v7 }
  0xae   : > { %4331 = vmatmul.mubr.msk.f32.gmra.mrb[2].mxu0 %vm623_vm8, %v507_v6  ;;  %v545_v12 = vpop.permute.xlu1 %544 }
  0xaf   : > { %v543_v8 = vpop.permute.xlu0 %542  ;;  %v597_v28 = vsel %vm493_vm5, %v5212_v61, %v545_v12 }
  0xb0   : > { %v596_v20 = vsel %vm493_vm5, %v5215_v62, %v543_v8 }
  0xb2   : > { %v566_v14 = vpop.permute.xlu1 %565 }
  0xb3   : > { %v564_v13 = vpop.permute.xlu0 %563  ;;  %v601_v17 = vsel %vm498_vm6, %v597_v28, %v566_v14 }
  0xb4   : > { %v600_v16 = vsel %vm498_vm6, %v596_v20, %v564_v13 }
  0xb6   : > { %v587_v21 = vpop.permute.xlu1 %586 }
  0xb7   : > { %v585_v18 = vpop.permute.xlu0 %584  ;;  %v605_v23 = vsel %vm503_vm7, %v601_v17, %v587_v21  ;;  %v948_v17 = vld [vmem:[%s6824_s5] sm:$0xff] }
  0xb8   : > { %v604_v22 = vsel %vm503_vm7, %v600_v16, %v585_v18  ;;  %v949_v18 = vld [vmem:[%s6824_s5 + $0x8] sm:$0xff] }
  0xb9   : > { %4333 = vmatprep.mubr.msk.f32.mxu0 %vm623_vm8, %v604_v22  ;;  %v4684_v21 = vpack.c.bf16 %v949_v18, %v948_v17  ;;  %v5385_v22 = vld [vmem:[%s6823_s4] ss:$0 sm:$0xff] }
  0xba   : > { %4334 = vmatmul.mubr.msk.f32.gmra.mrb[4].mxu0 %vm623_vm8, %v605_v23  ;;  %v549_v25 = vpop.permute.xlu1 %548 }
  0xbb   : > { %v547_v62 = vpop.permute.xlu0 %546  ;;  %v599_v26 = vsel %vm493_vm5, %v5247_v24, %v549_v25  ;;  %v800_v24 = vld [vmem:[%s6822_s3 + $0x38] sm:$0xff]  ;;  %4685 = vmatprep.subr.bf16.mxu0 %v4684_v21 }
  0xbc   : > { %v598_v61 = vsel %vm493_vm5, %v5218_v63, %v547_v62  ;;  %v799_v63 = vld [vmem:[%s6822_s3 + $0x30] sm:$0xff]  ;;  %4687 = vmatpush3.bf16.msra.mxu0 %v4684_v21  ;;  %v951_v25 = vld [vmem:[%s6824_s5 + $0x18] sm:$0xff] }
  0xbd   : > { %v4676_v37 = vpack.c.bf16 %v800_v24, %v799_v63  ;;  %v950_v62 = vld [vmem:[%s6824_s5 + $0x10] sm:$0xff] }
  0xbe   : > { %v570_v29 = vpop.permute.xlu1 %569 }
  0xbf   : > { %v568_v27 = vpop.permute.xlu0 %567  ;;  %v603_v31 = vsel %vm498_vm6, %v599_v26, %v570_v29  ;;  %4677 = vmatprep.subr.bf16.mxu1 %v4676_v37 }
  0xc0   : > { %v602_v30 = vsel %vm498_vm6, %v598_v61, %v568_v27  ;;  %4679 = vmatpush3.bf16.msra.mxu1 %v4676_v37  ;;  %v4688_v27 = vpack.c.bf16 %v951_v25, %v950_v62 }
  0xc1   : > { %4681 = vmatprep.subr.bf16.mxu1 %v4680_v41 }
  0xc2   : > { %v591_v34 = vpop.permute.xlu1 %590  ;;  %4689 = vmatprep.subr.bf16.mxu0 %v4688_v27 }
  0xc3   : > { %v589_v32 = vpop.permute.xlu0 %588  ;;  %v607_v36 = vsel %vm503_vm7, %v603_v31, %v591_v34  ;;  %4691 = vmatpush3.bf16.msra.mxu0 %v4688_v27  ;;  %v953_v34 = vld [vmem:[%s6824_s5 + $0x28] sm:$0xff] }
  0xc4   : > { %v606_v35 = vsel %vm503_vm7, %v602_v30, %v589_v32  ;;  %4683 = vmatpush3.bf16.msra.mxu1 %v4680_v41  ;;  %v952_v32 = vld [vmem:[%s6824_s5 + $0x20] sm:$0xff] }
  0xc5   : > { %4336 = vmatprep.mubr.msk.f32.mxu0 %vm623_vm8, %v606_v35 }
  0xc6   : > { %4337 = vmatmul.mubr.msk.f32.gmra.mrb[6].mxu0 %vm623_vm8, %v607_v36  ;;  %v764_v52 = vpop.permute.xlu1 %763  ;;  %v4692_v36 = vpack.c.bf16 %v953_v34, %v952_v32 }
  0xc7   : > { %v762_v50 = vpop.permute.xlu0 %761 }
  0xc8   : > { %4693 = vmatprep.subr.bf16.mxu0 %v4692_v36 }
  0xc9   : > { %4695 = vmatpush3.bf16.msra.mxu0 %v4692_v36 }
  0xca   : > { %v768_v45 = vpop.permute.xlu1 %767 }
  0xcb   : > { %v766_v11 = vpop.permute.xlu0 %765 }
  0xce   : > { %v780_v19 = vpop.permute.xlu1 %779 }
  0xcf   : > { %v778_v1 = vpop.permute.xlu0 %777 }
  0xd2   : > { %v784_v12 = vpop.permute.xlu1 %783 }
  0xd3   : > { %v782_v28 = vpop.permute.xlu0 %781 }
 0x179   : > { %v4329_v43 = vpop.f32.mrb[0].mxu0 }
 0x17a   : > { %v720_v44 = vadd.f32 %v4329_v43, %v3971_v42  ;;  %v714_v46 = vpop.f32.mrb[1].mxu0 }
 0x17b   : > { %v715_v48 = vadd.f32 %v3971_v42, %v714_v46 }
 0x17c   : > { %v754_v49 = vmax.f32 %v720_v44, 0.0 }
 0x17d   : > { %v753_v51 = vmax.f32 %v715_v48, 0.0 }
 0x17e   : > { %v774_v10 = vsel %vm623_vm8, %v754_v49, %v764_v52 }
 0x17f   : > { %v773_v53 = vsel %vm623_vm8, %v753_v51, %v762_v50  ;;  %v954_v50 = vld [vmem:[%s6824_s5 + $0x30] sm:$0xff]  ;;  %v955_v51 = vld [vmem:[%s6824_s5 + $0x38] sm:$0xff] }
 0x180   : > { %4359 = vmatprep.mubr.msk.f32.mxu1 %vm810_vm9, %v773_v53 }
 0x181   : > { %v4332_v9 = vpop.f32.mrb[2].mxu0  ;;  %4360 = vmatmul.mubr.msk.f32.vlgmr.msra.gmra.mrb[0].mxu1 %vm810_vm9, %v774_v10 }
 0x182   : > { %v730_v54 = vadd.f32 %v4332_v9, %v3971_v42  ;;  %v724_v55 = vpop.f32.mrb[3].mxu0  ;;  %v956_v9 = vld [vmem:[%s6824_s5 + $0x40] sm:$0xff] }
 0x183   : > { %v725_v15 = vadd.f32 %v3971_v42, %v724_v55 }
 0x184   : > { %v756_v56 = vmax.f32 %v730_v54, 0.0  ;;  %v957_v54 = vld [vmem:[%s6824_s5 + $0x48] sm:$0xff] }
 0x185   : > { %v755_v38 = vmax.f32 %v725_v15, 0.0  ;;  %v4696_v15 = vpack.c.bf16 %v955_v51, %v954_v50 }
 0x186   : > { %v776_v57 = vsel %vm623_vm8, %v756_v56, %v768_v45  ;;  %v4700_v56 = vpack.c.bf16 %v957_v54, %v956_v9 }
 0x187   : > { %v775_v47 = vsel %vm623_vm8, %v755_v38, %v766_v11  ;;  %4697 = vmatprep.subr.bf16.mxu0 %v4696_v15 }
 0x188   : > { %4362 = vmatprep.mubr.msk.f32.mxu1 %vm810_vm9, %v775_v47  ;;  %4699 = vmatpush3.bf16.msra.mxu0 %v4696_v15 }
 0x189   : > { %4363 = vmatmul.mubr.msk.f32.gmra.mrb[2].mxu1 %vm810_vm9, %v776_v57  ;;  %4701 = vmatprep.subr.bf16.mxu0 %v4700_v56 }
 0x18c   : > { %4703 = vmatpush3.bf16.msra.mxu0 %v4700_v56 }
 0x18d   : > { %v4335_v58 = vpop.f32.mrb[4].mxu0 }
 0x18e   : > { %v740_v59 = vadd.f32 %v4335_v58, %v3971_v42  ;;  %v734_v60 = vpop.f32.mrb[5].mxu0 }
 0x18f   : > { %v735_v0 = vadd.f32 %v3971_v42, %v734_v60 }
 0x190   : > { %v758_v33 = vmax.f32 %v740_v59, 0.0 }
 0x191   : > { %v757_v2 = vmax.f32 %v735_v0, 0.0 }
 0x192   : > { %v790_v3 = vsel %vm623_vm8, %v758_v33, %v780_v19 }
 0x193   : > { %v789_v4 = vsel %vm623_vm8, %v757_v2, %v778_v1 }
 0x194   : > { %4365 = vmatprep.mubr.msk.f32.mxu1 %vm810_vm9, %v789_v4 }
 0x195   : > { %4366 = vmatmul.mubr.msk.f32.gmra.mrb[4].mxu1 %vm810_vm9, %v790_v3 }
 0x199   : > { %v4338_v5 = vpop.f32.mrb[6].mxu0 }
 0x19a   : > { %v750_v6 = vadd.f32 %v4338_v5, %v3971_v42  ;;  %v744_v7 = vpop.f32.mrb[7].mxu0 }
 0x19b   : > { %v745_v8 = vadd.f32 %v3971_v42, %v744_v7 }
 0x19c   : > { %v760_v20 = vmax.f32 %v750_v6, 0.0 }
 0x19d   : > { %v759_v13 = vmax.f32 %v745_v8, 0.0 }
 0x19e   : > { %v792_v14 = vsel %vm623_vm8, %v760_v20, %v784_v12 }
 0x19f   : > { %v791_v16 = vsel %vm623_vm8, %v759_v13, %v782_v28 }
 0x1a0   : > { %4368 = vmatprep.mubr.msk.f32.mxu1 %vm810_vm9, %v791_v16 }
 0x1a1   : > { %4369 = vmatmul.mubr.msk.f32.gmra.mrb[6].mxu1 %vm810_vm9, %v792_v14 }
 0x254   : > { %v4361_v23 = vpop.f32.mrb[0].mxu1 }
 0x255   : > { %v5394_v61 = vadd.f32 %v4361_v23, %v5385_v22  ;;  %v901_v26 = vpop.f32.mrb[1].mxu1 }
 0x256   : > { %v902_v29 = vadd.f32 %v5385_v22, %v901_v26 }
 0x257   : > { %v941_v30 = vmax.f32 %v5394_v61, 0.0  ;;  %v4017_v61 = vld [vmem:[%s6824_s5 + $0xa0] sm:$0xff] }
 0x258   : > { %v5398_v31 = vmax.f32 %v902_v29, 0.0 }
 0x259   : > { %v978_v35 = vrot.slane %v941_v30, 6 }
 0x25a   : > { %v972_v63 = vrot.slane %v5398_v31, 2  ;;  %v977_v24 = vrot.slane %v5398_v31, 6 }
 0x25c   : > { %v4364_v37 = vpop.f32.mrb[2].mxu1  ;;  %v993_v39 = vsel %vm421_vm1, %v972_v63, %v5398_v31  ;;  %v5413_v41 = vsel %vm406_vm0, %v977_v24, %v978_v35 }
 0x25d   : > { %v911_v40 = vpop.f32.mrb[3].mxu1  ;;  %v5416_v42 = vsel %vm406_vm0, %v993_v39, %v977_v24  ;;  %v1001_v44 = vrot.slane %v5413_v41, 1  ;;  %v917_v48 = vadd.f32 %v4364_v37, %v5385_v22  ;;  %v1022_v10 = vrot.slane %v5413_v41, 2 }
 0x25e   : > { %v5419_v43 = vadd.f32 %v5385_v22, %v911_v40  ;;  %v1000_v46 = vrot.slane %v5416_v42, 1  ;;  %v1021_v53 = vrot.slane %v5416_v42, 2  ;;  %v1042_v57 = vrot.slane %v5416_v42, 3 }
 0x25f   : > { %v5443_v11 = vmax.f32 %v917_v48, 0.0  ;;  %v1043_v58 = vrot.slane %v5413_v41, 3  ;;  %v1064_v3 = vrot.slane %v5416_v42, 4  ;;  %v1065_v4 = vrot.slane %v5413_v41, 4 }
 0x260   : > { %v942_v49 = vmax.f32 %v5419_v43, 0.0  ;;  %v1002_v52 = vsel %vm427_vm3, %v1000_v46, %v1001_v44  ;;  %v1023_v45 = vsel %vm449_vm2, %v1021_v53, %v1022_v10 }
 0x261   : > { %1009 = vrot.lane.b32.xlu0 %v1002_v52, %s6837_s29  ;;  %v982_v0 = vrot.slane %v5443_v11, 6  ;;  %v989_v33 = vrot.slane %v5443_v11, 4  ;;  %v1044_v2 = vsel %vm471_vm4, %v1042_v57, %v1043_v58  ;;  %v991_v8 = vrot.slane %v5443_v11, 2 }
 0x262   : > { %v980_v55 = vrot.slane %v942_v49, 6  ;;  %v1066_v20 = vsel %vm1063_vm10, %v1064_v3, %v1065_v4 }
 0x263   : > { %v995_v13 = vsel %vm406_vm0, %v982_v0, %v989_v33 }
 0x264   : > { %v5446_v38 = vsel %vm406_vm0, %v978_v35, %v980_v55  ;;  %v5467_v12 = vsel %vm406_vm0, %v980_v55, %v982_v0  ;;  %v997_v21 = vsel %vm996_vm11, %v995_v13, %v991_v8 }
 0x265   : > { %v1003_v47 = vrot.slane %v5446_v38, 1  ;;  %1030 = vrot.lane.b32.xlu0 %v1023_v45, %s6835_s26  ;;  %v1024_v60 = vrot.slane %v5446_v38, 2  ;;  %v1045_v7 = vrot.slane %v5446_v38, 3  ;;  %v1067_v28 = vrot.slane %v5446_v38, 4 }
 0x266   : > { %v1005_v18 = vrot.slane %v5467_v12, 1  ;;  %v1026_v62 = vrot.slane %v5467_v12, 2  ;;  %v1007_v29 = vrot.slane %v997_v21, 1  ;;  %v1047_v36 = vrot.slane %v5467_v12, 3 }
 0x267   : > { %v1004_v59 = vsel %vm427_vm3, %v1001_v44, %v1003_v47  ;;  %v1025_v6 = vsel %vm449_vm2, %v1022_v10, %v1024_v60  ;;  %v1046_v17 = vsel %vm471_vm4, %v1043_v58, %v1045_v7  ;;  %v1068_v23 = vsel %vm1063_vm10, %v1065_v4, %v1067_v28 }
 0x268   : > { %1011 = vrot.lane.b32.xlu1 %v1004_v59, %s6837_s29  ;;  %v4367_v19 = vpop.f32.mrb[4].mxu1  ;;  %v1006_v27 = vsel %vm427_vm3, %v1003_v47, %v1005_v18  ;;  %v1027_v35 = vsel %vm449_vm2, %v1024_v60, %v1026_v62  ;;  %v1008_v40 = vsel %vm427_vm3, %v1005_v18, %v1007_v29  ;;  %v1028_v44 = vrot.slane %v997_v21, 2 }
 0x269   : > { %v921_v1 = vpop.f32.mrb[5].mxu1  ;;  %1051 = vrot.lane.b32.xlu0 %v1044_v2, %s6848_s22  ;;  %v5474_v14 = vadd.f32 %v4367_v19, %v5385_v22  ;;  %v1048_v48 = vsel %vm471_vm4, %v1045_v7, %v1047_v36  ;;  %v1069_v50 = vrot.slane %v5467_v12, 4  ;;  %v1049_v10 = vrot.slane %v997_v21, 3 }
 0x26a   : > { %v922_v5 = vadd.f32 %v5385_v22, %v921_v1  ;;  %v1029_v53 = vsel %vm449_vm2, %v1026_v62, %v1028_v44  ;;  %v1071_v45 = vrot.slane %v997_v21, 4 }
 0x26b   : > { %v945_v25 = vmax.f32 %v5474_v14, 0.0  ;;  %v1070_v54 = vsel %vm1063_vm10, %v1067_v28, %v1069_v50  ;;  %v1050_v56 = vsel %vm471_vm4, %v1047_v36, %v1049_v10 }
 0x26c   : > { %1032 = vrot.lane.b32.xlu1 %v1025_v6, %s6835_s26  ;;  %v5477_v16 = vmax.f32 %v922_v5, 0.0  ;;  %v1072_v0 = vsel %vm1063_vm10, %v1069_v50, %v1071_v45 }
 0x26d   : > { %1073 = vrot.lane.b32.xlu0 %v1066_v20, %s6849_s15  ;;  %v1108_v63 = vrot.slane %v945_v25, 6 }
 0x26e   : > { %v1102_v26 = vrot.slane %v5477_v16, 2  ;;  %v1107_v24 = vrot.slane %v5477_v16, 6 }
 0x270   : > { %1053 = vrot.lane.b32.xlu1 %v1046_v17, %s6848_s22  ;;  %v1123_v39 = vsel %vm421_vm1, %v1102_v26, %v5477_v16  ;;  %v5511_v52 = vsel %vm406_vm0, %v1107_v24, %v1108_v63 }
 0x271   : > { %1075 = vrot.lane.b32.xlu0 %v1068_v23, %s6849_s15  ;;  %v5507_v51 = vsel %vm406_vm0, %v1123_v39, %v1107_v24  ;;  %v1130_v15 = vrot.slane %v5511_v52, 1  ;;  %v1151_v60 = vrot.slane %v5511_v52, 2  ;;  %v1172_v2 = vrot.slane %v5511_v52, 3 }
 0x272   : > { %v1129_v55 = vrot.slane %v5507_v51, 1  ;;  %v1150_v59 = vrot.slane %v5507_v51, 2  ;;  %v1171_v1 = vrot.slane %v5507_v51, 3  ;;  %v1192_v8 = vrot.slane %v5507_v51, 4 }
 0x273   : > { %v1193_v20 = vrot.slane %v5511_v52, 4 }
 0x274   : > { %1013 = vrot.lane.b32.xlu1 %v1006_v27, %s6837_s29  ;;  %v4370_v32 = vpop.f32.mrb[6].mxu1  ;;  %v1131_v58 = vsel %vm427_vm3, %v1129_v55, %v1130_v15  ;;  %v1173_v7 = vsel %vm471_vm4, %v1171_v1, %v1172_v2 }
 0x275   : > { %v931_v34 = vpop.f32.mrb[7].mxu1  ;;  %1034 = vrot.lane.b32.xlu0 %v1027_v35, %s6835_s26  ;;  %v937_v47 = vadd.f32 %v4370_v32, %v5385_v22  ;;  %v1194_v21 = vsel %vm1063_vm10, %v1192_v8, %v1193_v20 }
 0x276   : > { %v5496_v37 = vadd.f32 %v5385_v22, %v931_v34  ;;  %v1152_v22 = vsel %vm449_vm2, %v1150_v59, %v1151_v60 }
 0x277   : > { %v5533_v33 = vmax.f32 %v937_v47, 0.0 }
 0x278   : > { %v946_v46 = vmax.f32 %v5496_v37, 0.0  ;;  %1015 = vrot.lane.b32.xlu1 %v1008_v40, %s6837_s29 }
 0x279   : > { %1055 = vrot.lane.b32.xlu0 %v1048_v48, %s6848_s22  ;;  %v1112_v5 = vrot.slane %v5533_v33, 6  ;;  %v1119_v6 = vrot.slane %v5533_v33, 4  ;;  %v1121_v17 = vrot.slane %v5533_v33, 2 }
 0x27a   : > { %v1110_v9 = vrot.slane %v946_v46, 6 }
 0x27b   : > { %v1125_v62 = vsel %vm406_vm0, %v1112_v5, %v1119_v6 }
 0x27c   : > { %1036 = vrot.lane.b32.xlu1 %v1029_v53, %s6835_s26  ;;  %v5524_v57 = vsel %vm406_vm0, %v1108_v63, %v1110_v9  ;;  %v5553_v18 = vsel %vm406_vm0, %v1110_v9, %v1112_v5  ;;  %v1126_v29 = vsel %vm996_vm11, %v1125_v62, %v1121_v17 }
 0x27d   : > { %1077 = vrot.lane.b32.xlu0 %v1070_v54, %s6849_s15  ;;  %v1132_v19 = vrot.slane %v5524_v57, 1  ;;  %v1153_v4 = vrot.slane %v5524_v57, 2  ;;  %v1174_v13 = vrot.slane %v5524_v57, 3  ;;  %v1195_v23 = vrot.slane %v5524_v57, 4 }
 0x27e   : > { %v1134_v27 = vrot.slane %v5553_v18, 1  ;;  %v1155_v34 = vrot.slane %v5553_v18, 2  ;;  %v1136_v36 = vrot.slane %v1126_v29, 1  ;;  %v1176_v24 = vrot.slane %v5553_v18, 3 }
 0x27f   : > { %v1133_v3 = vsel %vm427_vm3, %v1130_v15, %v1132_v19  ;;  %v1154_v28 = vsel %vm449_vm2, %v1151_v60, %v1153_v4  ;;  %v1175_v26 = vsel %vm471_vm4, %v1172_v2, %v1174_v13  ;;  %v1196_v32 = vsel %vm1063_vm10, %v1193_v20, %v1195_v23 }
 0x280   : > { %1057 = vrot.lane.b32.xlu1 %v1050_v56, %s6848_s22  ;;  %v1135_v35 = vsel %vm427_vm3, %v1132_v19, %v1134_v27  ;;  %v1156_v63 = vsel %vm449_vm2, %v1153_v4, %v1155_v34  ;;  %v1137_v39 = vsel %vm427_vm3, %v1134_v27, %v1136_v36  ;;  %v1157_v40 = vrot.slane %v1126_v29, 2 }
 0x281   : > { %1138 = vrot.lane.b32.xlu0 %v1131_v58, %s6837_s29  ;;  %v1177_v44 = vsel %vm471_vm4, %v1174_v13, %v1176_v24  ;;  %v1197_v48 = vrot.slane %v5553_v18, 4  ;;  %v1178_v53 = vrot.slane %v1126_v29, 3  ;;  %v1199_v54 = vrot.slane %v1126_v29, 4 }
 0x282   : > { %v1158_v50 = vsel %vm449_vm2, %v1155_v34, %v1157_v40 }
 0x283   : > { %v1198_v10 = vsel %vm1063_vm10, %v1195_v23, %v1197_v48  ;;  %v1179_v9 = vsel %vm471_vm4, %v1176_v24, %v1178_v53  ;;  %v1200_v55 = vsel %vm1063_vm10, %v1197_v48, %v1199_v54 }
 0x284   : > { %1079 = vrot.lane.b32.xlu1 %v1072_v0, %s6849_s15 }
 0x285   : > { %1159 = vrot.lane.b32.xlu0 %v1152_v22, %s6835_s26 }
 0x288   : > { %1140 = vrot.lane.b32.xlu1 %v1133_v3, %s6837_s29 }
 0x289   : > { %1180 = vrot.lane.b32.xlu0 %v1173_v7, %s6848_s22 }
 0x28c   : > { %1161 = vrot.lane.b32.xlu1 %v1154_v28, %s6835_s26 }
 0x28d   : > { %1201 = vrot.lane.b32.xlu0 %v1194_v21, %s6849_s15 }
 0x290   : > { %1182 = vrot.lane.b32.xlu1 %v1175_v26, %s6848_s22 }
 0x291   : > { %1203 = vrot.lane.b32.xlu0 %v1196_v32, %s6849_s15 }
 0x294   : > { %1142 = vrot.lane.b32.xlu1 %v1135_v35, %s6837_s29 }
 0x295   : > { %1163 = vrot.lane.b32.xlu0 %v1156_v63, %s6835_s26 }
 0x298   : > { %1144 = vrot.lane.b32.xlu1 %v1137_v39, %s6837_s29 }
 0x299   : > { %1184 = vrot.lane.b32.xlu0 %v1177_v44, %s6848_s22 }
 0x29c   : > { %1165 = vrot.lane.b32.xlu1 %v1158_v50, %s6835_s26 }
 0x29d   : > { %1205 = vrot.lane.b32.xlu0 %v1198_v10, %s6849_s15 }
 0x2a0   : > { %1186 = vrot.lane.b32.xlu1 %v1179_v9, %s6848_s22 }
 0x2a4   : > { %1207 = vrot.lane.b32.xlu1 %v1200_v55, %s6849_s15 }
 0x2d3   : > { %v1010_v15 = vpop.permute.xlu0 %1009 }
 0x2d4   : > { %v1085_v58 = vsel %vm493_vm5, %v5416_v42, %v1010_v15 }
 0x2d7   : > { %v1031_v56 = vpop.permute.xlu0 %1030 }
 0x2d8   : > { %v1089_v60 = vsel %vm498_vm6, %v1085_v58, %v1031_v56 }
 0x2da   : > { %v1012_v45 = vpop.permute.xlu1 %1011 }
 0x2db   : > { %v1052_v47 = vpop.permute.xlu0 %1051  ;;  %v1086_v22 = vsel %vm493_vm5, %v5413_v41, %v1012_v45 }
 0x2dc   : > { %v1093_v0 = vsel %vm503_vm7, %v1089_v60, %v1052_v47 }
 0x2de   : > { %v1033_v59 = vpop.permute.xlu1 %1032 }
 0x2df   : > { %v1074_v19 = vpop.permute.xlu0 %1073  ;;  %v1090_v2 = vsel %vm498_vm6, %v1086_v22, %v1033_v59 }
 0x2e0   : > { %v1097_v1 = vsel %vm623_vm8, %v1093_v0, %v1074_v19 }
 0x2e1   : > { %4391 = vmatprep.mubr.msk.f32.mxu0 %vm810_vm9, %v1097_v1 }
 0x2e2   : > { %v1054_v3 = vpop.permute.xlu1 %1053 }
 0x2e3   : > { %v1094_v4 = vsel %vm503_vm7, %v1090_v2, %v1054_v3  ;;  %v1076_v5 = vpop.permute.xlu0 %1075 }
 0x2e4   : > { %v1098_v42 = vsel %vm623_vm8, %v1094_v4, %v1076_v5  ;;  %v5636_v4 = vld [vmem:[%s6825_s6] ss:$0 sm:$0xff] }
 0x2e5   : > { %4392 = vmatmul.mubr.msk.f32.vlgmr.msra.gmra.mrb[8].mxu0 %vm810_vm9, %v1098_v42 }
 0x2e6   : > { %v1014_v6 = vpop.permute.xlu1 %1013 }
 0x2e7   : > { %v1035_v7 = vpop.permute.xlu0 %1034  ;;  %v1087_v41 = vsel %vm493_vm5, %v5446_v38, %v1014_v6 }
 0x2e8   : > { %v1091_v13 = vsel %vm498_vm6, %v1087_v41, %v1035_v7  ;;  %v3989_v41 = vld [vmem:[%s6824_s5 + $0x50] sm:$0xff] }
 0x2ea   : > { %v1016_v8 = vpop.permute.xlu1 %1015 }
 0x2eb   : > { %v1056_v20 = vpop.permute.xlu0 %1055  ;;  %v1088_v26 = vsel %vm493_vm5, %v5467_v12, %v1016_v8 }
 0x2ec   : > { %v1095_v17 = vsel %vm503_vm7, %v1091_v13, %v1056_v20  ;;  %v3990_v20 = vld [vmem:[%s6824_s5 + $0x58] sm:$0xff] }
 0x2ed   : > { %v4704_v13 = vpack.c.bf16 %v3990_v20, %v3989_v41 }
 0x2ee   : > { %v1037_v28 = vpop.permute.xlu1 %1036 }
 0x2ef   : > { %v1078_v21 = vpop.permute.xlu0 %1077  ;;  %v1092_v29 = vsel %vm498_vm6, %v1088_v26, %v1037_v28  ;;  %4705 = vmatprep.subr.bf16.mxu1 %v4704_v13  ;;  %v3991_v26 = vld [vmem:[%s6824_s5 + $0x60] sm:$0xff] }
 0x2f0   : > { %v1099_v23 = vsel %vm623_vm8, %v1095_v17, %v1078_v21  ;;  %4707 = vmatpush3.bf16.msra.mxu1 %v4704_v13 }
 0x2f1   : > { %4394 = vmatprep.mubr.msk.f32.mxu0 %vm810_vm9, %v1099_v23 }
 0x2f2   : > { %v1058_v62 = vpop.permute.xlu1 %1057 }
 0x2f3   : > { %v1139_v27 = vpop.permute.xlu0 %1138  ;;  %v1096_v38 = vsel %vm503_vm7, %v1092_v29, %v1058_v62 }
 0x2f4   : > { %v1213_v24 = vsel %vm493_vm5, %v5507_v51, %v1139_v27  ;;  %v3992_v27 = vld [vmem:[%s6824_s5 + $0x68] sm:$0xff] }
 0x2f6   : > { %v1080_v32 = vpop.permute.xlu1 %1079 }
 0x2f7   : > { %v1100_v34 = vsel %vm623_vm8, %v1096_v38, %v1080_v32  ;;  %v1160_v35 = vpop.permute.xlu0 %1159 }
 0x2f8   : > { %4395 = vmatmul.mubr.msk.f32.gmra.mrb[10].mxu0 %vm810_vm9, %v1100_v34  ;;  %v1217_v40 = vsel %vm498_vm6, %v1213_v24, %v1160_v35  ;;  %v4708_v34 = vpack.c.bf16 %v3992_v27, %v3991_v26  ;;  %v3993_v24 = vld [vmem:[%s6824_s5 + $0x70] sm:$0xff] }
 0x2fa   : > { %v1141_v36 = vpop.permute.xlu1 %1140  ;;  %4709 = vmatprep.subr.bf16.mxu1 %v4708_v34 }
 0x2fb   : > { %v1181_v63 = vpop.permute.xlu0 %1180  ;;  %v1214_v48 = vsel %vm493_vm5, %v5511_v52, %v1141_v36  ;;  %4711 = vmatpush3.bf16.msra.mxu1 %v4708_v34 }
 0x2fc   : > { %v1221_v12 = vsel %vm503_vm7, %v1217_v40, %v1181_v63 }
 0x2fe   : > { %v1162_v39 = vpop.permute.xlu1 %1161 }
 0x2ff   : > { %v1202_v44 = vpop.permute.xlu0 %1201  ;;  %v1218_v53 = vsel %vm498_vm6, %v1214_v48, %v1162_v39  ;;  %v3994_v39 = vld [vmem:[%s6824_s5 + $0x78] sm:$0xff] }
 0x300   : > { %v1225_v50 = vsel %vm623_vm8, %v1221_v12, %v1202_v44  ;;  %v4712_v40 = vpack.c.bf16 %v3994_v39, %v3993_v24 }
 0x301   : > { %4397 = vmatprep.mubr.msk.f32.mxu0 %vm810_vm9, %v1225_v50  ;;  %v3995_v50 = vld [vmem:[%s6824_s5 + $0x80] sm:$0xff] }
 0x302   : > { %v1183_v10 = vpop.permute.xlu1 %1182  ;;  %4713 = vmatprep.subr.bf16.mxu1 %v4712_v40 }
 0x303   : > { %v1222_v9 = vsel %vm503_vm7, %v1218_v53, %v1183_v10  ;;  %v1204_v54 = vpop.permute.xlu0 %1203  ;;  %v3996_v53 = vld [vmem:[%s6824_s5 + $0x88] sm:$0xff]  ;;  %4715 = vmatpush3.bf16.msra.mxu1 %v4712_v40 }
 0x304   : > { %v1226_v51 = vsel %vm623_vm8, %v1222_v9, %v1204_v54  ;;  %v4716_v9 = vpack.c.bf16 %v3996_v53, %v3995_v50 }
 0x305   : > { %4398 = vmatmul.mubr.msk.f32.gmra.mrb[12].mxu0 %vm810_vm9, %v1226_v51 }
 0x306   : > { %v1143_v55 = vpop.permute.xlu1 %1142  ;;  %4717 = vmatprep.subr.bf16.mxu1 %v4716_v9 }
 0x307   : > { %v1164_v15 = vpop.permute.xlu0 %1163  ;;  %v1215_v52 = vsel %vm493_vm5, %v5524_v57, %v1143_v55  ;;  %4719 = vmatpush3.bf16.msra.mxu1 %v4716_v9 }
 0x308   : > { %v1219_v58 = vsel %vm498_vm6, %v1215_v52, %v1164_v15 }
 0x30a   : > { %v1145_v56 = vpop.permute.xlu1 %1144 }
 0x30b   : > { %v1185_v45 = vpop.permute.xlu0 %1184  ;;  %v1216_v22 = vsel %vm493_vm5, %v5553_v18, %v1145_v56 }
 0x30c   : > { %v1223_v59 = vsel %vm503_vm7, %v1219_v58, %v1185_v45  ;;  %v3998_v58 = vld [vmem:[%s6824_s5 + $0x98] sm:$0xff] }
 0x30e   : > { %v1166_v47 = vpop.permute.xlu1 %1165 }
 0x30f   : > { %v1206_v60 = vpop.permute.xlu0 %1205  ;;  %v1220_v1 = vsel %vm498_vm6, %v1216_v22, %v1166_v47  ;;  %v3997_v47 = vld [vmem:[%s6824_s5 + $0x90] sm:$0xff] }
 0x310   : > { %v1227_v0 = vsel %vm623_vm8, %v1223_v59, %v1206_v60  ;;  %v4720_v60 = vpack.c.bf16 %v3998_v58, %v3997_v47 }
 0x311   : > { %4400 = vmatprep.mubr.msk.f32.mxu0 %vm810_vm9, %v1227_v0 }
 0x312   : > { %v1187_v19 = vpop.permute.xlu1 %1186  ;;  %4721 = vmatprep.subr.bf16.mxu1 %v4720_v60 }
 0x313   : > { %v1224_v2 = vsel %vm503_vm7, %v1220_v1, %v1187_v19  ;;  %4723 = vmatpush3.bf16.msra.mxu1 %v4720_v60 }
 0x316   : > { %v1208_v57 = vpop.permute.xlu1 %1207 }
 0x317   : > { %v1228_v3 = vsel %vm623_vm8, %v1224_v2, %v1208_v57 }
 0x318   : > { %4401 = vmatmul.mubr.msk.f32.gmra.mrb[14].mxu0 %vm810_vm9, %v1228_v3 }
 0x3b8   : > { %v4393_v5 = vpop.f32.mrb[8].mxu0 }
 0x3b9   : > { %v1329_v42 = vadd.f32 %v4393_v5, %v5636_v4  ;;  %v1323_v6 = vpop.f32.mrb[9].mxu0 }
 0x3ba   : > { %v1324_v18 = vadd.f32 %v5636_v4, %v1323_v6 }
 0x3bb   : > { %v1363_v7 = vmax.f32 %v1329_v42, 0.0 }
 0x3bc   : > { %v1362_v8 = vmax.f32 %v1324_v18, 0.0 }
 0x3bd   : > { %v1377_v28 = vrot.slane %v1363_v7, 6 }
 0x3be   : > { %v1371_v17 = vrot.slane %v1362_v8, 2  ;;  %v1376_v21 = vrot.slane %v1362_v8, 6 }
 0x3c0   : > { %v5647_v23 = vsel %vm406_vm0, %v1376_v21, %v1377_v28  ;;  %v1392_v62 = vsel %vm421_vm1, %v1371_v17, %v1362_v8 }
 0x3c1   : > { %v5657_v29 = vsel %vm406_vm0, %v1392_v62, %v1376_v21  ;;  %v1399_v38 = vrot.slane %v5647_v23, 1  ;;  %v1420_v63 = vrot.slane %v5647_v23, 2  ;;  %v1441_v48 = vrot.slane %v5647_v23, 3 }
 0x3c2   : > { %v1398_v32 = vrot.slane %v5657_v29, 1  ;;  %v1419_v36 = vrot.slane %v5657_v29, 2  ;;  %v1440_v44 = vrot.slane %v5657_v29, 3  ;;  %v1461_v56 = vrot.slane %v5657_v29, 4 }
 0x3c3   : > { %v1462_v52 = vrot.slane %v5647_v23, 4 }
 0x3c4   : > { %v1400_v35 = vsel %vm427_vm3, %v1398_v32, %v1399_v38  ;;  %v1421_v12 = vsel %vm449_vm2, %v1419_v36, %v1420_v63  ;;  %v1442_v15 = vsel %vm471_vm4, %v1440_v44, %v1441_v48 }
 0x3c5   : > { %1407 = vrot.lane.b32.xlu0 %v1400_v35, %s6837_s29  ;;  %v1463_v22 = vsel %vm1063_vm10, %v1461_v56, %v1462_v52 }
 0x3c9   : > { %1428 = vrot.lane.b32.xlu0 %v1421_v12, %s6835_s26 }
 0x3cb   : > { %v4396_v10 = vpop.f32.mrb[10].mxu0 }
 0x3cc   : > { %v1339_v54 = vadd.f32 %v4396_v10, %v5636_v4  ;;  %v1333_v51 = vpop.f32.mrb[11].mxu0 }
 0x3cd   : > { %v1334_v55 = vadd.f32 %v5636_v4, %v1333_v51  ;;  %1449 = vrot.lane.b32.xlu0 %v1442_v15, %s6848_s22 }
 0x3ce   : > { %v1365_v45 = vmax.f32 %v1339_v54, 0.0 }
 0x3cf   : > { %v1364_v59 = vmax.f32 %v1334_v55, 0.0 }
 0x3d0   : > { %v1381_v0 = vrot.slane %v1365_v45, 6  ;;  %v1388_v7 = vrot.slane %v1365_v45, 4  ;;  %v1390_v62 = vrot.slane %v1365_v45, 2 }
 0x3d1   : > { %v1379_v19 = vrot.slane %v1364_v59, 6  ;;  %1470 = vrot.lane.b32.xlu0 %v1463_v22, %s6849_s15 }
 0x3d2   : > { %v1394_v27 = vsel %vm406_vm0, %v1381_v0, %v1388_v7 }
 0x3d3   : > { %v5696_v1 = vsel %vm406_vm0, %v1377_v28, %v1379_v19  ;;  %v5699_v2 = vsel %vm406_vm0, %v1379_v19, %v1381_v0  ;;  %v1395_v39 = vsel %vm996_vm11, %v1394_v27, %v1390_v62 }
 0x3d4   : > { %v1464_v57 = vrot.slane %v5696_v1, 4  ;;  %v1401_v3 = vrot.slane %v5696_v1, 1  ;;  %v1422_v6 = vrot.slane %v5696_v1, 2  ;;  %v1424_v18 = vrot.slane %v5699_v2, 2 }
 0x3d5   : > { %v1443_v41 = vrot.slane %v5696_v1, 3  ;;  %v1445_v21 = vrot.slane %v5699_v2, 3  ;;  %v1466_v34 = vrot.slane %v5699_v2, 4  ;;  %v1403_v24 = vrot.slane %v5699_v2, 1 }
 0x3d6   : > { %v1465_v5 = vsel %vm1063_vm10, %v1462_v52, %v1464_v57  ;;  %v1402_v42 = vsel %vm427_vm3, %v1399_v38, %v1401_v3  ;;  %v1425_v13 = vsel %vm449_vm2, %v1422_v6, %v1424_v18  ;;  %v1423_v17 = vsel %vm449_vm2, %v1420_v63, %v1422_v6 }
 0x3d7   : > { %1472 = vrot.lane.b32.xlu0 %v1465_v5, %s6849_s15  ;;  %1409 = vrot.lane.b32.xlu1 %v1402_v42, %s6837_s29  ;;  %v1446_v36 = vsel %vm471_vm4, %v1443_v41, %v1445_v21  ;;  %v1444_v63 = vsel %vm471_vm4, %v1441_v48, %v1443_v41  ;;  %v1467_v53 = vsel %vm1063_vm10, %v1464_v57, %v1466_v34  ;;  %v1405_v9 = vrot.slane %v1395_v39, 1 }
 0x3d8   : > { %v4399_v8 = vpop.f32.mrb[12].mxu0  ;;  %v1404_v48 = vsel %vm427_vm3, %v1401_v3, %v1403_v24  ;;  %v1426_v56 = vrot.slane %v1395_v39, 2  ;;  %v1447_v47 = vrot.slane %v1395_v39, 3  ;;  %v1468_v42 = vrot.slane %v1395_v39, 4 }
 0x3d9   : > { %v1349_v20 = vadd.f32 %v4399_v8, %v5636_v4  ;;  %v1343_v28 = vpop.f32.mrb[13].mxu0  ;;  %v1406_v15 = vsel %vm427_vm3, %v1403_v24, %v1405_v9 }
 0x3da   : > { %v1344_v26 = vadd.f32 %v5636_v4, %v1343_v28  ;;  %v1427_v58 = vsel %vm449_vm2, %v1424_v18, %v1426_v56  ;;  %v1448_v5 = vsel %vm471_vm4, %v1445_v21, %v1447_v47 }
 0x3db   : > { %1432 = vrot.lane.b32.xlu0 %v1425_v13, %s6835_s26  ;;  %1430 = vrot.lane.b32.xlu1 %v1423_v17, %s6835_s26  ;;  %v1367_v38 = vmax.f32 %v1349_v20, 0.0  ;;  %v1469_v13 = vsel %vm1063_vm10, %v1466_v34, %v1468_v42 }
 0x3dc   : > { %v1366_v32 = vmax.f32 %v1344_v26, 0.0 }
 0x3dd   : > { %v1505_v35 = vrot.slane %v1367_v38, 6 }
 0x3de   : > { %v1499_v40 = vrot.slane %v1366_v32, 2  ;;  %v1504_v12 = vrot.slane %v1366_v32, 6 }
 0x3df   : > { %1453 = vrot.lane.b32.xlu0 %v1446_v36, %s6848_s22  ;;  %1451 = vrot.lane.b32.xlu1 %v1444_v63, %s6848_s22 }
 0x3e0   : > { %v5726_v44 = vsel %vm406_vm0, %v1504_v12, %v1505_v35  ;;  %v1520_v50 = vsel %vm421_vm1, %v1499_v40, %v1366_v32 }
 0x3e1   : > { %v5731_v10 = vsel %vm406_vm0, %v1520_v50, %v1504_v12  ;;  %v1527_v54 = vrot.slane %v5726_v44, 1  ;;  %v1548_v45 = vrot.slane %v5726_v44, 2  ;;  %v1569_v0 = vrot.slane %v5726_v44, 3 }
 0x3e2   : > { %v1526_v51 = vrot.slane %v5731_v10, 1  ;;  %v1547_v52 = vrot.slane %v5731_v10, 2  ;;  %v1568_v60 = vrot.slane %v5731_v10, 3  ;;  %v1589_v7 = vrot.slane %v5731_v10, 4 }
 0x3e3   : > { %1474 = vrot.lane.b32.xlu0 %v1467_v53, %s6849_s15  ;;  %1411 = vrot.lane.b32.xlu1 %v1404_v48, %s6837_s29  ;;  %v1590_v8 = vrot.slane %v5726_v44, 4 }
 0x3e4   : > { %v1528_v55 = vsel %vm427_vm3, %v1526_v51, %v1527_v54  ;;  %v1549_v59 = vsel %vm449_vm2, %v1547_v52, %v1548_v45  ;;  %v1570_v18 = vsel %vm471_vm4, %v1568_v60, %v1569_v0 }
 0x3e7   : > { %1413 = vrot.lane.b32.xlu1 %v1406_v15, %s6837_s29  ;;  %1535 = vrot.lane.b32.xlu0 %v1528_v55, %s6837_s29 }
 0x3eb   : > { %1434 = vrot.lane.b32.xlu1 %v1427_v58, %s6835_s26  ;;  %1556 = vrot.lane.b32.xlu0 %v1549_v59, %s6835_s26  ;;  %v4402_v19 = vpop.f32.mrb[14].mxu0 }
 0x3ec   : > { %v1359_v22 = vadd.f32 %v4402_v19, %v5636_v4  ;;  %v1353_v57 = vpop.f32.mrb[15].mxu0 }
 0x3ed   : > { %v1354_v3 = vadd.f32 %v5636_v4, %v1353_v57  ;;  %v1591_v4 = vsel %vm1063_vm10, %v1589_v7, %v1590_v8 }
 0x3ee   : > { %v1369_v6 = vmax.f32 %v1359_v22, 0.0 }
 0x3ef   : > { %v1368_v41 = vmax.f32 %v1354_v3, 0.0  ;;  %1455 = vrot.lane.b32.xlu1 %v1448_v5, %s6848_s22  ;;  %1577 = vrot.lane.b32.xlu0 %v1570_v18, %s6848_s22 }
 0x3f0   : > { %v1509_v20 = vrot.slane %v1369_v6, 6  ;;  %v1518_v40 = vrot.slane %v1369_v6, 2 }
 0x3f1   : > { %v1507_v28 = vrot.slane %v1368_v41, 6 }
 0x3f3   : > { %v5761_v17 = vsel %vm406_vm0, %v1505_v35, %v1507_v28  ;;  %v5764_v21 = vsel %vm406_vm0, %v1507_v28, %v1509_v20  ;;  %1476 = vrot.lane.b32.xlu1 %v1469_v13, %s6849_s15  ;;  %1598 = vrot.lane.b32.xlu0 %v1591_v4, %s6849_s15  ;;  %v1516_v35 = vrot.slane %v1369_v6, 4 }
 0x3f4   : > { %v1592_v62 = vrot.slane %v5761_v17, 4  ;;  %v1529_v26 = vrot.slane %v5761_v17, 1  ;;  %v1550_v32 = vrot.slane %v5761_v17, 2  ;;  %v1552_v34 = vrot.slane %v5764_v21, 2 }
 0x3f5   : > { %v1571_v24 = vrot.slane %v5761_v17, 3  ;;  %v1573_v39 = vrot.slane %v5764_v21, 3  ;;  %v1522_v12 = vsel %vm406_vm0, %v1509_v20, %v1516_v35  ;;  %v1594_v48 = vrot.slane %v5764_v21, 4 }
 0x3f6   : > { %v1593_v27 = vsel %vm1063_vm10, %v1590_v8, %v1592_v62  ;;  %v1530_v38 = vsel %vm427_vm3, %v1527_v54, %v1529_v26  ;;  %v1553_v36 = vsel %vm449_vm2, %v1550_v32, %v1552_v34  ;;  %v1551_v63 = vsel %vm449_vm2, %v1548_v45, %v1550_v32 }
 0x3f7   : > { %1600 = vrot.lane.b32.xlu0 %v1593_v27, %s6849_s15  ;;  %1537 = vrot.lane.b32.xlu1 %v1530_v38, %s6837_s29  ;;  %v1574_v50 = vsel %vm471_vm4, %v1571_v24, %v1573_v39  ;;  %v1572_v53 = vsel %vm471_vm4, %v1569_v0, %v1571_v24  ;;  %v1531_v9 = vrot.slane %v5764_v21, 1  ;;  %v1523_v54 = vsel %vm996_vm11, %v1522_v12, %v1518_v40 }
 0x3f8   : > { %v1595_v51 = vsel %vm1063_vm10, %v1592_v62, %v1594_v48  ;;  %v1533_v15 = vrot.slane %v1523_v54, 1  ;;  %v1554_v52 = vrot.slane %v1523_v54, 2  ;;  %v1575_v47 = vrot.slane %v1523_v54, 3 }
 0x3f9   : > { %v1532_v55 = vsel %vm427_vm3, %v1529_v26, %v1531_v9  ;;  %v1596_v59 = vrot.slane %v1523_v54, 4 }
 0x3fa   : > { %v1534_v56 = vsel %vm427_vm3, %v1531_v9, %v1533_v15  ;;  %v1555_v45 = vsel %vm449_vm2, %v1552_v34, %v1554_v52  ;;  %v1576_v58 = vsel %vm471_vm4, %v1573_v39, %v1575_v47 }
 0x3fb   : > { %1560 = vrot.lane.b32.xlu0 %v1553_v36, %s6835_s26  ;;  %1558 = vrot.lane.b32.xlu1 %v1551_v63, %s6835_s26  ;;  %v1597_v60 = vsel %vm1063_vm10, %v1594_v48, %v1596_v59 }
 0x3ff   : > { %1581 = vrot.lane.b32.xlu0 %v1574_v50, %s6848_s22  ;;  %1579 = vrot.lane.b32.xlu1 %v1572_v53, %s6848_s22 }
 0x403   : > { %1602 = vrot.lane.b32.xlu0 %v1595_v51, %s6849_s15  ;;  %1539 = vrot.lane.b32.xlu1 %v1532_v55, %s6837_s29 }
 0x407   : > { %1541 = vrot.lane.b32.xlu1 %v1534_v56, %s6837_s29 }
 0x40b   : > { %1562 = vrot.lane.b32.xlu1 %v1555_v45, %s6835_s26  ;;  %s380_s26 = sand.u32 1, %s4976_s18  }
 0x40c   : > { %s3963_s1 = sshll.u32 %s380_s26, 1  ;;  %s6776_s12 = scalar_lea.sflag [#allocation4], %s380_s26 }
 0x40f   : > { %1583 = vrot.lane.b32.xlu1 %v1576_v58, %s6848_s22 }
 0x413   : > { %1604 = vrot.lane.b32.xlu1 %v1597_v60, %s6849_s15 }
 0x437   : > { %v1408_v0 = vpop.permute.xlu0 %1407 }
 0x438   : > { %v1482_v57 = vsel %vm493_vm5, %v5657_v29, %v1408_v0 }
 0x43b   : > { %v1429_v19 = vpop.permute.xlu0 %1428 }
 0x43c   : > { %v1486_v3 = vsel %vm498_vm6, %v1482_v57, %v1429_v19 }
 0x43f   : > { %v1450_v22 = vpop.permute.xlu0 %1449 }
 0x440   : > { %v1490_v5 = vsel %vm503_vm7, %v1486_v3, %v1450_v22 }
 0x443   : > { %v1471_v42 = vpop.permute.xlu0 %1470 }
 0x444   : > { %v1494_v6 = vsel %vm623_vm8, %v1490_v5, %v1471_v42 }
 0x445   : > { %4423 = vmatprep.mubr.msk.f32.mxu1 %vm810_vm9, %v1494_v6 }
 0x449   : > { %v1410_v18 = vpop.permute.xlu1 %1409  ;;  %v1473_v7 = vpop.permute.xlu0 %1472 }
 0x44a   : > { %v1483_v20 = vsel %vm493_vm5, %v5647_v23, %v1410_v18 }
 0x44d   : > { %v1431_v8 = vpop.permute.xlu1 %1430  ;;  %v1433_v41 = vpop.permute.xlu0 %1432 }
 0x44e   : > { %v1487_v28 = vsel %vm498_vm6, %v1483_v20, %v1431_v8 }
 0x451   : > { %v1452_v13 = vpop.permute.xlu1 %1451  ;;  %v1454_v29 = vpop.permute.xlu0 %1453 }
 0x452   : > { %v1491_v4 = vsel %vm503_vm7, %v1487_v28, %v1452_v13  ;;  %v5853_v28 = vld [vmem:[%s6825_s6 + $0x1] ss:$0 sm:$0xff] }
 0x453   : > { %v1495_v62 = vsel %vm623_vm8, %v1491_v4, %v1473_v7 }
 0x454   : > { %4424 = vmatmul.mubr.msk.f32.vlgmr.msra.gmra.mrb[8].mxu1 %vm810_vm9, %v1495_v62 }
 0x455   : > { %v1412_v26 = vpop.permute.xlu1 %1411  ;;  %v1475_v27 = vpop.permute.xlu0 %1474 }
 0x456   : > { %v1484_v38 = vsel %vm493_vm5, %v5696_v1, %v1412_v26 }
 0x457   : > { %v1488_v32 = vsel %vm498_vm6, %v1484_v38, %v1433_v41 }
 0x458   : > { %v1492_v34 = vsel %vm503_vm7, %v1488_v32, %v1454_v29 }
 0x459   : > { %v1496_v23 = vsel %vm623_vm8, %v1492_v34, %v1475_v27  ;;  %v1414_v35 = vpop.permute.xlu1 %1413  ;;  %v1536_v36 = vpop.permute.xlu0 %1535 }
 0x45a   : > { %4426 = vmatprep.mubr.msk.f32.mxu1 %vm810_vm9, %v1496_v23  ;;  %v1485_v12 = vsel %vm493_vm5, %v5699_v2, %v1414_v35  ;;  %v1610_v1 = vsel %vm493_vm5, %v5731_v10, %v1536_v36 }
 0x45d   : > { %v1435_v63 = vpop.permute.xlu1 %1434  ;;  %v1557_v24 = vpop.permute.xlu0 %1556 }
 0x45e   : > { %v1489_v50 = vsel %vm498_vm6, %v1485_v12, %v1435_v63  ;;  %v1614_v53 = vsel %vm498_vm6, %v1610_v1, %v1557_v24 }
 0x461   : > { %v1456_v39 = vpop.permute.xlu1 %1455  ;;  %v1578_v40 = vpop.permute.xlu0 %1577 }
 0x462   : > { %v1493_v48 = vsel %vm503_vm7, %v1489_v50, %v1456_v39  ;;  %v1618_v9 = vsel %vm503_vm7, %v1614_v53, %v1578_v40  ;;  %v4019_v50 = vld [vmem:[%s6824_s5 + $0xb0] sm:$0xff]  ;;  %v4020_v53 = vld [vmem:[%s6824_s5 + $0xb8] sm:$0xff] }
 0x465   : > { %v1477_v54 = vpop.permute.xlu1 %1476  ;;  %v1599_v51 = vpop.permute.xlu0 %1598 }
 0x466   : > { %v1497_v55 = vsel %vm623_vm8, %v1493_v48, %v1477_v54  ;;  %v1622_v15 = vsel %vm623_vm8, %v1618_v9, %v1599_v51  ;;  %v4728_v48 = vpack.c.bf16 %v4020_v53, %v4019_v50  ;;  %v4021_v9 = vld [vmem:[%s6824_s5 + $0xc0] sm:$0xff]  ;;  %v4022_v54 = vld [vmem:[%s6824_s5 + $0xc8] sm:$0xff] }
 0x467   : > { %4427 = vmatmul.mubr.msk.f32.gmra.mrb[10].mxu1 %vm810_vm9, %v1497_v55  ;;  %v4732_v51 = vpack.c.bf16 %v4022_v54, %v4021_v9 }
 0x468   : > { %4429 = vmatprep.mubr.msk.f32.mxu1 %vm810_vm9, %v1622_v15 }
 0x469   : > { %v1538_v2 = vpop.permute.xlu1 %1537  ;;  %v1601_v10 = vpop.permute.xlu0 %1600 }
 0x46a   : > { %v1611_v45 = vsel %vm493_vm5, %v5726_v44, %v1538_v2 }
 0x46d   : > { %v1559_v56 = vpop.permute.xlu1 %1558  ;;  %v1561_v52 = vpop.permute.xlu0 %1560 }
 0x46e   : > { %v1615_v47 = vsel %vm498_vm6, %v1611_v45, %v1559_v56  ;;  %v4023_v45 = vld [vmem:[%s6824_s5 + $0xd0] sm:$0xff] }
 0x471   : > { %v1580_v58 = vpop.permute.xlu1 %1579  ;;  %v1582_v60 = vpop.permute.xlu0 %1581 }
 0x472   : > { %v1619_v59 = vsel %vm503_vm7, %v1615_v47, %v1580_v58  ;;  %v4024_v47 = vld [vmem:[%s6824_s5 + $0xd8] sm:$0xff] }
 0x473   : > { %v1623_v0 = vsel %vm623_vm8, %v1619_v59, %v1601_v10  ;;  %v4736_v59 = vpack.c.bf16 %v4024_v47, %v4023_v45 }
 0x474   : > { %4430 = vmatmul.mubr.msk.f32.gmra.mrb[12].mxu1 %vm810_vm9, %v1623_v0 }
 0x475   : > { %v1540_v19 = vpop.permute.xlu1 %1539  ;;  %v1603_v5 = vpop.permute.xlu0 %1602 }
 0x476   : > { %v1612_v22 = vsel %vm493_vm5, %v5761_v17, %v1540_v19 }
 0x477   : > { %v1616_v57 = vsel %vm498_vm6, %v1612_v22, %v1561_v52 }
 0x478   : > { %v1620_v3 = vsel %vm503_vm7, %v1616_v57, %v1582_v60 }
 0x479   : > { %v1624_v44 = vsel %vm623_vm8, %v1620_v3, %v1603_v5  ;;  %v1542_v42 = vpop.permute.xlu1 %1541  ;;  %v4025_v5 = vld [vmem:[%s6824_s5 + $0xe0] sm:$0xff] }
 0x47a   : > { %4432 = vmatprep.mubr.msk.f32.mxu1 %vm810_vm9, %v1624_v44  ;;  %v1613_v7 = vsel %vm493_vm5, %v5764_v21, %v1542_v42  ;;  %v4026_v44 = vld [vmem:[%s6824_s5 + $0xe8] sm:$0xff] }
 0x47d   : > { %v1563_v6 = vpop.permute.xlu1 %1562 }
 0x47e   : > { %v1617_v8 = vsel %vm498_vm6, %v1613_v7, %v1563_v6  ;;  %v4740_v6 = vpack.c.bf16 %v4026_v44, %v4025_v5 }
 0x481   : > { %v1584_v18 = vpop.permute.xlu1 %1583 }
 0x482   : > { %v1621_v41 = vsel %vm503_vm7, %v1617_v8, %v1584_v18 }
 0x485   : > { %v1605_v17 = vpop.permute.xlu1 %1604 }
 0x486   : > { %v1625_v20 = vsel %vm623_vm8, %v1621_v41, %v1605_v17 }
 0x487   : > { %4433 = vmatmul.mubr.msk.f32.gmra.mrb[14].mxu1 %vm810_vm9, %v1625_v20 }
 0x527   : > { %v4425_v13 = vpop.f32.mrb[8].mxu1 }
 0x528   : > { %v1726_v29 = vadd.f32 %v4425_v13, %v5853_v28  ;;  %v1720_v4 = vpop.f32.mrb[9].mxu1 }
 0x529   : > { %v1721_v21 = vadd.f32 %v5853_v28, %v1720_v4 }
 0x52a   : > { %v1760_v62 = vmax.f32 %v1726_v29, 0.0 }
 0x52b   : > { %v1759_v26 = vmax.f32 %v1721_v21, 0.0 }
 0x52c   : > { %v5859_v27 = vadd.f32 %v1760_v62, %v941_v30  ;;  %v4018_v30 = vld [vmem:[%s6824_s5 + $0xa8] sm:$0xff] }
 0x52d   : > { %v5862_v38 = vadd.f32 %v1759_v26, %v5398_v31  ;;  %v4724_v39 = vpack.c.bf16 %v4018_v30, %v4017_v61 }
 0x52e   : > { %v1806_v32 = vrot.slane %v5859_v27, 6 }
 0x52f   : > { %v1800_v34 = vrot.slane %v5862_v38, 2  ;;  %v1805_v23 = vrot.slane %v5862_v38, 6  ;;  %4725 = vmatprep.subr.bf16.mxu0 %v4724_v39 }
 0x530   : > { %4727 = vmatpush3.bf16.msra.mxu0 %v4724_v39 }
 0x531   : > { %v1821_v35 = vsel %vm421_vm1, %v1800_v34, %v5862_v38  ;;  %v5870_v36 = vsel %vm406_vm0, %v1805_v23, %v1806_v32  ;;  %4729 = vmatprep.subr.bf16.mxu0 %v4728_v48 }
 0x532   : > { %v5879_v31 = vsel %vm406_vm0, %v1821_v35, %v1805_v23  ;;  %v1828_v63 = vrot.slane %v5870_v36, 1  ;;  %v1849_v1 = vrot.slane %v5870_v36, 2  ;;  %v1870_v2 = vrot.slane %v5870_v36, 3 }
 0x533   : > { %v1827_v24 = vrot.slane %v5879_v31, 1  ;;  %v1848_v12 = vrot.slane %v5879_v31, 2  ;;  %v1869_v15 = vrot.slane %v5879_v31, 3  ;;  %v1890_v19 = vrot.slane %v5879_v31, 4 }
 0x534   : > { %4731 = vmatpush3.bf16.msra.mxu0 %v4728_v48  ;;  %v1891_v22 = vrot.slane %v5870_v36, 4 }
 0x535   : > { %v1829_v40 = vsel %vm427_vm3, %v1827_v24, %v1828_v63  ;;  %v1850_v55 = vsel %vm449_vm2, %v1848_v12, %v1849_v1  ;;  %4733 = vmatprep.subr.bf16.mxu0 %v4732_v51  ;;  %v1871_v0 = vsel %vm471_vm4, %v1869_v15, %v1870_v2 }
 0x536   : > { %1836 = vrot.lane.b32.xlu0 %v1829_v40, %s6837_s29 }
 0x538   : > { %4735 = vmatpush3.bf16.msra.mxu0 %v4732_v51 }
 0x539   : > { %4737 = vmatprep.subr.bf16.mxu0 %v4736_v59 }
 0x53a   : > { %1857 = vrot.lane.b32.xlu0 %v1850_v55, %s6850_s16  ;;  %v4428_v10 = vpop.f32.mrb[10].mxu1 }
 0x53b   : > { %v1736_v56 = vadd.f32 %v4428_v10, %v5853_v28  ;;  %v1730_v52 = vpop.f32.mrb[11].mxu1 }
 0x53c   : > { %v1731_v58 = vadd.f32 %v5853_v28, %v1730_v52  ;;  %4739 = vmatpush3.bf16.msra.mxu0 %v4736_v59 }
 0x53d   : > { %v1762_v60 = vmax.f32 %v1736_v56, 0.0  ;;  %4741 = vmatprep.subr.bf16.mxu0 %v4740_v6 }
 0x53e   : > { %v1761_v57 = vmax.f32 %v1731_v58, 0.0  ;;  %1878 = vrot.lane.b32.xlu0 %v1871_v0, %s6848_s22 }
 0x53f   : > { %v5920_v3 = vadd.f32 %v1762_v60, %v5443_v11  ;;  %v1892_v11 = vsel %vm1063_vm10, %v1890_v19, %v1891_v22 }
 0x540   : > { %v5930_v42 = vadd.f32 %v1761_v57, %v942_v49  ;;  %4743 = vmatpush3.bf16.msra.mxu0 %v4740_v6 }
 0x541   : > { %v1810_v18 = vrot.slane %v5920_v3, 6  ;;  %v1817_v17 = vrot.slane %v5920_v3, 4  ;;  %v1819_v34 = vrot.slane %v5920_v3, 2 }
 0x542   : > { %v1808_v7 = vrot.slane %v5930_v42, 6  ;;  %1899 = vrot.lane.b32.xlu0 %v1892_v11, %s6849_s15 }
 0x543   : > { %v1823_v61 = vsel %vm406_vm0, %v1810_v18, %v1817_v17 }
 0x544   : > { %v5937_v8 = vsel %vm406_vm0, %v1806_v32, %v1808_v7  ;;  %v5940_v41 = vsel %vm406_vm0, %v1808_v7, %v1810_v18 }
 0x545   : > { %v1893_v43 = vrot.slane %v5937_v8, 4  ;;  %v1830_v49 = vrot.slane %v5937_v8, 1  ;;  %v1851_v4 = vrot.slane %v5937_v8, 2  ;;  %v1853_v21 = vrot.slane %v5940_v41, 2 }
 0x546   : > { %v1872_v35 = vrot.slane %v5937_v8, 3  ;;  %v1874_v39 = vrot.slane %v5940_v41, 3  ;;  %v1895_v53 = vrot.slane %v5940_v41, 4  ;;  %v1832_v48 = vrot.slane %v5940_v41, 1 }
 0x547   : > { %v4431_v20 = vpop.f32.mrb[12].mxu1  ;;  %v1894_v13 = vsel %vm1063_vm10, %v1891_v22, %v1893_v43  ;;  %v1831_v29 = vsel %vm427_vm3, %v1828_v63, %v1830_v49  ;;  %v1854_v63 = vsel %vm449_vm2, %v1851_v4, %v1853_v21  ;;  %v1852_v24 = vsel %vm449_vm2, %v1849_v1, %v1851_v4 }
 0x548   : > { %v1746_v62 = vadd.f32 %v4431_v20, %v5853_v28  ;;  %1901 = vrot.lane.b32.xlu0 %v1894_v13, %s6849_s15  ;;  %1838 = vrot.lane.b32.xlu1 %v1831_v29, %s6837_s29  ;;  %v1740_v26 = vpop.f32.mrb[13].mxu1  ;;  %v1824_v1 = vsel %vm996_vm11, %v1823_v61, %v1819_v34  ;;  %v1873_v54 = vsel %vm471_vm4, %v1870_v2, %v1872_v35 }
 0x549   : > { %v1741_v32 = vadd.f32 %v5853_v28, %v1740_v26  ;;  %v1834_v15 = vrot.slane %v1824_v1, 1  ;;  %v1896_v10 = vsel %vm1063_vm10, %v1893_v43, %v1895_v53  ;;  %v1833_v56 = vsel %vm427_vm3, %v1830_v49, %v1832_v48 }
 0x54a   : > { %v1764_v23 = vmax.f32 %v1746_v62, 0.0  ;;  %v1855_v45 = vrot.slane %v1824_v1, 2  ;;  %v1876_v22 = vrot.slane %v1824_v1, 3  ;;  %v1897_v17 = vrot.slane %v1824_v1, 4 }
 0x54b   : > { %v1763_v30 = vmax.f32 %v1741_v32, 0.0  ;;  %v1835_v47 = vsel %vm427_vm3, %v1832_v48, %v1834_v15 }
 0x54c   : > { %v5963_v40 = vadd.f32 %v1764_v23, %v945_v25  ;;  %1861 = vrot.lane.b32.xlu0 %v1854_v63, %s6850_s16  ;;  %1859 = vrot.lane.b32.xlu1 %v1852_v24, %s6850_s16  ;;  %v1875_v25 = vsel %vm471_vm4, %v1872_v35, %v1874_v39  ;;  %v1856_v19 = vsel %vm449_vm2, %v1853_v21, %v1855_v45 }
 0x54d   : > { %v5968_v12 = vadd.f32 %v1763_v30, %v5477_v16  ;;  %v1877_v49 = vsel %vm471_vm4, %v1874_v39, %v1876_v22 }
 0x54e   : > { %v1934_v50 = vrot.slane %v5963_v40, 6 }
 0x54f   : > { %v1928_v9 = vrot.slane %v5968_v12, 2  ;;  %v1933_v14 = vrot.slane %v5968_v12, 6 }
 0x550   : > { %1882 = vrot.lane.b32.xlu0 %v1875_v25, %s6848_s22  ;;  %1880 = vrot.lane.b32.xlu1 %v1873_v54, %s6848_s22 }
 0x551   : > { %v1949_v16 = vsel %vm421_vm1, %v1928_v9, %v5968_v12  ;;  %v5985_v51 = vsel %vm406_vm0, %v1933_v14, %v1934_v50 }
 0x552   : > { %v5988_v55 = vsel %vm406_vm0, %v1949_v16, %v1933_v14  ;;  %v1956_v52 = vrot.slane %v5985_v51, 1  ;;  %v1977_v60 = vrot.slane %v5985_v51, 2  ;;  %v1998_v18 = vrot.slane %v5985_v51, 3 }
 0x553   : > { %v1955_v2 = vrot.slane %v5988_v55, 1  ;;  %v1976_v59 = vrot.slane %v5988_v55, 2  ;;  %v1997_v6 = vrot.slane %v5988_v55, 3  ;;  %v2018_v29 = vrot.slane %v5988_v55, 4 }
 0x554   : > { %1903 = vrot.lane.b32.xlu0 %v1896_v10, %s6849_s15  ;;  %1840 = vrot.lane.b32.xlu1 %v1833_v56, %s6837_s29  ;;  %v2019_v4 = vrot.slane %v5985_v51, 4 }
 0x555   : > { %v1957_v58 = vsel %vm427_vm3, %v1955_v2, %v1956_v52  ;;  %v1978_v44 = vsel %vm449_vm2, %v1976_v59, %v1977_v60  ;;  %v1999_v13 = vsel %vm471_vm4, %v1997_v6, %v1998_v18 }
 0x556   : > { %v2020_v26 = vsel %vm1063_vm10, %v2018_v29, %v2019_v4 }
 0x558   : > { %1842 = vrot.lane.b32.xlu1 %v1835_v47, %s6837_s29  ;;  %1964 = vrot.lane.b32.xlu0 %v1957_v58, %s6837_s29 }
 0x55a   : > { %v4434_v0 = vpop.f32.mrb[14].mxu1 }
 0x55b   : > { %v1756_v57 = vadd.f32 %v4434_v0, %v5853_v28  ;;  %v1750_v5 = vpop.f32.mrb[15].mxu1 }
 0x55c   : > { %v1751_v11 = vadd.f32 %v5853_v28, %v1750_v5  ;;  %1863 = vrot.lane.b32.xlu1 %v1856_v19, %s6850_s16  ;;  %1985 = vrot.lane.b32.xlu0 %v1978_v44, %s6850_s16 }
 0x55d   : > { %v1766_v7 = vmax.f32 %v1756_v57, 0.0 }
 0x55e   : > { %v1765_v43 = vmax.f32 %v1751_v11, 0.0 }
 0x55f   : > { %v6012_v20 = vadd.f32 %v1766_v7, %v5533_v33  ;;  %v1898_v33 = vsel %vm1063_vm10, %v1895_v53, %v1897_v17 }
 0x560   : > { %v6019_v28 = vadd.f32 %v1765_v43, %v946_v46  ;;  %1884 = vrot.lane.b32.xlu1 %v1877_v49, %s6848_s22  ;;  %2006 = vrot.lane.b32.xlu0 %v1999_v13, %s6848_s22 }
 0x561   : > { %v1938_v21 = vrot.slane %v6012_v20, 6  ;;  %v1945_v63 = vrot.slane %v6012_v20, 4  ;;  %v1947_v48 = vrot.slane %v6012_v20, 2 }
 0x562   : > { %v1936_v62 = vrot.slane %v6019_v28, 6 }
 0x563   : > { %v1951_v1 = vsel %vm406_vm0, %v1938_v21, %v1945_v63 }
 0x564   : > { %v6028_v32 = vsel %vm406_vm0, %v1934_v50, %v1936_v62  ;;  %v6031_v34 = vsel %vm406_vm0, %v1936_v62, %v1938_v21  ;;  %1905 = vrot.lane.b32.xlu1 %v1898_v33, %s6849_s15  ;;  %2027 = vrot.lane.b32.xlu0 %v2020_v26, %s6849_s15  ;;  %v1952_v16 = vsel %vm996_vm11, %v1951_v1, %v1947_v48 }
 0x565   : > { %v2021_v37 = vrot.slane %v6028_v32, 4  ;;  %v1958_v46 = vrot.slane %v6028_v32, 1  ;;  %v1979_v61 = vrot.slane %v6028_v32, 2  ;;  %v1981_v30 = vrot.slane %v6031_v34, 2 }
 0x566   : > { %v2000_v50 = vrot.slane %v6028_v32, 3  ;;  %v2002_v53 = vrot.slane %v6031_v34, 3  ;;  %v2023_v25 = vrot.slane %v6031_v34, 4  ;;  %v1960_v54 = vrot.slane %v6031_v34, 1 }
 0x567   : > { %v2022_v23 = vsel %vm1063_vm10, %v2019_v4, %v2021_v37  ;;  %v1959_v35 = vsel %vm427_vm3, %v1956_v52, %v1958_v46  ;;  %v1982_v24 = vsel %vm449_vm2, %v1979_v61, %v1981_v30  ;;  %v1980_v39 = vsel %vm449_vm2, %v1977_v60, %v1979_v61 }
 0x568   : > { %2029 = vrot.lane.b32.xlu0 %v2022_v23, %s6849_s15  ;;  %1966 = vrot.lane.b32.xlu1 %v1959_v35, %s6837_s29  ;;  %v2003_v9 = vsel %vm471_vm4, %v2000_v50, %v2002_v53  ;;  %v2001_v14 = vsel %vm471_vm4, %v1998_v18, %v2000_v50  ;;  %v2024_v15 = vsel %vm1063_vm10, %v2021_v37, %v2023_v25  ;;  %v1962_v56 = vrot.slane %v1952_v16, 1 }
 0x569   : > { %v1961_v10 = vsel %vm427_vm3, %v1958_v46, %v1960_v54  ;;  %v1983_v52 = vrot.slane %v1952_v16, 2  ;;  %v2004_v47 = vrot.slane %v1952_v16, 3  ;;  %v2025_v59 = vrot.slane %v1952_v16, 4 }
 0x56a   : > { %v1963_v2 = vsel %vm427_vm3, %v1960_v54, %v1962_v56 }
 0x56b   : > { %v1984_v45 = vsel %vm449_vm2, %v1981_v30, %v1983_v52  ;;  %v2005_v58 = vsel %vm471_vm4, %v2002_v53, %v2004_v47  ;;  %v2026_v60 = vsel %vm1063_vm10, %v2023_v25, %v2025_v59 }
 0x56c   : > { %1989 = vrot.lane.b32.xlu0 %v1982_v24, %s6850_s16  ;;  %1987 = vrot.lane.b32.xlu1 %v1980_v39, %s6850_s16 }
 0x570   : > { %2010 = vrot.lane.b32.xlu0 %v2003_v9, %s6848_s22  ;;  %2008 = vrot.lane.b32.xlu1 %v2001_v14, %s6848_s22 }
 0x574   : > { %2031 = vrot.lane.b32.xlu0 %v2024_v15, %s6849_s15  ;;  %1968 = vrot.lane.b32.xlu1 %v1961_v10, %s6837_s29 }
 0x578   : > { %1970 = vrot.lane.b32.xlu1 %v1963_v2, %s6837_s29  ;;  %s6772_s29 = scalar_lea.hbm %s6830_s11, %s4131_s2 }
 0x57c   : > { %1991 = vrot.lane.b32.xlu1 %v1984_v45, %s6850_s16 }
 0x580   : > { %2012 = vrot.lane.b32.xlu1 %v2005_v58, %s6848_s22 }
 0x584   : > { %2033 = vrot.lane.b32.xlu1 %v2026_v60, %s6849_s15 }
 0x5a8   : > { %v1837_v0 = vpop.permute.xlu0 %1836 }
 0x5a9   : > { %v1911_v57 = vsel %vm493_vm5, %v5879_v31, %v1837_v0 }
 0x5ac   : > { %v1858_v19 = vpop.permute.xlu0 %1857 }
 0x5ad   : > { %v1915_v5 = vsel %vm498_vm6, %v1911_v57, %v1858_v19 }
 0x5b0   : > { %v1879_v22 = vpop.permute.xlu0 %1878 }
 0x5b1   : > { %v1919_v44 = vsel %vm503_vm7, %v1915_v5, %v1879_v22 }
 0x5b4   : > { %v1900_v6 = vpop.permute.xlu0 %1899 }
 0x5b5   : > { %v1923_v18 = vsel %vm623_vm8, %v1919_v44, %v1900_v6 }
 0x5b6   : > { %4455 = vmatprep.mubr.msk.f32.mxu0 %vm810_vm9, %v1923_v18 }
 0x5ba   : > { %v1839_v11 = vpop.permute.xlu1 %1838  ;;  %v1902_v7 = vpop.permute.xlu0 %1901 }
 0x5bb   : > { %v1912_v17 = vsel %vm493_vm5, %v5870_v36, %v1839_v11 }
 0x5be   : > { %v1860_v43 = vpop.permute.xlu1 %1859  ;;  %v1862_v49 = vpop.permute.xlu0 %1861 }
 0x5bf   : > { %v1916_v13 = vsel %vm498_vm6, %v1912_v17, %v1860_v43 }
 0x5c2   : > { %v1881_v29 = vpop.permute.xlu1 %1880  ;;  %v1883_v31 = vpop.permute.xlu0 %1882 }
 0x5c3   : > { %v1920_v4 = vsel %vm503_vm7, %v1916_v13, %v1881_v29 }
 0x5c4   : > { %v1924_v21 = vsel %vm623_vm8, %v1920_v4, %v1902_v7  ;;  %v6122_v7 = vld [vmem:[%s6825_s6 + $0x2] ss:$0 sm:$0xff]  ;;  %v4027_v4 = vld [vmem:[%s6824_s5 + $0xf0] sm:$0xff] }
 0x5c5   : > { %4456 = vmatmul.mubr.msk.f32.vlgmr.msra.gmra.mrb[16].mxu0 %vm810_vm9, %v1924_v21  ;;  %v4028_v21 = vld [vmem:[%s6824_s5 + $0xf8] sm:$0xff] }
 0x5c6   : > { %v1841_v62 = vpop.permute.xlu1 %1840  ;;  %v1904_v33 = vpop.permute.xlu0 %1903 }
 0x5c7   : > { %v1913_v26 = vsel %vm493_vm5, %v5937_v8, %v1841_v62  ;;  %v4029_v62 = vld [vmem:[%s6824_s5 + $0x100] sm:$0xff] }
 0x5c8   : > { %v1917_v37 = vsel %vm498_vm6, %v1913_v26, %v1862_v49 }
 0x5c9   : > { %v1921_v46 = vsel %vm503_vm7, %v1917_v37, %v1883_v31  ;;  %v4744_v37 = vpack.c.bf16 %v4028_v21, %v4027_v4 }
 0x5ca   : > { %v1925_v36 = vsel %vm623_vm8, %v1921_v46, %v1904_v33  ;;  %v1843_v23 = vpop.permute.xlu1 %1842  ;;  %v1965_v35 = vpop.permute.xlu0 %1964  ;;  %v4030_v46 = vld [vmem:[%s6824_s5 + $0x108] sm:$0xff] }
 0x5cb   : > { %4458 = vmatprep.mubr.msk.f32.mxu0 %vm810_vm9, %v1925_v36  ;;  %v1914_v39 = vsel %vm493_vm5, %v5940_v41, %v1843_v23  ;;  %v2039_v8 = vsel %vm493_vm5, %v5988_v55, %v1965_v35  ;;  %v4748_v36 = vpack.c.bf16 %v4030_v46, %v4029_v62  ;;  %4745 = vmatprep.subr.bf16.mxu1 %v4744_v37 }
 0x5cc   : > { %4747 = vmatpush3.bf16.msra.mxu1 %v4744_v37 }
 0x5cd   : > { %4749 = vmatprep.subr.bf16.mxu1 %v4748_v36 }
 0x5ce   : > { %v1864_v61 = vpop.permute.xlu1 %1863  ;;  %v1986_v30 = vpop.permute.xlu0 %1985 }
 0x5cf   : > { %v1918_v50 = vsel %vm498_vm6, %v1914_v39, %v1864_v61  ;;  %v2043_v53 = vsel %vm498_vm6, %v2039_v8, %v1986_v30 }
 0x5d0   : > { %4751 = vmatpush3.bf16.msra.mxu1 %v4748_v36 }
 0x5d2   : > { %v1885_v63 = vpop.permute.xlu1 %1884  ;;  %v2007_v24 = vpop.permute.xlu0 %2006 }
 0x5d3   : > { %v1922_v48 = vsel %vm503_vm7, %v1918_v50, %v1885_v63  ;;  %v2047_v1 = vsel %vm503_vm7, %v2043_v53, %v2007_v24 }
 0x5d6   : > { %v1906_v9 = vpop.permute.xlu1 %1905  ;;  %v2028_v14 = vpop.permute.xlu0 %2027 }
 0x5d7   : > { %v1926_v25 = vsel %vm623_vm8, %v1922_v48, %v1906_v9  ;;  %v2051_v54 = vsel %vm623_vm8, %v2047_v1, %v2028_v14  ;;  %v4031_v14 = vld [vmem:[%s6824_s5 + $0x110] sm:$0xff] }
 0x5d8   : > { %4459 = vmatmul.mubr.msk.f32.gmra.mrb[18].mxu0 %vm810_vm9, %v1926_v25  ;;  %v4032_v25 = vld [vmem:[%s6824_s5 + $0x118] sm:$0xff] }
 0x5d9   : > { %4461 = vmatprep.mubr.msk.f32.mxu0 %vm810_vm9, %v2051_v54 }
 0x5da   : > { %v1967_v41 = vpop.permute.xlu1 %1966  ;;  %v2030_v55 = vpop.permute.xlu0 %2029 }
 0x5db   : > { %v2040_v10 = vsel %vm493_vm5, %v5985_v51, %v1967_v41  ;;  %v4752_v41 = vpack.c.bf16 %v4032_v25, %v4031_v14 }
 0x5dd   : > { %4753 = vmatprep.subr.bf16.mxu1 %v4752_v41 }
 0x5de   : > { %v1988_v16 = vpop.permute.xlu1 %1987  ;;  %v1990_v15 = vpop.permute.xlu0 %1989  ;;  %4755 = vmatpush3.bf16.msra.mxu1 %v4752_v41 }
 0x5df   : > { %v2044_v56 = vsel %vm498_vm6, %v2040_v10, %v1988_v16 }
 0x5e2   : > { %v2009_v2 = vpop.permute.xlu1 %2008  ;;  %v2011_v45 = vpop.permute.xlu0 %2010 }
 0x5e3   : > { %v2048_v52 = vsel %vm503_vm7, %v2044_v56, %v2009_v2  ;;  %v4033_v56 = vld [vmem:[%s6824_s5 + $0x120] sm:$0xff]  ;;  %v4034_v2 = vld [vmem:[%s6824_s5 + $0x128] sm:$0xff] }
 0x5e4   : > { %v2052_v47 = vsel %vm623_vm8, %v2048_v52, %v2030_v55  ;;  %v4756_v52 = vpack.c.bf16 %v4034_v2, %v4033_v56 }
 0x5e5   : > { %4462 = vmatmul.mubr.msk.f32.gmra.mrb[20].mxu0 %vm810_vm9, %v2052_v47  ;;  %v4035_v47 = vld [vmem:[%s6824_s5 + $0x130] sm:$0xff] }
 0x5e6   : > { %v1969_v58 = vpop.permute.xlu1 %1968  ;;  %v2032_v19 = vpop.permute.xlu0 %2031  ;;  %4757 = vmatprep.subr.bf16.mxu1 %v4756_v52 }
 0x5e7   : > { %v2041_v59 = vsel %vm493_vm5, %v6028_v32, %v1969_v58  ;;  %4759 = vmatpush3.bf16.msra.mxu1 %v4756_v52  ;;  %v4036_v58 = vld [vmem:[%s6824_s5 + $0x138] sm:$0xff] }
 0x5e8   : > { %v2045_v60 = vsel %vm498_vm6, %v2041_v59, %v1990_v15 }
 0x5e9   : > { %v2049_v0 = vsel %vm503_vm7, %v2045_v60, %v2011_v45 }
 0x5ea   : > { %v2053_v51 = vsel %vm623_vm8, %v2049_v0, %v2032_v19  ;;  %v1971_v22 = vpop.permute.xlu1 %1970  ;;  %v4760_v0 = vpack.c.bf16 %v4036_v58, %v4035_v47 }
 0x5eb   : > { %4464 = vmatprep.mubr.msk.f32.mxu0 %vm810_vm9, %v2053_v51  ;;  %v2042_v44 = vsel %vm493_vm5, %v6031_v34, %v1971_v22 }
 0x5ec   : > { %4761 = vmatprep.subr.bf16.mxu1 %v4760_v0 }
 0x5ed   : > { %4763 = vmatpush3.bf16.msra.mxu1 %v4760_v0 }
 0x5ee   : > { %v1992_v57 = vpop.permute.xlu1 %1991 }
 0x5ef   : > { %v2046_v6 = vsel %vm498_vm6, %v2042_v44, %v1992_v57 }
 0x5f2   : > { %v2013_v5 = vpop.permute.xlu1 %2012 }
 0x5f3   : > { %v2050_v18 = vsel %vm503_vm7, %v2046_v6, %v2013_v5 }
 0x5f6   : > { %v2034_v32 = vpop.permute.xlu1 %2033 }
 0x5f7   : > { %v2054_v11 = vsel %vm623_vm8, %v2050_v18, %v2034_v32 }
 0x5f8   : > { %4465 = vmatmul.mubr.msk.f32.gmra.mrb[22].mxu0 %vm810_vm9, %v2054_v11 }
 0x698   : > { %v4457_v43 = vpop.f32.mrb[16].mxu0 }
 0x699   : > { %v2155_v49 = vadd.f32 %v4457_v43, %v6122_v7  ;;  %v2149_v17 = vpop.f32.mrb[17].mxu0 }
 0x69a   : > { %v2150_v34 = vadd.f32 %v6122_v7, %v2149_v17 }
 0x69b   : > { %v2189_v13 = vmax.f32 %v2155_v49, 0.0 }
 0x69c   : > { %v2188_v29 = vmax.f32 %v2150_v34, 0.0 }
 0x69d   : > { %v2203_v31 = vrot.slane %v2189_v13, 6 }
 0x69e   : > { %v2197_v33 = vrot.slane %v2188_v29, 2  ;;  %v2202_v26 = vrot.slane %v2188_v29, 6 }
 0x6a0   : > { %v2204_v23 = vsel %vm406_vm0, %v2202_v26, %v2203_v31  ;;  %v2218_v35 = vsel %vm421_vm1, %v2197_v33, %v2188_v29 }
 0x6a1   : > { %v2219_v61 = vsel %vm406_vm0, %v2218_v35, %v2202_v26  ;;  %2223 = vst.msk [vmem:[#allocation2 + $0x8] sm:$0xff] %vm493_vm5, %v2204_v23 }
 0x6a2   : > { %2222 = vst.msk [vmem:[#allocation2] sm:$0xff] %vm493_vm5, %v2219_v61 }
 0x6a9   : > { %v2232_v30 = vld [vmem:[#allocation2 + $0x1] ss:$2 sm:$0xff]  ;;  %v6175_v11 = vld [vmem:[#allocation2] ss:$2 sm:$0xff] }
 0x6aa   : > { %2249 = vrot.lane.b32.xlu0 %v2232_v30, %s6851_s24 }
 0x6ab   : > { %v4460_v63 = vpop.f32.mrb[18].mxu0 }
 0x6ac   : > { %v2165_v24 = vadd.f32 %v4460_v63, %v6122_v7  ;;  %v2159_v39 = vpop.f32.mrb[19].mxu0 }
 0x6ad   : > { %v2160_v8 = vadd.f32 %v6122_v7, %v2159_v39 }
 0x6ae   : > { %v2191_v50 = vmax.f32 %v2165_v24, 0.0 }
 0x6af   : > { %v2190_v53 = vmax.f32 %v2160_v8, 0.0 }
 0x6b0   : > { %v2207_v48 = vrot.slane %v2191_v50, 6  ;;  %v2214_v1 = vrot.slane %v2191_v50, 4  ;;  %v2216_v9 = vrot.slane %v2191_v50, 2 }
 0x6b1   : > { %v2205_v54 = vrot.slane %v2190_v53, 6 }
 0x6b2   : > { %v2220_v55 = vsel %vm406_vm0, %v2207_v48, %v2214_v1 }
 0x6b3   : > { %v2221_v16 = vsel %vm996_vm11, %v2220_v55, %v2216_v9  ;;  %v2206_v15 = vsel %vm406_vm0, %v2203_v31, %v2205_v54  ;;  %v2208_v10 = vsel %vm406_vm0, %v2205_v54, %v2207_v48 }
 0x6b4   : > { %2227 = vst.msk [vmem:[#allocation2 + $0x20] sm:$0xf] %vm2226_vm12, %v2221_v16 }
 0x6b5   : > { %2224 = vst.msk [vmem:[#allocation2 + $0x10] sm:$0xff] %vm493_vm5, %v2206_v15  ;;  %2225 = vst.msk [vmem:[#allocation2 + $0x18] sm:$0xff] %vm493_vm5, %v2208_v10 }
 0x6b8   : > { %v4463_v45 = vpop.f32.mrb[20].mxu0 }
 0x6b9   : > { %v2175_v59 = vadd.f32 %v4463_v45, %v6122_v7  ;;  %v2169_v60 = vpop.f32.mrb[21].mxu0 }
 0x6ba   : > { %v2170_v19 = vadd.f32 %v6122_v7, %v2169_v60 }
 0x6bb   : > { %v2193_v22 = vmax.f32 %v2175_v59, 0.0 }
 0x6bc   : > { %v2236_v51 = vld [vmem:[#allocation2 + $0x2] ss:$2 sm:$0xff]  ;;  %v2192_v57 = vmax.f32 %v2170_v19, 0.0  ;;  %v2234_v5 = vld [vmem:[#allocation2 + $0x11] ss:$2 sm:$0xff] }
 0x6bd   : > { %2257 = vrot.lane.b32.xlu0 %v2236_v51, %s6850_s16  ;;  %2251 = vrot.lane.b32.xlu1 %v2234_v5, %s6851_s24  ;;  %v2294_v44 = vrot.slane %v2193_v22, 6  ;;  %v2240_v32 = vld [vmem:[#allocation2 + $0x3] ss:$2 sm:$0xff]  ;;  %v2244_v43 = vld [vmem:[#allocation2 + $0x4] ss:$2 sm:$0xff] }
 0x6be   : > { %v2288_v6 = vrot.slane %v2192_v57, 2  ;;  %v2293_v18 = vrot.slane %v2192_v57, 6  ;;  %v2238_v34 = vld [vmem:[#allocation2 + $0x12] ss:$2 sm:$0xff]  ;;  %v2242_v29 = vld [vmem:[#allocation2 + $0x13] ss:$2 sm:$0xff] }
 0x6bf   : > { %v2246_v31 = vld [vmem:[#allocation2 + $0x14] ss:$2 sm:$0xff] }
 0x6c0   : > { %v2295_v49 = vsel %vm406_vm0, %v2293_v18, %v2294_v44  ;;  %v2309_v17 = vsel %vm421_vm1, %v2288_v6, %v2192_v57  ;;  %v2230_v63 = vld [vmem:[#allocation2 + $0x10] ss:$2 sm:$0xff] }
 0x6c1   : > { %2265 = vrot.lane.b32.xlu0 %v2240_v32, %s6848_s22  ;;  %v2310_v13 = vsel %vm406_vm0, %v2309_v17, %v2293_v18  ;;  %2314 = vst.msk [vmem:[#allocation2 + $0x8] sm:$0xff] %vm493_vm5, %v2295_v49  ;;  %2259 = vrot.lane.b32.xlu1 %v2238_v34, %s6850_s16 }
 0x6c2   : > { %2313 = vst.msk [vmem:[#allocation2] sm:$0xff] %vm493_vm5, %v2310_v13  ;;  %v4051_v13 = vld [vmem:[%s6824_s5 + $0x140] sm:$0xff] }
 0x6c5   : > { %2273 = vrot.lane.b32.xlu0 %v2244_v43, %s6849_s15  ;;  %2267 = vrot.lane.b32.xlu1 %v2242_v29, %s6848_s22  ;;  %v4052_v29 = vld [vmem:[%s6824_s5 + $0x148] sm:$0xff] }
 0x6c9   : > { %v2320_v4 = vld [vmem:[#allocation2 + $0x1] ss:$2 sm:$0xff]  ;;  %2275 = vrot.lane.b32.xlu1 %v2246_v31, %s6849_s15  ;;  %v4053_v31 = vld [vmem:[%s6824_s5 + $0x150] sm:$0xff] }
 0x6ca   : > { %2330 = vrot.lane.b32.xlu0 %v2320_v4, %s6851_s24  ;;  %v4764_v4 = vpack.c.bf16 %v4052_v29, %v4051_v13 }
 0x6cb   : > { %v4466_v21 = vpop.f32.mrb[22].mxu0 }
 0x6cc   : > { %v2185_v62 = vadd.f32 %v4466_v21, %v6122_v7  ;;  %v2179_v33 = vpop.f32.mrb[23].mxu0  ;;  %v4054_v21 = vld [vmem:[%s6824_s5 + $0x158] sm:$0xff]  ;;  %4765 = vmatprep.subr.bf16.mxu0 %v4764_v4 }
 0x6cd   : > { %v2180_v26 = vadd.f32 %v6122_v7, %v2179_v33  ;;  %v2318_v7 = vld [vmem:[#allocation2] ss:$2 sm:$0xff]  ;;  %4767 = vmatpush3.bf16.msra.mxu0 %v4764_v4  ;;  %v6256_v33 = vld [vmem:[%s6825_s6 + $0x3] ss:$0 sm:$0xff] }
 0x6ce   : > { %v2195_v37 = vmax.f32 %v2185_v62, 0.0  ;;  %v4768_v62 = vpack.c.bf16 %v4054_v21, %v4053_v31 }
 0x6cf   : > { %v2194_v46 = vmax.f32 %v2180_v26, 0.0 }
 0x6d0   : > { %v2298_v36 = vrot.slane %v2195_v37, 6  ;;  %v2305_v23 = vrot.slane %v2195_v37, 4  ;;  %v2307_v35 = vrot.slane %v2195_v37, 2  ;;  %4769 = vmatprep.subr.bf16.mxu0 %v4768_v62 }
 0x6d1   : > { %v2296_v61 = vrot.slane %v2194_v46, 6  ;;  %4771 = vmatpush3.bf16.msra.mxu0 %v4768_v62 }
 0x6d2   : > { %v2311_v30 = vsel %vm406_vm0, %v2298_v36, %v2305_v23 }
 0x6d3   : > { %v2312_v24 = vsel %vm996_vm11, %v2311_v30, %v2307_v35  ;;  %v2297_v39 = vsel %vm406_vm0, %v2294_v44, %v2296_v61  ;;  %v2299_v8 = vsel %vm406_vm0, %v2296_v61, %v2298_v36  ;;  %v4055_v61 = vld [vmem:[%s6824_s5 + $0x160] sm:$0xff]  ;;  %v4056_v30 = vld [vmem:[%s6824_s5 + $0x168] sm:$0xff] }
 0x6d4   : > { %2317 = vst.msk [vmem:[#allocation2 + $0x20] sm:$0xf] %vm2226_vm12, %v2312_v24 }
 0x6d5   : > { %2315 = vst.msk [vmem:[#allocation2 + $0x10] sm:$0xff] %vm493_vm5, %v2297_v39  ;;  %2316 = vst.msk [vmem:[#allocation2 + $0x18] sm:$0xff] %vm493_vm5, %v2299_v8  ;;  %v4772_v39 = vpack.c.bf16 %v4056_v30, %v4055_v61 }
 0x6d7   : > { %4773 = vmatprep.subr.bf16.mxu0 %v4772_v39 }
 0x6d8   : > { %4775 = vmatpush3.bf16.msra.mxu0 %v4772_v39 }
 0x6dc   : > { %v2322_v50 = vld [vmem:[#allocation2 + $0x2] ss:$2 sm:$0xff]  ;;  %v2324_v53 = vld [vmem:[#allocation2 + $0x3] ss:$2 sm:$0xff]  ;;  %v2323_v9 = vld [vmem:[#allocation2 + $0x12] ss:$2 sm:$0xff] }
 0x6dd   : > { %v2326_v48 = vld [vmem:[#allocation2 + $0x4] ss:$2 sm:$0xff]  ;;  %2338 = vrot.lane.b32.xlu0 %v2322_v50, %s6850_s16  ;;  %v2321_v1 = vld [vmem:[#allocation2 + $0x11] ss:$2 sm:$0xff]  ;;  %v2327_v25 = vld [vmem:[#allocation2 + $0x14] ss:$2 sm:$0xff] }
 0x6de   : > { %2368 = vst.msk [vmem:[#allocation2] sm:$0xff] %vm493_vm5, %v5862_v38  ;;  %2369 = vst.msk [vmem:[#allocation2 + $0x8] sm:$0xff] %vm493_vm5, %v5859_v27  ;;  %v2325_v14 = vld [vmem:[#allocation2 + $0x13] ss:$2 sm:$0xff]  ;;  %2332 = vrot.lane.b32.xlu1 %v2321_v1, %s6851_s24  ;;  %v2319_v54 = vld [vmem:[#allocation2 + $0x10] ss:$2 sm:$0xff] }
 0x6df   : > { %2370 = vst.msk [vmem:[#allocation2 + $0x10] sm:$0xff] %vm493_vm5, %v5930_v42  ;;  %2371 = vst.msk [vmem:[#allocation2 + $0x18] sm:$0xff] %vm493_vm5, %v5920_v3  ;;  %v4058_v1 = vld [vmem:[%s6824_s5 + $0x178] sm:$0xff] }
 0x6e1   : > { %2346 = vrot.lane.b32.xlu0 %v2324_v53, %s6848_s22 }
 0x6e2   : > { %2340 = vrot.lane.b32.xlu1 %v2323_v9, %s6850_s16 }
 0x6e5   : > { %v2372_v27 = vld [vmem:[#allocation2] ss:$2 sm:$0xff]  ;;  %v2374_v38 = vld [vmem:[#allocation2 + $0x1] ss:$2 sm:$0xff]  ;;  %2354 = vrot.lane.b32.xlu0 %v2326_v48, %s6849_s15  ;;  %v4057_v48 = vld [vmem:[%s6824_s5 + $0x170] sm:$0xff] }
 0x6e6   : > { %2380 = vst.msk [vmem:[#allocation2] sm:$0xff] %vm493_vm5, %v5968_v12  ;;  %2381 = vst.msk [vmem:[#allocation2 + $0x8] sm:$0xff] %vm493_vm5, %v5963_v40  ;;  %2348 = vrot.lane.b32.xlu1 %v2325_v14, %s6848_s22  ;;  %v2373_v42 = vld [vmem:[#allocation2 + $0x10] ss:$2 sm:$0xff]  ;;  %v2375_v41 = vld [vmem:[#allocation2 + $0x11] ss:$2 sm:$0xff]  ;;  %v2376_v46 = vadd.f32 %v2374_v38, %v2372_v27 }
 0x6e7   : > { %2382 = vst.msk [vmem:[#allocation2 + $0x10] sm:$0xff] %vm493_vm5, %v6019_v28  ;;  %2383 = vst.msk [vmem:[#allocation2 + $0x18] sm:$0xff] %vm493_vm5, %v6012_v20  ;;  %v2377_v26 = vadd.f32 %v2375_v41, %v2373_v42 }
 0x6e8   : > { %v2378_v8 = vmul.f32 0.5, %v2376_v46 }
 0x6ea   : > { %2356 = vrot.lane.b32.xlu1 %v2327_v25, %s6849_s15 }
 0x71c   : > { %v2250_v3 = vpop.permute.xlu0 %2249 }
 0x71d   : > { %v2279_v40 = vsel %vm493_vm5, %v6175_v11, %v2250_v3 }
 0x72f   : > { %v2258_v55 = vpop.permute.xlu0 %2257  ;;  %v2252_v16 = vpop.permute.xlu1 %2251 }
 0x730   : > { %v2281_v10 = vsel %vm498_vm6, %v2279_v40, %v2258_v55  ;;  %v2280_v20 = vsel %vm493_vm5, %v2230_v63, %v2252_v16  ;;  %v2379_v63 = vmul.f32 0.5, %v2377_v26 }
 0x733   : > { %v2266_v15 = vpop.permute.xlu0 %2265  ;;  %v2260_v12 = vpop.permute.xlu1 %2259 }
 0x734   : > { %v2283_v56 = vsel %vm503_vm7, %v2281_v10, %v2266_v15  ;;  %v2282_v45 = vsel %vm498_vm6, %v2280_v20, %v2260_v12  ;;  %v4059_v10 = vld [vmem:[%s6824_s5 + $0x180] sm:$0xff] }
 0x737   : > { %v2274_v2 = vpop.permute.xlu0 %2273  ;;  %v2268_v52 = vpop.permute.xlu1 %2267 }
 0x738   : > { %v2285_v28 = vsel %vm623_vm8, %v2283_v56, %v2274_v2  ;;  %v2284_v47 = vsel %vm503_vm7, %v2282_v45, %v2268_v52  ;;  %v4060_v56 = vld [vmem:[%s6824_s5 + $0x188] sm:$0xff] }
 0x739   : > { %4487 = vmatprep.mubr.msk.f32.mxu1 %vm810_vm9, %v2285_v28 }
 0x73b   : > { %v2276_v58 = vpop.permute.xlu1 %2275 }
 0x73c   : > { %v2286_v59 = vsel %vm623_vm8, %v2284_v47, %v2276_v58  ;;  %v2331_v60 = vpop.permute.xlu0 %2330  ;;  %v4780_v47 = vpack.c.bf16 %v4060_v56, %v4059_v10 }
 0x73d   : > { %4488 = vmatmul.mubr.msk.f32.vlgmr.msra.gmra.mrb[16].mxu1 %vm810_vm9, %v2286_v59  ;;  %v2360_v57 = vsel %vm493_vm5, %v2318_v7, %v2331_v60 }
 0x74f   : > { %v2339_v0 = vpop.permute.xlu0 %2338 }
 0x750   : > { %v2333_v19 = vpop.permute.xlu1 %2332  ;;  %v2362_v5 = vsel %vm498_vm6, %v2360_v57, %v2339_v0 }
 0x751   : > { %v2361_v11 = vsel %vm493_vm5, %v2319_v54, %v2333_v19  ;;  %v4776_v54 = vpack.c.bf16 %v4058_v1, %v4057_v48 }
 0x753   : > { %v2347_v51 = vpop.permute.xlu0 %2346  ;;  %4777 = vmatprep.subr.bf16.mxu0 %v4776_v54 }
 0x754   : > { %v2341_v22 = vpop.permute.xlu1 %2340  ;;  %v2364_v44 = vsel %vm503_vm7, %v2362_v5, %v2347_v51  ;;  %4779 = vmatpush3.bf16.msra.mxu0 %v4776_v54 }
 0x755   : > { %v2363_v43 = vsel %vm498_vm6, %v2361_v11, %v2341_v22  ;;  %4781 = vmatprep.subr.bf16.mxu0 %v4780_v47  ;;  %v2387_v11 = vld [vmem:[#allocation2 + $0x11] ss:$2 sm:$0xff] }
 0x757   : > { %v2355_v6 = vpop.permute.xlu0 %2354 }
 0x758   : > { %v2349_v18 = vpop.permute.xlu1 %2348  ;;  %v2366_v32 = vsel %vm623_vm8, %v2364_v44, %v2355_v6  ;;  %4783 = vmatpush3.bf16.msra.mxu0 %v4780_v47 }
 0x759   : > { %4490 = vmatprep.mubr.msk.f32.mxu1 %vm810_vm9, %v2366_v32  ;;  %v2365_v49 = vsel %vm503_vm7, %v2363_v43, %v2349_v18  ;;  %v2385_v32 = vld [vmem:[#allocation2 + $0x10] ss:$2 sm:$0xff]  ;;  %v2384_v43 = vld [vmem:[#allocation2] ss:$2 sm:$0xff] }
 0x75c   : > { %v2357_v17 = vpop.permute.xlu1 %2356 }
 0x75d   : > { %v2367_v34 = vsel %vm623_vm8, %v2365_v49, %v2357_v17  ;;  %v2386_v49 = vld [vmem:[#allocation2 + $0x1] ss:$2 sm:$0xff]  ;;  %v2389_v17 = vadd.f32 %v2387_v11, %v2385_v32 }
 0x75e   : > { %4491 = vmatmul.mubr.msk.f32.gmra.mrb[18].mxu1 %vm810_vm9, %v2367_v34  ;;  %v2388_v13 = vadd.f32 %v2386_v49, %v2384_v43 }
 0x75f   : > { %v2391_v21 = vmul.f32 0.5, %v2389_v17 }
 0x760   : > { %v2390_v26 = vmul.f32 0.5, %v2388_v13 }
 0x810   : > { %v4489_v37 = vpop.f32.mrb[16].mxu1 }
 0x811   : > { %v2480_v36 = vadd.f32 %v4489_v37, %v6256_v33  ;;  %v2474_v23 = vpop.f32.mrb[17].mxu1 }
 0x812   : > { %v2475_v35 = vadd.f32 %v6256_v33, %v2474_v23 }
 0x813   : > { %v2494_v24 = vmax.f32 %v2480_v36, 0.0 }
 0x814   : > { %v2493_v7 = vmax.f32 %v2475_v35, 0.0 }
 0x815   : > { %v6266_v50 = vadd.f32 %v2494_v24, %v2379_v63 }
 0x816   : > { %v6268_v53 = vadd.f32 %v2493_v7, %v2378_v8 }
 0x817   : > { %v2530_v9 = vrot.slane %v6266_v50, 6  ;;  %v2535_v14 = vrot.slane %v6266_v50, 4  ;;  %v2537_v25 = vrot.slane %v6266_v50, 2 }
 0x818   : > { %v2526_v27 = vrot.slane %v6268_v53, 2  ;;  %v2529_v38 = vrot.slane %v6268_v53, 6 }
 0x819   : > { %v2541_v42 = vsel %vm406_vm0, %v2530_v9, %v2535_v14 }
 0x81a   : > { %v2539_v41 = vsel %vm421_vm1, %v2526_v27, %v6268_v53  ;;  %v6285_v3 = vsel %vm406_vm0, %v2529_v38, %v2530_v9  ;;  %v2542_v55 = vsel %vm996_vm11, %v2541_v42, %v2537_v25 }
 0x81b   : > { %v6289_v16 = vsel %vm406_vm0, %v2539_v41, %v2529_v38  ;;  %v2546_v15 = vrot.slane %v6285_v3, 1  ;;  %v2548_v12 = vrot.slane %v2542_v55, 1  ;;  %v2557_v52 = vrot.slane %v6285_v3, 2 }
 0x81c   : > { %v2545_v40 = vrot.slane %v6289_v16, 1  ;;  %v2559_v28 = vrot.slane %v2542_v55, 2  ;;  %v2556_v45 = vrot.slane %v6289_v16, 2  ;;  %v2568_v59 = vrot.slane %v6285_v3, 3 }
 0x81d   : > { %v2549_v2 = vsel %vm427_vm3, %v2546_v15, %v2548_v12  ;;  %v2570_v60 = vrot.slane %v2542_v55, 3  ;;  %v2567_v19 = vrot.slane %v6289_v16, 3  ;;  %v2579_v22 = vrot.slane %v6285_v3, 4 }
 0x81e   : > { %2552 = vrot.lane.b32.xlu1 %v2549_v2, %s6851_s24  ;;  %v2547_v20 = vsel %vm427_vm3, %v2545_v40, %v2546_v15  ;;  %v2560_v58 = vsel %vm449_vm2, %v2557_v52, %v2559_v28  ;;  %v2558_v0 = vsel %vm449_vm2, %v2556_v45, %v2557_v52  ;;  %v2581_v57 = vrot.slane %v2542_v55, 4 }
 0x81f   : > { %2550 = vrot.lane.b32.xlu0 %v2547_v20, %s6851_s24  ;;  %v2571_v51 = vsel %vm471_vm4, %v2568_v59, %v2570_v60  ;;  %v2569_v5 = vsel %vm471_vm4, %v2567_v19, %v2568_v59  ;;  %v2578_v44 = vrot.slane %v6289_v16, 4 }
 0x820   : > { %v2582_v6 = vsel %vm1063_vm10, %v2579_v22, %v2581_v57 }
 0x821   : > { %v2580_v18 = vsel %vm1063_vm10, %v2578_v44, %v2579_v22 }
 0x822   : > { %2563 = vrot.lane.b32.xlu1 %v2560_v58, %s6850_s16 }
 0x823   : > { %2561 = vrot.lane.b32.xlu0 %v2558_v0, %s6850_s16 }
 0x826   : > { %2574 = vrot.lane.b32.xlu1 %v2571_v51, %s6848_s22 }
 0x827   : > { %2572 = vrot.lane.b32.xlu0 %v2569_v5, %s6848_s22 }
 0x82a   : > { %2585 = vrot.lane.b32.xlu1 %v2582_v6, %s6849_s15 }
 0x82b   : > { %2583 = vrot.lane.b32.xlu0 %v2580_v18, %s6849_s15 }
 0x831   : > { %v4492_v34 = vpop.f32.mrb[18].mxu1 }
 0x832   : > { %v2490_v29 = vadd.f32 %v4492_v34, %v6256_v33  ;;  %v2484_v31 = vpop.f32.mrb[19].mxu1 }
 0x833   : > { %v2485_v4 = vadd.f32 %v6256_v33, %v2484_v31 }
 0x834   : > { %v2496_v62 = vmax.f32 %v2490_v29, 0.0 }
 0x835   : > { %v2495_v37 = vmax.f32 %v2485_v4, 0.0 }
 0x836   : > { %v6323_v46 = vadd.f32 %v2496_v62, %v2391_v21 }
 0x837   : > { %v6325_v36 = vadd.f32 %v2495_v37, %v2390_v26 }
 0x838   : > { %v2602_v23 = vrot.slane %v6323_v46, 6  ;;  %v2607_v35 = vrot.slane %v6323_v46, 4  ;;  %v2609_v61 = vrot.slane %v6323_v46, 2 }
 0x839   : > { %v2598_v30 = vrot.slane %v6325_v36, 2  ;;  %v2601_v63 = vrot.slane %v6325_v36, 6 }
 0x83a   : > { %v2613_v33 = vsel %vm406_vm0, %v2602_v23, %v2607_v35 }
 0x83b   : > { %v2611_v24 = vsel %vm421_vm1, %v2598_v30, %v6325_v36  ;;  %v2603_v39 = vsel %vm406_vm0, %v2601_v63, %v2602_v23  ;;  %v2614_v8 = vsel %vm996_vm11, %v2613_v33, %v2609_v61  ;;  %v4071_v61 = vld [vmem:[%s6825_s6 + $0x4] ss:$0 sm:$0xff] }
 0x83c   : > { %v2612_v7 = vsel %vm406_vm0, %v2611_v24, %v2601_v63  ;;  %v2618_v48 = vrot.slane %v2603_v39, 1  ;;  %v2620_v1 = vrot.slane %v2614_v8, 1  ;;  %v2629_v25 = vrot.slane %v2603_v39, 2 }
 0x83d   : > { %v2617_v9 = vrot.slane %v2612_v7, 1  ;;  %v2631_v54 = vrot.slane %v2614_v8, 2  ;;  %v2628_v38 = vrot.slane %v2612_v7, 2  ;;  %v2640_v41 = vrot.slane %v2603_v39, 3 }
 0x83e   : > { %v2621_v14 = vsel %vm427_vm3, %v2618_v48, %v2620_v1  ;;  %v2642_v55 = vrot.slane %v2614_v8, 3  ;;  %v2639_v12 = vrot.slane %v2612_v7, 3  ;;  %v2651_v10 = vrot.slane %v2603_v39, 4 }
 0x83f   : > { %2624 = vrot.lane.b32.xlu1 %v2621_v14, %s6851_s24  ;;  %v2619_v27 = vsel %vm427_vm3, %v2617_v9, %v2618_v48  ;;  %v2632_v42 = vsel %vm449_vm2, %v2629_v25, %v2631_v54  ;;  %v2630_v15 = vsel %vm449_vm2, %v2628_v38, %v2629_v25  ;;  %v2653_v56 = vrot.slane %v2614_v8, 4 }
 0x840   : > { %2622 = vrot.lane.b32.xlu0 %v2619_v27, %s6851_s24  ;;  %v2643_v40 = vsel %vm471_vm4, %v2640_v41, %v2642_v55  ;;  %v2641_v2 = vsel %vm471_vm4, %v2639_v12, %v2640_v41  ;;  %v2650_v52 = vrot.slane %v2612_v7, 4  ;;  %v4061_v41 = vld [vmem:[%s6824_s5 + $0x190] sm:$0xff]  ;;  %v4062_v55 = vld [vmem:[%s6824_s5 + $0x198] sm:$0xff] }
 0x841   : > { %v2654_v28 = vsel %vm1063_vm10, %v2651_v10, %v2653_v56  ;;  %v4784_v12 = vpack.c.bf16 %v4062_v55, %v4061_v41  ;;  %v4065_v56 = vld [vmem:[%s6824_s5 + $0x1b0] sm:$0xff] }
 0x842   : > { %v2652_v20 = vsel %vm1063_vm10, %v2650_v52, %v2651_v10 }
 0x843   : > { %2635 = vrot.lane.b32.xlu1 %v2632_v42, %s6850_s16  ;;  %4785 = vmatprep.subr.bf16.mxu1 %v4784_v12 }
 0x844   : > { %2633 = vrot.lane.b32.xlu0 %v2630_v15, %s6850_s16  ;;  %v4063_v15 = vld [vmem:[%s6824_s5 + $0x1a0] sm:$0xff]  ;;  %4787 = vmatpush3.bf16.msra.mxu1 %v4784_v12 }
 0x845   : > { %v4076_v12 = vld [vmem:[%s6825_s6 + $0x5] ss:$0 sm:$0xff] }
 0x847   : > { %2646 = vrot.lane.b32.xlu1 %v2643_v40, %s6848_s22  ;;  %v4064_v40 = vld [vmem:[%s6824_s5 + $0x1a8] sm:$0xff] }
 0x848   : > { %2644 = vrot.lane.b32.xlu0 %v2641_v2, %s6848_s22  ;;  %v4788_v10 = vpack.c.bf16 %v4064_v40, %v4063_v15 }
 0x84a   : > { %4789 = vmatprep.subr.bf16.mxu1 %v4788_v10 }
 0x84b   : > { %2657 = vrot.lane.b32.xlu1 %v2654_v28, %s6849_s15  ;;  %v4066_v28 = vld [vmem:[%s6824_s5 + $0x1b8] sm:$0xff]  ;;  %4791 = vmatpush3.bf16.msra.mxu1 %v4788_v10 }
 0x84c   : > { %2655 = vrot.lane.b32.xlu0 %v2652_v20, %s6849_s15  ;;  %v4792_v20 = vpack.c.bf16 %v4066_v28, %v4065_v56  ;;  %v4083_v28 = vld [vmem:[%s6824_s5 + $0x200] sm:$0xff] }
 0x84e   : > { %4793 = vmatprep.subr.bf16.mxu1 %v4792_v20 }
 0x84f   : > { %4795 = vmatpush3.bf16.msra.mxu1 %v4792_v20  ;;  %v4084_v20 = vld [vmem:[%s6824_s5 + $0x208] sm:$0xff] }
 0x890   : > { %v2553_v45 = vpop.permute.xlu1 %2552 }
 0x891   : > { %v2551_v47 = vpop.permute.xlu0 %2550  ;;  %v2590_v51 = vsel %vm493_vm5, %v6285_v3, %v2553_v45 }
 0x892   : > { %v2589_v19 = vsel %vm493_vm5, %v6289_v16, %v2551_v47 }
 0x894   : > { %v2564_v58 = vpop.permute.xlu1 %2563 }
 0x895   : > { %v2562_v59 = vpop.permute.xlu0 %2561  ;;  %v2592_v5 = vsel %vm498_vm6, %v2590_v51, %v2564_v58 }
 0x896   : > { %v2591_v22 = vsel %vm498_vm6, %v2589_v19, %v2562_v59 }
 0x898   : > { %v2575_v60 = vpop.permute.xlu1 %2574 }
 0x899   : > { %v2573_v0 = vpop.permute.xlu0 %2572  ;;  %v2594_v18 = vsel %vm503_vm7, %v2592_v5, %v2575_v60 }
 0x89a   : > { %v2593_v44 = vsel %vm503_vm7, %v2591_v22, %v2573_v0 }
 0x89c   : > { %v2586_v57 = vpop.permute.xlu1 %2585 }
 0x89d   : > { %v2584_v6 = vpop.permute.xlu0 %2583  ;;  %v2596_v11 = vsel %vm623_vm8, %v2594_v18, %v2586_v57 }
 0x89e   : > { %v2595_v32 = vsel %vm623_vm8, %v2593_v44, %v2584_v6  ;;  %v4067_v44 = vld [vmem:[%s6824_s5 + $0x1c0] sm:$0xff]  ;;  %v4068_v6 = vld [vmem:[%s6824_s5 + $0x1c8] sm:$0xff] }
 0x89f   : > { %4513 = vmatprep.mubr.msk.f32.mxu0 %vm810_vm9, %v2595_v32 }
 0x8a0   : > { %4514 = vmatmul.mubr.msk.f32.vlgmr.msra.gmra.mrb[24].mxu0 %vm810_vm9, %v2596_v11  ;;  %v4796_v11 = vpack.c.bf16 %v4068_v6, %v4067_v44 }
 0x8a2   : > { %4797 = vmatprep.subr.bf16.mxu1 %v4796_v11 }
 0x8a3   : > { %4799 = vmatpush3.bf16.msra.mxu1 %v4796_v11 }
 0x8b1   : > { %v2625_v16 = vpop.permute.xlu1 %2624 }
 0x8b2   : > { %v2623_v3 = vpop.permute.xlu0 %2622  ;;  %v2662_v29 = vsel %vm493_vm5, %v2603_v39, %v2625_v16 }
 0x8b3   : > { %v2661_v13 = vsel %vm493_vm5, %v2612_v7, %v2623_v3 }
 0x8b5   : > { %v2636_v43 = vpop.permute.xlu1 %2635 }
 0x8b6   : > { %v2634_v49 = vpop.permute.xlu0 %2633  ;;  %v2664_v21 = vsel %vm498_vm6, %v2662_v29, %v2636_v43  ;;  %v4070_v29 = vld [vmem:[%s6824_s5 + $0x1d8] sm:$0xff] }
 0x8b7   : > { %v2663_v31 = vsel %vm498_vm6, %v2661_v13, %v2634_v49  ;;  %v4069_v13 = vld [vmem:[%s6824_s5 + $0x1d0] sm:$0xff] }
 0x8b9   : > { %v2647_v17 = vpop.permute.xlu1 %2646 }
 0x8ba   : > { %v2645_v34 = vpop.permute.xlu0 %2644  ;;  %v2666_v37 = vsel %vm503_vm7, %v2664_v21, %v2647_v17 }
 0x8bb   : > { %v2665_v62 = vsel %vm503_vm7, %v2663_v31, %v2645_v34  ;;  %v4800_v31 = vpack.c.bf16 %v4070_v29, %v4069_v13 }
 0x8bd   : > { %v2658_v4 = vpop.permute.xlu1 %2657  ;;  %4801 = vmatprep.subr.bf16.mxu1 %v4800_v31 }
 0x8be   : > { %v2656_v26 = vpop.permute.xlu0 %2655  ;;  %v2668_v35 = vsel %vm623_vm8, %v2666_v37, %v2658_v4  ;;  %4803 = vmatpush3.bf16.msra.mxu1 %v4800_v31 }
 0x8bf   : > { %v2667_v23 = vsel %vm623_vm8, %v2665_v62, %v2656_v26 }
 0x8c0   : > { %4516 = vmatprep.mubr.msk.f32.mxu0 %vm810_vm9, %v2667_v23 }
 0x8c1   : > { %4517 = vmatmul.mubr.msk.f32.gmra.mrb[26].mxu0 %vm810_vm9, %v2668_v35 }
 0x973   : > { %v4515_v30 = vpop.f32.mrb[24].mxu0 }
 0x974   : > { %v2757_v63 = vadd.f32 %v4515_v30, %v4071_v61  ;;  %v2751_v33 = vpop.f32.mrb[25].mxu0 }
 0x975   : > { %v2752_v24 = vadd.f32 %v4071_v61, %v2751_v33 }
 0x976   : > { %v2771_v39 = vmax.f32 %v2757_v63, 0.0 }
 0x977   : > { %v2770_v8 = vmax.f32 %v2752_v24, 0.0 }
 0x978   : > { %v2779_v7 = vrot.slane %v2771_v39, 6  ;;  %v2784_v48 = vrot.slane %v2771_v39, 4  ;;  %v2786_v1 = vrot.slane %v2771_v39, 2 }
 0x979   : > { %v2775_v9 = vrot.slane %v2770_v8, 2  ;;  %v2778_v14 = vrot.slane %v2770_v8, 6 }
 0x97a   : > { %v2790_v25 = vsel %vm406_vm0, %v2779_v7, %v2784_v48 }
 0x97b   : > { %v2791_v54 = vsel %vm996_vm11, %v2790_v25, %v2786_v1  ;;  %v2780_v27 = vsel %vm406_vm0, %v2778_v14, %v2779_v7  ;;  %v2788_v38 = vsel %vm421_vm1, %v2775_v9, %v2770_v8  ;;  %v4079_v25 = vld [vmem:[%s6824_s5 + $0x1e0] sm:$0xff] }
 0x97c   : > { %2794 = vst.msk [vmem:[#allocation2 + $0x10] sm:$0xf] %vm2226_vm12, %v2791_v54  ;;  %v2789_v42 = vsel %vm406_vm0, %v2788_v38, %v2778_v14  ;;  %v4080_v54 = vld [vmem:[%s6824_s5 + $0x1e8] sm:$0xff] }
 0x97d   : > { %2793 = vst.msk [vmem:[#allocation2 + $0x8] sm:$0xff] %vm493_vm5, %v2780_v27  ;;  %2792 = vst.msk [vmem:[#allocation2] sm:$0xff] %vm493_vm5, %v2789_v42  ;;  %v4081_v27 = vld [vmem:[%s6824_s5 + $0x1f0] sm:$0xff]  ;;  %v4804_v38 = vpack.c.bf16 %v4080_v54, %v4079_v25  ;;  %v4082_v42 = vld [vmem:[%s6824_s5 + $0x1f8] sm:$0xff] }
 0x97e   : > { %v4808_v41 = vpack.c.bf16 %v4082_v42, %v4081_v27 }
 0x97f   : > { %4805 = vmatprep.subr.bf16.mxu0 %v4804_v38 }
 0x980   : > { %4807 = vmatpush3.bf16.msra.mxu0 %v4804_v38 }
 0x981   : > { %4809 = vmatprep.subr.bf16.mxu0 %v4808_v41 }
 0x984   : > { %v2797_v2 = vld [vmem:[#allocation2 + $0x2] ss:$2 sm:$0xff]  ;;  %v2796_v52 = vld [vmem:[#allocation2 + $0x1] ss:$2 sm:$0xff]  ;;  %4811 = vmatpush3.bf16.msra.mxu0 %v4808_v41 }
 0x985   : > { %2805 = vrot.lane.b32.xlu1 %v2797_v2, %s6850_s16  ;;  %2801 = vrot.lane.b32.xlu0 %v2796_v52, %s6851_s24  ;;  %v2798_v45 = vld [vmem:[#allocation2 + $0x3] ss:$2 sm:$0xff]  ;;  %v2799_v47 = vld [vmem:[#allocation2 + $0x4] ss:$2 sm:$0xff] }
 0x986   : > { %v2795_v3 = vld [vmem:[#allocation2] ss:$2 sm:$0xff] }
 0x989   : > { %2809 = vrot.lane.b32.xlu1 %v2798_v45, %s6848_s22 }
 0x98d   : > { %2813 = vrot.lane.b32.xlu1 %v2799_v47, %s6849_s15  ;;  %v4812_v47 = vpack.c.bf16 %v4084_v20, %v4083_v28 }
 0x98f   : > { %4813 = vmatprep.subr.bf16.mxu0 %v4812_v47 }
 0x990   : > { %4815 = vmatpush3.bf16.msra.mxu0 %v4812_v47 }
 0x994   : > { %v4518_v58 = vpop.f32.mrb[26].mxu0 }
 0x995   : > { %v2767_v59 = vadd.f32 %v4518_v58, %v4071_v61  ;;  %v2761_v60 = vpop.f32.mrb[27].mxu0 }
 0x996   : > { %v2762_v0 = vadd.f32 %v4071_v61, %v2761_v60 }
 0x997   : > { %v2773_v19 = vmax.f32 %v2767_v59, 0.0 }
 0x998   : > { %v2772_v51 = vmax.f32 %v2762_v0, 0.0 }
 0x999   : > { %v2825_v22 = vrot.slane %v2773_v19, 6  ;;  %v2830_v57 = vrot.slane %v2773_v19, 4  ;;  %v2832_v5 = vrot.slane %v2773_v19, 2 }
 0x99a   : > { %v2821_v18 = vrot.slane %v2772_v51, 2  ;;  %v2824_v32 = vrot.slane %v2772_v51, 6 }
 0x99b   : > { %v2836_v16 = vsel %vm406_vm0, %v2825_v22, %v2830_v57 }
 0x99c   : > { %v2837_v43 = vsel %vm996_vm11, %v2836_v16, %v2832_v5  ;;  %v2826_v49 = vsel %vm406_vm0, %v2824_v32, %v2825_v22  ;;  %v2834_v17 = vsel %vm421_vm1, %v2821_v18, %v2772_v51  ;;  %v4085_v51 = vld [vmem:[%s6824_s5 + $0x210] sm:$0xff]  ;;  %v4086_v22 = vld [vmem:[%s6824_s5 + $0x218] sm:$0xff] }
 0x99d   : > { %2840 = vst.msk [vmem:[#allocation2 + $0x10] sm:$0xf] %vm2226_vm12, %v2837_v43  ;;  %v2835_v34 = vsel %vm406_vm0, %v2834_v17, %v2824_v32  ;;  %v4816_v5 = vpack.c.bf16 %v4086_v22, %v4085_v51 }
 0x99e   : > { %2839 = vst.msk [vmem:[#allocation2 + $0x8] sm:$0xff] %vm493_vm5, %v2826_v49  ;;  %2838 = vst.msk [vmem:[#allocation2] sm:$0xff] %vm493_vm5, %v2835_v34 }
 0x99f   : > { %4817 = vmatprep.subr.bf16.mxu0 %v4816_v5 }
 0x9a0   : > { %4819 = vmatpush3.bf16.msra.mxu0 %v4816_v5 }
 0x9a5   : > { %v2845_v4 = vld [vmem:[#allocation2 + $0x4] ss:$2 sm:$0xff]  ;;  %v2842_v21 = vld [vmem:[#allocation2 + $0x1] ss:$2 sm:$0xff] }
 0x9a6   : > { %v2843_v62 = vld [vmem:[#allocation2 + $0x2] ss:$2 sm:$0xff]  ;;  %2859 = vrot.lane.b32.xlu1 %v2845_v4, %s6849_s15  ;;  %2847 = vrot.lane.b32.xlu0 %v2842_v21, %s6851_s24  ;;  %v2844_v26 = vld [vmem:[#allocation2 + $0x3] ss:$2 sm:$0xff] }
 0x9a7   : > { %v2841_v37 = vld [vmem:[#allocation2] ss:$2 sm:$0xff] }
 0x9a8   : > { %2866 = vst.msk [vmem:[#allocation2] sm:$0xff] %vm493_vm5, %v6268_v53  ;;  %2867 = vst.msk [vmem:[#allocation2 + $0x8] sm:$0xff] %vm493_vm5, %v6266_v50 }
 0x9aa   : > { %2851 = vrot.lane.b32.xlu0 %v2843_v62, %s6850_s16 }
 0x9ae   : > { %2855 = vrot.lane.b32.xlu0 %v2844_v26, %s6848_s22 }
 0x9af   : > { %v2868_v23 = vld [vmem:[#allocation2] ss:$2 sm:$0xff]  ;;  %v2869_v35 = vld [vmem:[#allocation2 + $0x1] ss:$2 sm:$0xff] }
 0x9b0   : > { %2872 = vst.msk [vmem:[#allocation2] sm:$0xff] %vm493_vm5, %v6325_v36  ;;  %2873 = vst.msk [vmem:[#allocation2 + $0x8] sm:$0xff] %vm493_vm5, %v6323_v46  ;;  %v2870_v56 = vadd.f32 %v2869_v35, %v2868_v23 }
 0x9b2   : > { %v2871_v60 = vmul.f32 0.5, %v2870_v56 }
 0x9b7   : > { %v2874_v55 = vld [vmem:[#allocation2] ss:$2 sm:$0xff]  ;;  %v2875_v15 = vld [vmem:[#allocation2 + $0x1] ss:$2 sm:$0xff] }
 0x9b8   : > { %v2876_v40 = vadd.f32 %v2875_v15, %v2874_v55 }
 0x9ba   : > { %v2877_v58 = vmul.f32 0.5, %v2876_v40 }
 0x9f7   : > { %v2806_v61 = vpop.permute.xlu1 %2805  ;;  %v2802_v30 = vpop.permute.xlu0 %2801 }
 0x9f8   : > { %v2816_v63 = vsel %vm493_vm5, %v2795_v3, %v2802_v30  ;;  %v4088_v30 = vld [vmem:[%s6824_s5 + $0x228] sm:$0xff] }
 0x9f9   : > { %v2817_v33 = vsel %vm498_vm6, %v2816_v63, %v2806_v61  ;;  %v4087_v61 = vld [vmem:[%s6824_s5 + $0x220] sm:$0xff] }
 0x9fb   : > { %v2810_v53 = vpop.permute.xlu1 %2809 }
 0x9fc   : > { %v2818_v50 = vsel %vm503_vm7, %v2817_v33, %v2810_v53 }
 0x9ff   : > { %v2814_v24 = vpop.permute.xlu1 %2813 }
 0xa00   : > { %v2819_v39 = vsel %vm623_vm8, %v2818_v50, %v2814_v24  ;;  %v4820_v50 = vpack.c.bf16 %v4088_v30, %v4087_v61 }
 0xa01   : > { %4539 = vmatprep.mubr.msk.f32.mxu1 %vm810_vm9, %v2819_v39 }
 0xa02   : > { %4821 = vmatprep.subr.bf16.mxu0 %v4820_v50 }
 0xa03   : > { %4823 = vmatpush3.bf16.msra.mxu0 %v4820_v50 }
 0xa18   : > { %v2848_v8 = vpop.permute.xlu0 %2847  ;;  %v2860_v1 = vpop.permute.xlu1 %2859 }
 0xa19   : > { %v2862_v36 = vsel %vm493_vm5, %v2841_v37, %v2848_v8 }
 0xa1c   : > { %v2852_v7 = vpop.permute.xlu0 %2851 }
 0xa1d   : > { %v2863_v46 = vsel %vm498_vm6, %v2862_v36, %v2852_v7 }
 0xa20   : > { %v2856_v48 = vpop.permute.xlu0 %2855 }
 0xa21   : > { %v2864_v9 = vsel %vm503_vm7, %v2863_v46, %v2856_v48 }
 0xa22   : > { %v2865_v14 = vsel %vm623_vm8, %v2864_v9, %v2860_v1 }
 0xa23   : > { %4540 = vmatmul.mubr.msk.f32.vlgmr.msra.gmra.mrb[20].mxu1 %vm810_vm9, %v2865_v14 }
 0xaf6   : > { %v4541_v10 = vpop.f32.mrb[20].mxu1 }
 0xaf7   : > { %v2960_v2 = vadd.f32 %v4541_v10, %v4076_v12  ;;  %v2954_v52 = vpop.f32.mrb[21].mxu1 }
 0xaf8   : > { %v2955_v45 = vadd.f32 %v4076_v12, %v2954_v52 }
 0xaf9   : > { %v2964_v59 = vmax.f32 %v2960_v2, 0.0 }
 0xafa   : > { %v2963_v0 = vmax.f32 %v2955_v45, 0.0 }
 0xafb   : > { %v6472_v19 = vadd.f32 %v2964_v59, %v2877_v58 }
 0xafc   : > { %v6480_v57 = vadd.f32 %v2963_v0, %v2871_v60  ;;  %v4099_v60 = vld [vmem:[%s6825_s6 + $0x6] ss:$0 sm:$0xff] }
 0xafd   : > { %v3033_v44 = vrot.slane %v6472_v19, 2  ;;  %v3035_v6 = vrot.slane %v6472_v19, 6  ;;  %v3037_v18 = vrot.slane %v6472_v19, 4 }
 0xafe   : > { %v2992_v32 = vrot.slane %v6480_v57, 2  ;;  %v2994_v11 = vrot.slane %v6480_v57, 6  ;;  %v2996_v16 = vrot.slane %v6480_v57, 4 }
 0xaff   : > { %v3039_v3 = vsel %vm421_vm1, %v3033_v44, %v6472_v19  ;;  %v3041_v43 = vsel %vm406_vm0, %v3035_v6, %v3037_v18 }
 0xb00   : > { %v2998_v49 = vsel %vm421_vm1, %v2992_v32, %v6480_v57  ;;  %v3040_v17 = vsel %vm406_vm0, %v3039_v3, %v3035_v6  ;;  %v3042_v34 = vsel %vm996_vm11, %v3041_v43, %v3033_v44  ;;  %v3000_v13 = vsel %vm406_vm0, %v2994_v11, %v2996_v16  ;;  %v4090_v16 = vld [vmem:[%s6824_s5 + $0x238] sm:$0xff] }
 0xb01   : > { %v3045_v29 = vrot.slane %v3040_v17, 1  ;;  %v3046_v31 = vrot.slane %v3042_v34, 1  ;;  %v2999_v4 = vsel %vm406_vm0, %v2998_v49, %v2994_v11  ;;  %v3001_v21 = vsel %vm996_vm11, %v3000_v13, %v2992_v32  ;;  %v4089_v11 = vld [vmem:[%s6824_s5 + $0x230] sm:$0xff] }
 0xb02   : > { %v3010_v62 = vrot.slane %v2999_v4, 2  ;;  %v3011_v26 = vrot.slane %v3001_v21, 2  ;;  %v3051_v23 = vrot.slane %v3040_v17, 2  ;;  %v3052_v35 = vrot.slane %v3042_v34, 2 }
 0xb03   : > { %v3047_v37 = vsel %vm427_vm3, %v3045_v29, %v3046_v31  ;;  %v3016_v53 = vrot.slane %v2999_v4, 3  ;;  %v3017_v33 = vrot.slane %v3001_v21, 3  ;;  %v3004_v39 = vrot.slane %v2999_v4, 1  ;;  %v4091_v31 = vld [vmem:[%s6824_s5 + $0x240] sm:$0xff] }
 0xb04   : > { %3048 = vrot.lane.b32.xlu0 %v3047_v37, %s6851_s24  ;;  %v3012_v63 = vsel %vm449_vm2, %v3010_v62, %v3011_v26  ;;  %v3053_v24 = vsel %vm449_vm2, %v3051_v23, %v3052_v35  ;;  %v3005_v8 = vrot.slane %v3001_v21, 1  ;;  %v3022_v36 = vrot.slane %v2999_v4, 4  ;;  %v4093_v23 = vld [vmem:[%s6824_s5 + $0x250] sm:$0xff]  ;;  %v4094_v35 = vld [vmem:[%s6824_s5 + $0x258] sm:$0xff] }
 0xb05   : > { %3013 = vrot.lane.b32.xlu1 %v3012_v63, %s6850_s16  ;;  %v3018_v7 = vsel %vm471_vm4, %v3016_v53, %v3017_v33  ;;  %v3023_v46 = vrot.slane %v3001_v21, 4  ;;  %v3057_v1 = vrot.slane %v3040_v17, 3  ;;  %v3058_v9 = vrot.slane %v3042_v34, 3 }
 0xb06   : > { %v3006_v48 = vsel %vm427_vm3, %v3004_v39, %v3005_v8  ;;  %v3063_v25 = vrot.slane %v3040_v17, 4  ;;  %v3064_v54 = vrot.slane %v3042_v34, 4  ;;  %v4990_v3 = vmov 0.0|0.0  }
 0xb07   : > { %v3024_v14 = vsel %vm1063_vm10, %v3022_v36, %v3023_v46  ;;  %v3059_v27 = vsel %vm471_vm4, %v3057_v1, %v3058_v9  ;;  %4824 = vmatprep.subr.bf16.mxu1 %v4990_v3  ;;  %v4825_v43 = vpack.c.bf16 %v4090_v16, %v4089_v11  ;;  %4839 = vmatprep.subr.bf16.mxu0 %v4990_v3  ;;  %v4095_v36 = vld [vmem:[%s6824_s5 + $0x260] sm:$0xff]  ;;  %v4096_v46 = vld [vmem:[%s6824_s5 + $0x268] sm:$0xff]  ;;  %v4097_v1 = vld [vmem:[%s6824_s5 + $0x270] sm:$0xff] }
 0xb08   : > { %3054 = vrot.lane.b32.xlu0 %v3053_v24, %s6850_s16  ;;  %v3065_v38 = vsel %vm1063_vm10, %v3063_v25, %v3064_v54  ;;  %v4831_v63 = vpack.c.bf16 %v4094_v35, %v4093_v23  ;;  %v4098_v9 = vld [vmem:[%s6824_s5 + $0x278] sm:$0xff]  ;;  %v3338_v23 = vld [vmem:[%s6826_s7 + $0x28] sm:$0xff] }
 0xb09   : > { %3019 = vrot.lane.b32.xlu1 %v3018_v7, %s6848_s22  ;;  %4826 = vmatpush3.bf16.msra.mxu1 %v4825_v43  ;;  %v4102_v43 = vld [vmem:[%s6825_s6 + $0x7] ss:$0 sm:$0xff] }
 0xb0a   : > { %4827 = vmatprep.subr.bf16.mxu1 %v4990_v3 }
 0xb0c   : > { %3007 = vrot.lane.b32.xlu0 %v3006_v48, %s6851_s24  ;;  %v4834_v48 = vpack.c.bf16 %v4096_v46, %v4095_v36 }
 0xb0d   : > { %3025 = vrot.lane.b32.xlu1 %v3024_v14, %s6849_s15  ;;  %v4837_v14 = vpack.c.bf16 %v4098_v9, %v4097_v1 }
 0xb10   : > { %3060 = vrot.lane.b32.xlu0 %v3059_v27, %s6848_s22 }
 0xb11   : > { %3066 = vrot.lane.b32.xlu1 %v3065_v38, %s6849_s15 }
 0xb76   : > { %v3049_v42 = vpop.permute.xlu0 %3048 }
 0xb77   : > { %v3014_v41 = vpop.permute.xlu1 %3013  ;;  %v3069_v2 = vsel %vm493_vm5, %v3040_v17, %v3049_v42 }
 0xb7a   : > { %v3055_v55 = vpop.permute.xlu0 %3054 }
 0xb7b   : > { %v3020_v15 = vpop.permute.xlu1 %3019  ;;  %v3070_v28 = vsel %vm498_vm6, %v3069_v2, %v3055_v55 }
 0xb7e   : > { %v3008_v12 = vpop.permute.xlu0 %3007 }
 0xb7f   : > { %v3028_v40 = vsel %vm493_vm5, %v2999_v4, %v3008_v12  ;;  %v3026_v10 = vpop.permute.xlu1 %3025  ;;  %v4092_v4 = vld [vmem:[%s6824_s5 + $0x248] sm:$0xff] }
 0xb80   : > { %v3029_v56 = vsel %vm498_vm6, %v3028_v40, %v3014_v41  ;;  %v4828_v21 = vpack.c.bf16 %v4092_v4, %v4091_v31  ;;  %v4992_v41 = vmov 0.0  }
 0xb81   : > { %v3030_v52 = vsel %vm503_vm7, %v3029_v56, %v3020_v15  ;;  %4585 = vmatprep.mubr.msk.f32.mxu1 %vm4991_vm13, %v4992_v41 }
 0xb82   : > { %v3031_v20 = vsel %vm623_vm8, %v3030_v52, %v3026_v10  ;;  %v3061_v45 = vpop.permute.xlu0 %3060  ;;  %4829 = vmatpush3.bf16.msra.mxu1 %v4828_v21 }
 0xb83   : > { %v3071_v47 = vsel %vm503_vm7, %v3070_v28, %v3061_v45  ;;  %v3067_v58 = vpop.permute.xlu1 %3066  ;;  %4562 = vmatprep.mubr.msk.f32.mxu0 %vm810_vm9, %v3031_v20  ;;  %4830 = vmatprep.subr.bf16.mxu1 %v4990_v3 }
 0xb84   : > { %v3072_v59 = vsel %vm623_vm8, %v3071_v47, %v3067_v58 }
 0xb85   : > { %4563 = vmatmul.mubr.msk.f32.vlgmr.msra.gmra.mrb[28].mxu0 %vm810_vm9, %v3072_v59 }
 0xb86   : > { %4832 = vmatpush3.bf16.msra.mxu1 %v4831_v63  ;;  %4600 = vmatprep.mubr.msk.f32.mxu0 %vm4991_vm13, %v4992_v41 }
 0xb87   : > { %4833 = vmatprep.subr.bf16.mxu1 %v4990_v3 }
 0xb8a   : > { %4835 = vmatpush3.bf16.msra.mxu1 %v4834_v48 }
 0xb8b   : > { %4836 = vmatprep.subr.bf16.mxu1 %v4990_v3 }
 0xb8e   : > { %4838 = vmatpush3.bf16.msra.mxu1 %v4837_v14 }
 0xb8f   : > { %4848 = vmatprep.subr.bf16.mxu1 %v4990_v3 }
 0xc58   : > { %v4564_v0 = vpop.f32.mrb[28].mxu0 }
 0xc59   : > { %v3149_v51 = vpop.f32.mrb[29].mxu0  ;;  %v3155_v5 = vadd.f32 %v4564_v0, %v4099_v60 }
 0xc5a   : > { %v3150_v22 = vadd.f32 %v4099_v60, %v3149_v51 }
 0xc5b   : > { %v3159_v49 = vmax.f32 %v3155_v5, 0.0 }
 0xc5c   : > { %v3158_v44 = vmax.f32 %v3150_v22, 0.0 }
 0xc5d   : > { %v3199_v62 = vrot.slane %v3159_v49, 2  ;;  %v3201_v26 = vrot.slane %v3159_v49, 6  ;;  %v3203_v37 = vrot.slane %v3159_v49, 4 }
 0xc5e   : > { %v3161_v6 = vrot.slane %v3158_v44, 2  ;;  %v3163_v18 = vrot.slane %v3158_v44, 6  ;;  %v3165_v32 = vrot.slane %v3158_v44, 4 }
 0xc5f   : > { %v3205_v61 = vsel %vm421_vm1, %v3199_v62, %v3159_v49  ;;  %v3207_v30 = vsel %vm406_vm0, %v3201_v26, %v3203_v37  ;;  %v3337_v37 = vld [vmem:[%s6826_s7 + $0x20] sm:$0xff] }
 0xc60   : > { %v3167_v17 = vsel %vm421_vm1, %v3161_v6, %v3158_v44  ;;  %v3169_v34 = vsel %vm406_vm0, %v3163_v18, %v3165_v32  ;;  %v3206_v39 = vsel %vm406_vm0, %v3205_v61, %v3201_v26  ;;  %v3208_v8 = vsel %vm996_vm11, %v3207_v30, %v3199_v62  ;;  %v3333_v44 = vld [vmem:[%s6826_s7] sm:$0xff] }
 0xc61   : > { %v3168_v13 = vsel %vm406_vm0, %v3167_v17, %v3163_v18  ;;  %v3170_v29 = vsel %vm996_vm11, %v3169_v34, %v3161_v6  ;;  %v3334_v6 = vld [vmem:[%s6826_s7 + $0x8] sm:$0xff]  ;;  %v3335_v34 = vld [vmem:[%s6826_s7 + $0x10] sm:$0xff]  ;;  %v4846_v30 = vpack.c.bf16 %v3338_v23, %v3337_v37 }
 0xc62   : > { %3171 = vst.msk [vmem:[#allocation2] sm:$0xff] %vm493_vm5, %v3168_v13  ;;  %v4840_v18 = vpack.c.bf16 %v3334_v6, %v3333_v44  ;;  %v3336_v13 = vld [vmem:[%s6826_s7 + $0x18] sm:$0xff] }
 0xc63   : > { %3172 = vst.msk [vmem:[#allocation2 + $0x8] sm:$0xf] %vm2226_vm12, %v3170_v29  ;;  %v4843_v4 = vpack.c.bf16 %v3336_v13, %v3335_v34 }
 0xc64   : > { %4841 = vmatpush3.bf16.msra.mxu0 %v4840_v18 }
 0xc65   : > { %4842 = vmatprep.subr.bf16.mxu0 %v4990_v3 }
 0xc68   : > { %4844 = vmatpush3.bf16.msra.mxu0 %v4843_v4 }
 0xc69   : > { %v3173_v53 = vld [vmem:[#allocation2] ss:$2 sm:$0xf]  ;;  %v3174_v24 = vld [vmem:[#allocation2 + $0x1] ss:$2 sm:$0xf]  ;;  %4845 = vmatprep.subr.bf16.mxu0 %v4990_v3 }
 0xc6a   : > { %v3176_v33 = vld [vmem:[#allocation2 + $0x3] ss:$2 sm:$0xf]  ;;  %v3177_v50 = vld [vmem:[#allocation2 + $0x4] ss:$2 sm:$0xf]  ;;  %3179 = vrot.lane.b32.xlu0 %v3174_v24, %s6851_s24 }
 0xc6b   : > { %v3175_v7 = vld [vmem:[#allocation2 + $0x2] ss:$2 sm:$0xf] }
 0xc6c   : > { %3209 = vst.msk [vmem:[#allocation2] sm:$0xff] %vm493_vm5, %v3206_v39  ;;  %4847 = vmatpush3.bf16.msra.mxu0 %v4846_v30 }
 0xc6d   : > { %3210 = vst.msk [vmem:[#allocation2 + $0x8] sm:$0xf] %vm2226_vm12, %v3208_v8  ;;  %4857 = vmatprep.subr.bf16.mxu0 %v4990_v3 }
 0xc6e   : > { %3183 = vrot.lane.b32.xlu0 %v3175_v7, %s6850_s16 }
 0xc73   : > { %v3212_v54 = vld [vmem:[#allocation2 + $0x1] ss:$2 sm:$0xf]  ;;  %v3211_v42 = vld [vmem:[#allocation2] ss:$2 sm:$0xf] }
 0xc74   : > { %v3213_v25 = vld [vmem:[#allocation2 + $0x2] ss:$2 sm:$0xf]  ;;  %3217 = vrot.lane.b32.xlu0 %v3212_v54, %s6851_s24  ;;  %v3214_v27 = vld [vmem:[#allocation2 + $0x3] ss:$2 sm:$0xf] }
 0xc75   : > { %3221 = vrot.lane.b32.xlu1 %v3213_v25, %s6850_s16  ;;  %v3215_v38 = vld [vmem:[#allocation2 + $0x4] ss:$2 sm:$0xf] }
 0xc76   : > { %3236 = vst.msk [vmem:[#allocation2] sm:$0xff] %vm493_vm5, %v6480_v57 }
 0xc78   : > { %3187 = vrot.lane.b32.xlu0 %v3176_v33, %s6848_s22 }
 0xc79   : > { %3225 = vrot.lane.b32.xlu1 %v3214_v27, %s6848_s22  ;;  %s382_s22 = scalar_lea.vmem [#allocation3], %s3963_s1 }
 0xc7d   : > { %3229 = vrot.lane.b32.xlu1 %v3215_v38, %s6849_s15  ;;  %v3237_v55 = vld [vmem:[#allocation2] ss:$2 sm:$0xf]  ;;  %v3238_v15 = vld [vmem:[#allocation2 + $0x1] ss:$2 sm:$0xf] }
 0xc7e   : > { %v3239_v12 = vadd.f32 %v3238_v15, %v3237_v55  ;;  %3241 = vst.msk [vmem:[#allocation2] sm:$0xff] %vm493_vm5, %v6472_v19 }
 0xc80   : > { %v3240_v21 = vmul.f32 0.5, %v3239_v12 }
 0xc81   : > { %3191 = vrot.lane.b32.xlu1 %v3177_v50, %s6849_s15  ;;  %s3897_s15 = sshll.u32 %s382_s22, 4  ;;  %s6774_s15 = int_to_ptr.vmem [resolvable:$true] %s3897_s15 }
 0xc82   : > { %s4922_s21 = scalar_lea.vmem %s6774_s15, 32  ;;  %p4929_p0 = scmp.lt.s32.totalorder %s6774_s15, %s4927_s14 }
 0xc83   : > { %p4923_p11 = scmp.ne.s32.totalorder %s6774_s15, %s4922_s21 }
 0xc85   : > { %v3242_v32 = vld [vmem:[#allocation2] ss:$2 sm:$0xf]  ;;  %v3243_v11 = vld [vmem:[#allocation2 + $0x1] ss:$2 sm:$0xf]  ;;  %p4924_p12 = pnand %p4923_p11, %p5093_p5 }
 0xc86   : > { %v3244_v16 = vadd.f32 %v3243_v11, %v3242_v32 }
 0xc87   : > { %p4925_p13 = pneg %p4924_p12 }
 0xc88   : > { %v3245_v49 = vmul.f32 0.5, %v3244_v16 }
 0xc8a   : > { %v3330_v26 = vrot.slane %v3245_v49, 4 }
 0xcdc   : > { %v3180_v57 = vpop.permute.xlu0 %3179 }
 0xcdd   : > { %v3194_v59 = vsel %vm493_vm5, %v3173_v53, %v3180_v57 }
 0xce0   : > { %v3184_v40 = vpop.permute.xlu0 %3183 }
 0xce1   : > { %v3195_v19 = vsel %vm498_vm6, %v3194_v59, %v3184_v40 }
 0xce6   : > { %v3218_v56 = vpop.permute.xlu0 %3217 }
 0xce7   : > { %v3222_v10 = vpop.permute.xlu1 %3221  ;;  %v3232_v2 = vsel %vm493_vm5, %v3211_v42, %v3218_v56  ;;  %v4107_v56 = vld [vmem:[%s6826_s7 + $0x38] sm:$0xff] }
 0xce8   : > { %v3233_v28 = vsel %vm498_vm6, %v3232_v2, %v3222_v10  ;;  %v4106_v10 = vld [vmem:[%s6826_s7 + $0x30] sm:$0xff] }
 0xce9   : > { %v4849_v2 = vpack.c.bf16 %v4107_v56, %v4106_v10 }
 0xcea   : > { %v3188_v47 = vpop.permute.xlu0 %3187 }
 0xceb   : > { %v3226_v52 = vpop.permute.xlu1 %3225  ;;  %v3196_v60 = vsel %vm503_vm7, %v3195_v19, %v3188_v47 }
 0xcec   : > { %v3234_v20 = vsel %vm503_vm7, %v3233_v28, %v3226_v52  ;;  %v4104_v52 = vld [vmem:[%s6827_s8] ss:$0 sm:$0xff] }
 0xced   : > { %v4108_v28 = vld [vmem:[%s6826_s7 + $0x40] sm:$0xff] }
 0xcef   : > { %v3230_v45 = vpop.permute.xlu1 %3229 }
 0xcf0   : > { %v3235_v58 = vsel %vm623_vm8, %v3234_v20, %v3230_v45  ;;  %v4109_v20 = vld [vmem:[%s6826_s7 + $0x48] sm:$0xff] }
 0xcf1   : > { %v3247_v0 = vrot.slane %v3235_v58, 4  ;;  %v4852_v47 = vpack.c.bf16 %v4109_v20, %v4108_v28 }
 0xcf3   : > { %v3192_v51 = vpop.permute.xlu1 %3191 }
 0xcf4   : > { %v3197_v22 = vsel %vm623_vm8, %v3196_v60, %v3192_v51  ;;  %v4110_v60 = vld [vmem:[%s6826_s7 + $0x50] sm:$0xff] }
 0xcf5   : > { %v3249_v5 = vsel %vm1063_vm10, %v3197_v22, %v3247_v0  ;;  %v4111_v0 = vld [vmem:[%s6826_s7 + $0x58] sm:$0xff] }
 0xcf6   : > { %4586 = vmatmul.mubr.msk.f32.vlgmr.msra.gmra.mrb[22].mxu1 %vm810_vm9, %v3249_v5  ;;  %v4855_v51 = vpack.c.bf16 %v4111_v0, %v4110_v60 }
 0xcf7   : > { %4615 = vmatprep.mubr.msk.f32.mxu1 %vm4991_vm13, %v4992_v41  ;;  %4850 = vmatpush3.bf16.msra.mxu1 %v4849_v2 }
 0xcf8   : > { %4851 = vmatprep.subr.bf16.mxu1 %v4990_v3 }
 0xcfb   : > { %4853 = vmatpush3.bf16.msra.mxu1 %v4852_v47 }
 0xcfc   : > { %4854 = vmatprep.subr.bf16.mxu1 %v4990_v3 }
 0xcff   : > { %4856 = vmatpush3.bf16.msra.mxu1 %v4855_v51 }
 0xd00   : > { %4866 = vmatprep.subr.bf16.mxu1 %v4990_v3 }
 0xdc9   : > { %v3323_v17 = vpop.f32.mrb[22].mxu1 }
 0xdca   : > { %v3324_v29 = vadd.f32 %v4102_v43, %v3323_v17  ;;  %v4587_v31 = vpop.f32.mrb[23].mxu1 }
 0xdcc   : > { %v3327_v62 = vmax.f32 %v3324_v29, 0.0 }
 0xdce   : > { %v3328_v35 = vadd.f32 %v3327_v62, %v3240_v21  ;;  %v3332_v61 = vadd.f32 %v3330_v26, %v3327_v62 }
 0xdd0   : > { %v3341_v63 = vrot.slane %v3328_v35, 1  ;;  %v3343_v53 = vrot.slane %v3328_v35, 7  ;;  %v3361_v33 = vrot.slane %v3332_v61, 5  ;;  %v3363_v50 = vrot.slane %v3332_v61, 3 }
 0xdd1   : > { %v3365_v24 = vrot.slane %v3332_v61, 1  ;;  %v3345_v39 = vrot.slane %v3328_v35, 5 }
 0xdd2   : > { %v3367_v8 = vsel %vm421_vm1, %v3361_v33, %v3363_v50  ;;  %v3347_v7 = vsel %vm421_vm1, %v3341_v63, %v3343_v53  ;;  %v4114_v33 = vld [vmem:[%s6826_s7 + $0x60] sm:$0xff]  ;;  %v4115_v50 = vld [vmem:[%s6826_s7 + $0x68] sm:$0xff] }
 0xdd3   : > { %v3368_v36 = vsel %vm471_vm4, %v3367_v8, %v3365_v24  ;;  %v3348_v1 = vsel %vm471_vm4, %v3347_v7, %v3345_v39  ;;  %v4858_v24 = vpack.c.bf16 %v4115_v50, %v4114_v33  ;;  %v4112_v39 = vld [vmem:[%s6827_s8 + $0x1] ss:$0 sm:$0xff]  ;;  %v4117_v8 = vld [vmem:[%s6826_s7 + $0x78] sm:$0xff] }
 0xdd4   : > { %v3374_v46 = vrot.slane %v3368_v36, 2  ;;  %v3370_v48 = vrot.slane %v3368_v36, 1  ;;  %v3354_v9 = vrot.slane %v3348_v1, 2  ;;  %v3350_v14 = vrot.slane %v3348_v1, 1 }
 0xdd6   : > { %3375 = vrot.lane.b32.xlu1 %v3374_v46, %s6850_s16  ;;  %3371 = vrot.lane.b32.xlu0 %v3370_v48, %s6851_s24 }
 0xdda   : > { %3355 = vrot.lane.b32.xlu1 %v3354_v9, %s6850_s16  ;;  %3351 = vrot.lane.b32.xlu0 %v3350_v14, %s6851_s24  ;;  %v4119_v9 = vld [vmem:[%s6826_s7 + $0x88] sm:$0xff] }
 0xe48   : > { %v3376_v25 = vpop.permute.xlu1 %3375  ;;  %v3372_v54 = vpop.permute.xlu0 %3371 }
 0xe49   : > { %v3378_v27 = vsel %vm493_vm5, %v3368_v36, %v3372_v54 }
 0xe4a   : > { %v3379_v38 = vsel %vm498_vm6, %v3378_v27, %v3376_v25 }
 0xe4b   : > { %v3381_v15 = vrot.slane %v3379_v38, 4 }
 0xe4c   : > { %v3356_v42 = vpop.permute.xlu1 %3355  ;;  %v3352_v55 = vpop.permute.xlu0 %3351 }
 0xe4d   : > { %v3358_v12 = vsel %vm493_vm5, %v3348_v1, %v3352_v55  ;;  %v4118_v1 = vld [vmem:[%s6826_s7 + $0x80] sm:$0xff] }
 0xe4e   : > { %v3359_v57 = vsel %vm498_vm6, %v3358_v12, %v3356_v42  ;;  %v4864_v25 = vpack.c.bf16 %v4119_v9, %v4118_v1 }
 0xe4f   : > { %v3383_v40 = vsel %vm1063_vm10, %v3359_v57, %v3381_v15 }
 0xe50   : > { %4601 = vmatmul.mubr.msk.f32.vlgmr.msra.gmra.mrb[30].mxu0 %vm503_vm7, %v3383_v40 }
 0xe51   : > { %4630 = vmatprep.mubr.msk.f32.mxu0 %vm4991_vm13, %v4992_v41  ;;  %4859 = vmatpush3.bf16.msra.mxu0 %v4858_v24 }
 0xe52   : > { %4860 = vmatprep.subr.bf16.mxu0 %v4990_v3 }
 0xf23   : > { %v3457_v45 = vpop.f32.mrb[30].mxu0 }
 0xf24   : > { %v3458_v58 = vadd.f32 %v4104_v52, %v3457_v45  ;;  %v4602_v59 = vpop.f32.mrb[31].mxu0 }
 0xf26   : > { %v3461_v19 = vmax.f32 %v3458_v58, 0.0 }
 0xf28   : > { %v3462_v22 = vadd.f32 %v3461_v19, %v3328_v35  ;;  %v3463_v5 = vadd.f32 %v3461_v19, %v3332_v61 }
 0xf2a   : > { %v3473_v44 = vrot.slane %v3462_v22, 1  ;;  %v3475_v6 = vrot.slane %v3462_v22, 7  ;;  %v3493_v18 = vrot.slane %v3463_v5, 5  ;;  %v3495_v32 = vrot.slane %v3463_v5, 3 }
 0xf2b   : > { %v3497_v11 = vrot.slane %v3463_v5, 1  ;;  %v3477_v16 = vrot.slane %v3462_v22, 5 }
 0xf2c   : > { %v3499_v43 = vsel %vm421_vm1, %v3493_v18, %v3495_v32  ;;  %v3479_v49 = vsel %vm421_vm1, %v3473_v44, %v3475_v6  ;;  %v3768_v6 = vld [vmem:[%s6828_s9] sm:$0xff]  ;;  %v3769_v18 = vld [vmem:[%s6828_s9 + $0x8] sm:$0xff] }
 0xf2d   : > { %v3500_v17 = vsel %vm471_vm4, %v3499_v43, %v3497_v11  ;;  %v3480_v29 = vsel %vm471_vm4, %v3479_v49, %v3477_v16  ;;  %v4867_v32 = vpack.c.bf16 %v3769_v18, %v3768_v6  ;;  %v4120_v11 = vld [vmem:[%s6827_s8 + $0x2] ss:$0 sm:$0xff]  ;;  %v3770_v16 = vld [vmem:[%s6828_s9 + $0x10] sm:$0xff]  ;;  %v3771_v43 = vld [vmem:[%s6828_s9 + $0x18] sm:$0xff] }
 0xf2e   : > { %v3506_v34 = vrot.slane %v3500_v17, 2  ;;  %v3502_v13 = vrot.slane %v3500_v17, 1  ;;  %v3486_v31 = vrot.slane %v3480_v29, 2  ;;  %v3482_v4 = vrot.slane %v3480_v29, 1 }
 0xf2f   : > { %v4870_v49 = vpack.c.bf16 %v3771_v43, %v3770_v16 }
 0xf30   : > { %3507 = vrot.lane.b32.xlu1 %v3506_v34, %s6850_s16  ;;  %3503 = vrot.lane.b32.xlu0 %v3502_v13, %s6851_s24 }
 0xf34   : > { %3487 = vrot.lane.b32.xlu1 %v3486_v31, %s6850_s16  ;;  %3483 = vrot.lane.b32.xlu0 %v3482_v4, %s6851_s24  ;;  %v3773_v31 = vld [vmem:[%s6828_s9 + $0x28] sm:$0xff] }
 0xfa2   : > { %v3508_v21 = vpop.permute.xlu1 %3507  ;;  %v3504_v62 = vpop.permute.xlu0 %3503 }
 0xfa3   : > { %v3510_v26 = vsel %vm493_vm5, %v3500_v17, %v3504_v62 }
 0xfa4   : > { %v3511_v37 = vsel %vm498_vm6, %v3510_v26, %v3508_v21 }
 0xfa5   : > { %v3513_v61 = vrot.slane %v3511_v37, 4 }
 0xfa6   : > { %v3488_v23 = vpop.permute.xlu1 %3487  ;;  %v3484_v35 = vpop.permute.xlu0 %3483 }
 0xfa7   : > { %v3490_v30 = vsel %vm493_vm5, %v3480_v29, %v3484_v35  ;;  %v3772_v29 = vld [vmem:[%s6828_s9 + $0x20] sm:$0xff] }
 0xfa8   : > { %v3491_v63 = vsel %vm498_vm6, %v3490_v30, %v3488_v23  ;;  %v4873_v21 = vpack.c.bf16 %v3773_v31, %v3772_v29 }
 0xfa9   : > { %v3515_v53 = vsel %vm1063_vm10, %v3491_v63, %v3513_v61 }
 0xfaa   : > { %4616 = vmatmul.mubr.msk.f32.vlgmr.msra.gmra.mrb[24].mxu1 %vm503_vm7, %v3515_v53 }
 0xfab   : > { %4645 = vmatprep.mubr.msk.f32.mxu1 %vm4991_vm13, %v4992_v41  ;;  %v4116_v41 = vld [vmem:[%s6826_s7 + $0x70] sm:$0xff]  ;;  %4868 = vmatpush3.bf16.msra.mxu1 %v4867_v32 }
 0xfac   : > { %v4861_v7 = vpack.c.bf16 %v4117_v8, %v4116_v41  ;;  %4869 = vmatprep.subr.bf16.mxu1 %v4990_v3 }
 0xfae   : > { %4862 = vmatpush3.bf16.msra.mxu0 %v4861_v7 }
 0xfaf   : > { %4863 = vmatprep.subr.bf16.mxu0 %v4990_v3  ;;  %4871 = vmatpush3.bf16.msra.mxu1 %v4870_v49 }
 0xfb0   : > { %4872 = vmatprep.subr.bf16.mxu1 %v4990_v3 }
 0xfb2   : > { %4865 = vmatpush3.bf16.msra.mxu0 %v4864_v25 }
 0xfb3   : > { %4874 = vmatpush3.bf16.msra.mxu1 %v4873_v21 }
0x107d   : > { %v3589_v36 = vpop.f32.mrb[24].mxu1 }
0x107e   : > { %v3590_v46 = vadd.f32 %v4112_v39, %v3589_v36  ;;  %v4617_v48 = vpop.f32.mrb[25].mxu1 }
0x1080   : > { %v3593_v14 = vmax.f32 %v3590_v46, 0.0 }
0x1082   : > { %v3594_v54 = vadd.f32 %v3593_v14, %v3462_v22  ;;  %v3595_v27 = vadd.f32 %v3593_v14, %v3463_v5 }
0x1084   : > { %v3605_v38 = vrot.slane %v3594_v54, 1  ;;  %v3607_v42 = vrot.slane %v3594_v54, 7  ;;  %v3625_v55 = vrot.slane %v3595_v27, 5  ;;  %v3627_v15 = vrot.slane %v3595_v27, 3 }
0x1085   : > { %v3629_v12 = vrot.slane %v3595_v27, 1  ;;  %v3609_v57 = vrot.slane %v3594_v54, 5 }
0x1086   : > { %v3631_v40 = vsel %vm421_vm1, %v3625_v55, %v3627_v15  ;;  %v3611_v10 = vsel %vm421_vm1, %v3605_v38, %v3607_v42  ;;  %v4122_v38 = vld [vmem:[%s6829_s10] ss:$0 sm:$0xff] }
0x1087   : > { %v3632_v56 = vsel %vm471_vm4, %v3631_v40, %v3629_v12  ;;  %v3612_v28 = vsel %vm471_vm4, %v3611_v10, %v3609_v57 }
0x1088   : > { %v3638_v2 = vrot.slane %v3632_v56, 2  ;;  %v3634_v52 = vrot.slane %v3632_v56, 1  ;;  %v3618_v20 = vrot.slane %v3612_v28, 2  ;;  %v3614_v45 = vrot.slane %v3612_v28, 1 }
0x108a   : > { %3639 = vrot.lane.b32.xlu1 %v3638_v2, %s6850_s16  ;;  %3635 = vrot.lane.b32.xlu0 %v3634_v52, %s6851_s24 }
0x108e   : > { %3619 = vrot.lane.b32.xlu1 %v3618_v20, %s6850_s16  ;;  %3615 = vrot.lane.b32.xlu0 %v3614_v45, %s6851_s24 }
0x10fc   : > { %v3640_v47 = vpop.permute.xlu1 %3639  ;;  %v3636_v58 = vpop.permute.xlu0 %3635 }
0x10fd   : > { %v3642_v59 = vsel %vm493_vm5, %v3632_v56, %v3636_v58 }
0x10fe   : > { %v3643_v19 = vsel %vm498_vm6, %v3642_v59, %v3640_v47 }
0x10ff   : > { %v3645_v51 = vrot.slane %v3643_v19, 4 }
0x1100   : > { %v3620_v60 = vpop.permute.xlu1 %3619  ;;  %v3616_v0 = vpop.permute.xlu0 %3615 }
0x1101   : > { %v3622_v22 = vsel %vm493_vm5, %v3612_v28, %v3616_v0 }
0x1102   : > { %v3623_v5 = vsel %vm498_vm6, %v3622_v22, %v3620_v60 }
0x1103   : > { %v3647_v44 = vsel %vm1063_vm10, %v3623_v5, %v3645_v51 }
0x1104   : > { %4631 = vmatmul.mubr.msk.f32.vlgmr.msra.gmra.mrb[32].mxu0 %vm503_vm7, %v3647_v44 }
0x11d7   : > { %v3721_v17 = vpop.f32.mrb[32].mxu0 }
0x11d8   : > { %v3722_v34 = vadd.f32 %v4120_v11, %v3721_v17  ;;  %v4632_v13 = vpop.f32.mrb[33].mxu0 }
0x11da   : > { %v3725_v4 = vmax.f32 %v3722_v34, 0.0 }
0x11dc   : > { %v3726_v62 = vadd.f32 %v3725_v4, %v3594_v54  ;;  %v3727_v26 = vadd.f32 %v3725_v4, %v3595_v27 }
0x11de   : > { %v3729_v37 = vrot.slane %v3726_v62, 1  ;;  %v3731_v23 = vrot.slane %v3726_v62, 7  ;;  %v3749_v35 = vrot.slane %v3727_v26, 5  ;;  %v3751_v61 = vrot.slane %v3727_v26, 3 }
0x11df   : > { %v3753_v30 = vrot.slane %v3727_v26, 1  ;;  %v3733_v63 = vrot.slane %v3726_v62, 5 }
0x11e0   : > { %v3755_v3 = vsel %vm421_vm1, %v3749_v35, %v3751_v61  ;;  %v3735_v53 = vsel %vm421_vm1, %v3729_v37, %v3731_v23 }
0x11e1   : > { %v3756_v33 = vsel %vm471_vm4, %v3755_v3, %v3753_v30  ;;  %v3736_v39 = vsel %vm471_vm4, %v3735_v53, %v3733_v63 }
0x11e2   : > { %v3762_v50 = vrot.slane %v3756_v33, 2  ;;  %v3758_v24 = vrot.slane %v3756_v33, 1  ;;  %v3742_v41 = vrot.slane %v3736_v39, 2  ;;  %v3738_v8 = vrot.slane %v3736_v39, 1 }
0x11e4   : > { %3763 = vrot.lane.b32.xlu1 %v3762_v50, %s6850_s16  ;;  %3759 = vrot.lane.b32.xlu0 %v3758_v24, %s6851_s24 }
0x11e8   : > { %3743 = vrot.lane.b32.xlu1 %v3742_v41, %s6850_s16  ;;  %3739 = vrot.lane.b32.xlu0 %v3738_v8, %s6851_s24  ;;  %s4928_s16 = scalar_lea.vmem %s4927_s14, 64 }
0x11e9   : > { %p4930_p1 = scmp.lt.s32.totalorder %s4928_s16, %s4922_s21 }
0x11eb   : > { %p4931_p2 = por %p4930_p1, %p4929_p0 }
0x11ed   : > { %p4932_p3 = pnand %p4931_p2, %p4925_p13 }
0x1256   : > { %v3764_v7 = vpop.permute.xlu1 %3763  ;;  %v3760_v36 = vpop.permute.xlu0 %3759 }
0x1257   : > { %v3766_v46 = vsel %vm493_vm5, %v3756_v33, %v3760_v36 }
0x1258   : > { %v3767_v48 = vsel %vm498_vm6, %v3766_v46, %v3764_v7 }
0x1259   : > { %v3776_v14 = vrot.slane %v3767_v48, 4 }
0x125a   : > { %v3744_v1 = vpop.permute.xlu1 %3743  ;;  %v3740_v9 = vpop.permute.xlu0 %3739 }
0x125b   : > { %v3746_v25 = vsel %vm493_vm5, %v3736_v39, %v3740_v9 }
0x125c   : > { %v3747_v54 = vsel %vm498_vm6, %v3746_v25, %v3744_v1 }
0x125d   : > { %v3778_v27 = vsel %vm1063_vm10, %v3747_v54, %v3776_v14 }
0x125e   : > { %4646 = vmatmul.mubr.msk.f32.vlgmr.msra.gmra.mrb[26].mxu1 %vm503_vm7, %v3778_v27 }
0x1331   : > { %v3854_v42 = vpop.f32.mrb[26].mxu1 }
0x1332   : > { %v3855_v55 = vadd.f32 %v4122_v38, %v3854_v42  ;;  %v4647_v15 = vpop.f32.mrb[27].mxu1 }
0x1334   : > { %v3859_v12 = vsel %vm3858_vm14, %v3855_v55, 0.0  ;;  %v3871_v57 = vrot.slane %v3855_v55, 4 }
0x1335   : > { %v3860_v40 = vrot.slane %v3859_v12, 4 }
0x1336   : > { %v3873_v10 = vsel %vm3858_vm14, %v3871_v57, 0.0 }
0x1337   : > { %v3861_v56 = vadd.f32 %v3860_v40, %v3859_v12  ;;  %v3874_v2 = vrot.slane %v3873_v10, 4 }
0x1339   : > { %v3862_v52 = vrot.slane %v3861_v56, 2  ;;  %v3875_v28 = vadd.f32 %v3874_v2, %v3873_v10 }
0x133b   : > { %v3863_v20 = vadd.f32 %v3862_v52, %v3861_v56  ;;  %v3876_v45 = vrot.slane %v3875_v28, 2 }
0x133d   : > { %v3864_v47 = vrot.slane %v3863_v20, 1  ;;  %v3877_v58 = vadd.f32 %v3876_v45, %v3875_v28 }
0x133f   : > { %v3865_v59 = vadd.f32 %v3864_v47, %v3863_v20  ;;  %v3878_v19 = vrot.slane %v3877_v58, 1 }
0x1341   : > { %v3867_v60 = vmul.f32 0.25, %v3865_v59  ;;  %v3879_v0 = vadd.f32 %v3878_v19, %v3877_v58 }
0x1343   : > { %v3880_v51 = vmul.f32 0.25, %v3879_v0  ;;  %3869 = vst.msk [vmem:[%s382_s22] sm:$0x1] %vm3868_vm15, %v3867_v60 }
0x1345   : > { %4124 = vst.msk [vmem:[%s382_s22 + $0x1] sm:$0x1] %vm3868_vm15, %v3880_v51 }
0x1346   : > { %4935 = shalt.err (!%p4932_p3)
}
0x1347   : > { %s4936_s0 = scalar_lea.hbm %s6772_s29, 32  ;;  %s4940_s2 = scalar_lea.hbm %s6830_s11, 128 }
0x1348   : > { %p4937_p4 = scmp.ne.s32.totalorder %s6772_s29, %s4936_s0  ;;  %p4941_p9 = scmp.lt.u32.totalorder %s6772_s29, %s6830_s11 }
0x1349   : > { %p4942_p10 = scmp.lt.u32.totalorder %s4940_s2, %s4936_s0  ;;  %p4944_p12 = scmp.lt.u32.totalorder %s4936_s0, %s6772_s29 }
0x134a   : > { %p4938_p7 = pnand %p4937_p4, %p5093_p5 }
0x134b   : > { %p4943_p11 = por %p4942_p10, %p4941_p9 }
0x134c   : > { %p4939_p8 = pneg %p4938_p7 }
0x134d   : > { %p4945_p13 = por %p4944_p12, %p4943_p11 }
0x134f   : > { %p4946_p0 = pnand %p4945_p13, %p4939_p8 }
0x1351   : > { %4949 = shalt.err (!%p4946_p0)
}
0x1352   : > { %s4994_s30 = smov 1  }
0x1353   : > { %4875 = dma.vmem_to_hbm [thread:$0]  (%p5093_p5), %s6774_s15, 32, %s6772_s29, %s6776_s12, %s6851_s24, %s6851_s24, %s4994_s30  }
0x1354 PF: > { %p4881_p1 = scmp.ge.s32.totalorder %s4984_s20, 2  ;;  %s3912_s21 = sand.u32 1, %s4972_s17  }
0x1355   : > { %s3913_s13 = scalar_lea.sflag [#allocation4], %s3912_s21 }
0x1356   : > { %p4878_p2 = pnand %p4881_p1, %p5097_p6 }
0x1358   : > { %4967 = dma.done.wait (!%p4878_p2), %s3913_s13, 32  }
0x1359   : > { %4969 = vsyncadd (!%p4878_p2), %s3913_s13, 4294967264  ;;  %s6852_s27 = sld [smem:[#allocation6_spill]]  ;;  %p21_p3 = scmp.ge.s32.totalorder %s5080_s23, 6  }
0x135a   : > { %s6853_s17 = smov %s4976_s18  ;;  %s6854_s18 = smov %s4980_s19 }
0x135b   : > { %s6856_s20 = smov %s5080_s23  ;;  %23 = sbr.rel (!%p21_p3) target bundleno = 7 (0x7), region = 119 }
0x135f   : > { %s6855_s19 = smov %s6852_s27 }
0x1362   :  { %3918 = vsyncpa [#allocation4], 1 }
0x1363   :  { %3920 = vsyncpa [#allocation4 + $0x1], 1 }

</bundles_post_ra>
